<compile_context>
chip_gen: v5e
topology: v5e:2x2
jax: 0.10.0
libtpu: 0.0.40
codegen_flags: <defaults>
</compile_context>

<pallas_src>
import functools

import jax
import jax.numpy as jnp
from jax.experimental import pallas as pl
from jax.experimental.pallas import tpu as pltpu

KH = KW = 3
BN_EPS = 1e-5
IMGS_PER_STEP = 8            # backbone grid: images per grid step (sublane tile)


# ----------------------------------------------------------------------------
# Pallas kernels
# ----------------------------------------------------------------------------
def backbone_kernel(x_ref, w_ref, b_ref, o_ref, *, n_imgs, img_h, img_w):
    """Conv3x3(pad=1) -> ReLU -> global average pool for `n_imgs` images.

    x_ref : (n_imgs, (H+2)*W, KW*C) bf16  column-shifted, row-padded images
    w_ref : (KH, KW*C, R)           bf16  conv weight, contraction over (dj, c)
    b_ref : (1, R)                  f32
    o_ref : (n_imgs, R)             f32   pooled representations
    """
    hw = img_h * img_w
    r = o_ref.shape[-1]
    bias = jnp.broadcast_to(b_ref[...], (hw, r))          # hoisted broadcast
    for b in range(n_imgs):
        img = x_ref[b]                                    # ((H+2)*W, KW*C)
        acc = jnp.zeros((hw, r), jnp.float32)
        for di in range(KH):
            # rows [di*W, di*W + H*W) == padded input rows di .. di+H-1;
            # starts are multiples of W (>=16) so slices stay tile-aligned.
            patch = img[di * img_w: di * img_w + hw, :]
            acc = acc + jnp.dot(patch, w_ref[di],
                                preferred_element_type=jnp.float32)
        y = jnp.maximum(acc + bias, 0.0)                  # conv bias + ReLU
        # Global average pool = sublane reduction (XLU); keepdims row store.
        o_ref[pl.ds(b, 1), :] = jnp.mean(y, axis=0, keepdims=True)


def _bn_relu(y, gamma, beta, n_groups):
    """Training-mode BatchNorm1d (biased variance) + ReLU, stats per row-group.

    All math in f32; the grouped path reshapes (rows, D) -> (G, rows/G, D)
    (sublane-aligned split, no concatenate) and reduces over axis=-2.
    """
    rows, d = y.shape
    if n_groups > 1:
        y = y.reshape(n_groups, rows // n_groups, d)
    mu = jnp.mean(y, axis=-2, keepdims=True)
    var = jnp.mean((y - mu) ** 2, axis=-2, keepdims=True)
    out = jnp.maximum((y - mu) * jax.lax.rsqrt(var + BN_EPS) * gamma + beta,
                      0.0)
    if n_groups > 1:
        out = out.reshape(rows, d)
    return out


def make_heads_kernel(n_proj_layers, batch, n_groups):
    """Fused temporal predictor + projector on the stacked (2B, R) input.

    Projector: (Linear -> BN -> ReLU) x (n_proj_layers-1) -> Linear(no bias),
    BatchNorm statistics computed independently per contiguous row group
    (rows [0:B] = view 1, rows [B:2B] = view 2), matching two separate
    PyTorch projector calls.
    Predictor: rows [0:B] only; concat([b1, t]) @ W0 is split into
    b1 @ W0[:R] + t * W0[R] so no (R+1)-wide concat is needed.
    """
    def kernel(x_ref, t_ref, w0r_ref, w0t_ref, b0_ref, g0_ref, bt0_ref,
               w1p_ref, *rest):
        proj_refs = rest[:-2]
        z_ref, pred_ref = rest[-2], rest[-1]

        x = x_ref[...]                                    # (2B, R) f32

        # ---- temporal predictor (view-1 rows, single-group BN) ----
        b1 = x[0:batch, :]
        y = jnp.dot(b1.astype(jnp.bfloat16), w0r_ref[...],
                    preferred_element_type=jnp.float32)
        y = y + t_ref[...] * w0t_ref[...] + b0_ref[...]
        h = _bn_relu(y, g0_ref[...], bt0_ref[...], n_groups=1)
        pred_ref[...] = jnp.dot(h.astype(jnp.bfloat16), w1p_ref[...],
                                preferred_element_type=jnp.float32)

        # ---- projector on both views (per-view BN stats) ----
        h = x
        i = 0
        for _ in range(n_proj_layers - 1):
            w, b, g, bt = (proj_refs[i], proj_refs[i + 1],
                           proj_refs[i + 2], proj_refs[i + 3])
            i += 4
            y = jnp.dot(h.astype(jnp.bfloat16), w[...],
                        preferred_element_type=jnp.float32) + b[...]
            h = _bn_relu(y, g[...], bt[...], n_groups=n_groups)
        z_ref[...] = jnp.dot(h.astype(jnp.bfloat16), proj_refs[i][...],
                             preferred_element_type=jnp.float32)

    return kernel


# ----------------------------------------------------------------------------
# Wrappers around pallas_call
# ----------------------------------------------------------------------------
def _full_spec(shape):
    return pl.BlockSpec(shape, lambda: (0,) * len(shape))


def backbone_forward_batch(x_nchw, w_hwio, bias):
    """Backbone for the stacked (N=2B, C, H, W) batch -> (N, R).

    Only the KW column shifts are materialized by the wrapper (bf16); the KH
    row offsets, conv matmuls, ReLU and global average pool run in-kernel.
    # TODO(synk): for large C do the column shifts in-kernel too (removes the
    # remaining 3x HBM expansion) and tile HW for v7x's 64 MiB VMEM.
    """
    x = jnp.transpose(x_nchw, (0, 2, 3, 1)).astype(jnp.bfloat16)   # NHWC bf16
    n, h, w, c = x.shape
    r = w_hwio.shape[-1]
    xp = jnp.pad(x, ((0, 0), (1, 1), (1, 1), (0, 0)))              # (N,H+2,W+2,C)
    # Concatenate the KW column shifts along channels: contraction dim = KW*C.
    xs = jnp.concatenate([xp[:, :, dj:dj + w, :] for dj in range(KW)], axis=-1)
    xs = xs.reshape(n, (h + 2) * w, KW * c)
    w3 = w_hwio.reshape(KH, KW * c, r).astype(jnp.bfloat16)
    b2d = bias.reshape(1, r).astype(jnp.float32)

    g = IMGS_PER_STEP if n % IMGS_PER_STEP == 0 else n
    kernel = functools.partial(backbone_kernel, n_imgs=g, img_h=h, img_w=w)
    return pl.pallas_call(
        kernel,
        out_shape=jax.ShapeDtypeStruct((n, r), jnp.float32),
        grid=(n // g,),
        in_specs=[
            pl.BlockSpec((g, (h + 2) * w, KW * c), lambda i: (i, 0, 0)),
            pl.BlockSpec((KH, KW * c, r), lambda i: (0, 0, 0)),
            pl.BlockSpec((1, r), lambda i: (0, 0)),
        ],
        out_specs=pl.BlockSpec((g, r), lambda i: (i, 0)),
        compiler_params=pltpu.CompilerParams(
            dimension_semantics=("parallel",)),   # v7x: shard across both TCs
    )(xs, w3, b2d)


def fused_heads(b12, time_diff, params, n_proj_layers, n_groups):
    """One pallas_call: temporal predictor + projector on the stacked b12."""
    rows, r = b12.shape
    assert rows % n_groups == 0
    batch = rows // n_groups

    w0 = params["pred_w0"]                           # (R + 1, Hp)
    w0r = w0[:r].astype(jnp.bfloat16)                # (R, Hp)
    w0t = w0[r:r + 1].astype(jnp.float32)            # (1, Hp)
    b0 = params["pred_b0"].reshape(1, -1)
    g0 = params["pred_g0"].reshape(1, -1)
    bt0 = params["pred_beta0"].reshape(1, -1)
    w1p = params["pred_w1"].astype(jnp.bfloat16)     # (Hp, R)
    t = time_diff.astype(jnp.float32).reshape(batch, 1)

    args = [b12, t, w0r, w0t, b0, g0, bt0, w1p]
    # TODO(synk): for realistic projector widths (e.g. 8192) grid over
    # output-feature columns (and K with a VMEM accumulator) instead of
    # full-array weight residency (mandatory on v7x's 64 MiB VMEM).
    for li in range(n_proj_layers - 1):
        args += [params[f"proj_w{li}"].astype(jnp.bfloat16),
                 params[f"proj_b{li}"].reshape(1, -1),
                 params[f"proj_g{li}"].reshape(1, -1),
                 params[f"proj_beta{li}"].reshape(1, -1)]
    w_last = params[f"proj_w{n_proj_layers - 1}"].astype(jnp.bfloat16)
    args.append(w_last)
    d_out = w_last.shape[1]
    d_pred = params["pred_w1"].shape[1]

    return pl.pallas_call(
        make_heads_kernel(n_proj_layers, batch, n_groups),
        out_shape=(jax.ShapeDtypeStruct((rows, d_out), jnp.float32),
                   jax.ShapeDtypeStruct((batch, d_pred), jnp.float32)),
        in_specs=[_full_spec(a.shape) for a in args],
        out_specs=(_full_spec((rows, d_out)), _full_spec((batch, d_pred))),
    )(*args)


# ----------------------------------------------------------------------------
# Model: parameter init + forward
# ----------------------------------------------------------------------------
def init_params(key, *, in_ch, repre_dim, proj_hidden, pred_hidden):
    ks = jax.random.split(key, 16)
    p = {}
    # backbone conv (HWIO layout)
    p["conv_w"] = 0.1 * jax.random.normal(
        ks[0], (KH, KW, in_ch, repre_dim), jnp.float32)
    p["conv_b"] = jnp.zeros((repre_dim,), jnp.float32)

    # projector MLP: repre_dim -> h1 -> h2 -> h3
    dims = (repre_dim,) + tuple(proj_hidden)
    for li in range(len(proj_hidden)):
        din, dout = dims[li], dims[li + 1]
        p[f"proj_w{li}"] = 0.01 * jax.random.normal(
            ks[1 + li], (din, dout), jnp.float32)
        if li < len(proj_hidden) - 1:          # hidden layers: bias + BN params
            p[f"proj_b{li}"] = jnp.zeros((dout,), jnp.float32)
            p[f"proj_g{li}"] = jnp.ones((dout,), jnp.float32)
            p[f"proj_beta{li}"] = jnp.zeros((dout,), jnp.float32)

    # tempPredictor MLP: (repre_dim + 1) -> pred_hidden -> repre_dim
    p["pred_w0"] = 0.01 * jax.random.normal(
        ks[8], (repre_dim + 1, pred_hidden), jnp.float32)
    p["pred_b0"] = jnp.zeros((pred_hidden,), jnp.float32)
    p["pred_g0"] = jnp.ones((pred_hidden,), jnp.float32)
    p["pred_beta0"] = jnp.zeros((pred_hidden,), jnp.float32)
    p["pred_w1"] = 0.01 * jax.random.normal(
        ks[9], (pred_hidden, repre_dim), jnp.float32)
    return p


@functools.partial(jax.jit, static_argnames=("n_proj_hidden",))
def tc_vicreg_forward(params, x1, x2, time_diff, *, n_proj_hidden):
    B = x1.shape[0]
    # One gridded backbone launch for both views.
    x12 = jnp.concatenate([x1, x2], axis=0)                        # (2B,C,H,W)
    b12 = backbone_forward_batch(x12, params["conv_w"], params["conv_b"])
    b2 = b12[B:]
    # One fused launch: projector (per-view BN stats) + temporal predictor.
    z12, b_equi_pred = fused_heads(b12, time_diff, params,
                                   n_proj_hidden, n_groups=2)
    z1, z2 = z12[:B], z12[B:]
    # norm_embed=False -> no normalization; stop_gr=False -> b2 returned as-is.
    return z1, z2, b2, b_equi_pred


# ----------------------------------------------------------------------------
# Pure-JAX reference (PyTorch-equivalent semantics, f32, no Pallas)
# ----------------------------------------------------------------------------
def _im2col(x_nhwc):
    B, H, W, C = x_nhwc.shape
    xp = jnp.pad(x_nhwc, ((0, 0), (1, 1), (1, 1), (0, 0)))
    cols = []
    for di in range(KH):
        for dj in range(KW):
            cols.append(xp[:, di:di + H, dj:dj + W, :])
    patches = jnp.stack(cols, axis=3)                   # (B, H, W, KH*KW, C)
    return patches.reshape(B, H * W, KH * KW * C)


def _ref_backbone(x_nchw, w_hwio, bias):
    x = jnp.transpose(x_nchw, (0, 2, 3, 1)).astype(jnp.float32)
    patches = _im2col(x)
    K = KH * KW * x.shape[-1]
    y = patches @ w_hwio.reshape(K, -1) + bias[None, None, :]
    return jnp.mean(jnp.maximum(y, 0.0), axis=1)


def _ref_lbr(x, w, b, g, beta):
    y = x @ w + b[None, :]
    mu = y.mean(0, keepdims=True)
    var = ((y - mu) ** 2).mean(0, keepdims=True)
    return jnp.maximum((y - mu) * jax.lax.rsqrt(var + BN_EPS) * g[None, :]
                       + beta[None, :], 0.0)


def _ref_forward(params, x1, x2, time_diff, n_hidden):
    b1 = _ref_backbone(x1, params["conv_w"], params["conv_b"])
    b2 = _ref_backbone(x2, params["conv_w"], params["conv_b"])
    pin = jnp.concatenate([b1, time_diff], axis=1)
    h = _ref_lbr(pin, params["pred_w0"], params["pred_b0"],
                 params["pred_g0"], params["pred_beta0"])
    bp = h @ params["pred_w1"]

    def proj(x):
        h = x
        for li in range(n_hidden - 1):
            h = _ref_lbr(h, params[f"proj_w{li}"], params[f"proj_b{li}"],
                         params[f"proj_g{li}"], params[f"proj_beta{li}"])
        return h @ params[f"proj_w{n_hidden - 1}"]

    return proj(b1), proj(b2), b2, bp


# ----------------------------------------------------------------------------
if __name__ == "__main__":
    # Lane-friendly toy shapes: feature dims multiples of 128 (unmasked vst),
    # batch multiple of 8 (sublane-aligned per-view BN groups).
    B, C, H, W = 8, 4, 16, 16
    REPRE_DIM = 128
    PROJ_HIDDEN = (128, 128, 128)
    PRED_HIDDEN = 128

    key = jax.random.PRNGKey(0)
    kx1, kx2, kt, kp = jax.random.split(key, 4)
    x1 = jax.random.normal(kx1, (B, C, H, W), jnp.float32)
    x2 = jax.random.normal(kx2, (B, C, H, W), jnp.float32)
    time_diff = jax.random.uniform(kt, (B, 1), jnp.float32)

    params = init_params(kp, in_ch=C, repre_dim=REPRE_DIM,
                         proj_hidden=PROJ_HIDDEN, pred_hidden=PRED_HIDDEN)

    z1, z2, b2, b_equi_pred = tc_vicreg_forward(
        params, x1, x2, time_diff, n_proj_hidden=len(PROJ_HIDDEN))
    jax.block_until_ready((z1, z2, b2, b_equi_pred))

    # Sanity check against the f32 reference; tolerance loosened because the
    # kernels use bf16 MXU operands (f32 accumulation / BN math).
    rz1, rz2, rb2, rbp = _ref_forward(params, x1, x2, time_diff,
                                      len(PROJ_HIDDEN))
    for name, got, ref in (("z1", z1, rz1), ("z2", z2, rz2),
                           ("b2", b2, rb2), ("b_pred", b_equi_pred, rbp)):
        assert jnp.allclose(got, ref, atol=5e-2, rtol=5e-2), name

    assert z1.shape == (B, PROJ_HIDDEN[-1])
    assert z2.shape == (B, PROJ_HIDDEN[-1])
    assert b2.shape == (B, REPRE_DIM)
    assert b_equi_pred.shape == (B, REPRE_DIM)
    print("KERNEL_OK")
</pallas_src>

<mosaic_0001>
module attributes {stable_mosaic.version = 11 : i64} {
  func.func @backbone_kernel(%arg0: i32, %arg1: memref<8x288x12xbf16, #tpu.memory_space<vmem>>, %arg2: memref<3x12x128xbf16, #tpu.memory_space<vmem>>, %arg3: memref<1x128xf32, #tpu.memory_space<vmem>>, %arg4: memref<8x128xf32, #tpu.memory_space<vmem>>) attributes {dimension_semantics = [#tpu.dimension_semantics<parallel>], iteration_bounds = array<i64: 2>, scalar_prefetch = 0 : i64, scratch_operands = 0 : i64, tpu.core_type = #tpu.core_type<tc>, window_params = [{transform_indices = @transform_0, window_bounds = array<i64: 8, 288, 12>}, {pipeline_mode = #tpu.pipeline_mode<synchronous>, transform_indices = @transform_1, window_bounds = array<i64: 3, 12, 128>}, {pipeline_mode = #tpu.pipeline_mode<synchronous>, transform_indices = @transform_2, window_bounds = array<i64: 1, 128>}, {transform_indices = @transform_3, window_bounds = array<i64: 8, 128>}]} {
    %c0 = arith.constant 0 : index
    %c0_0 = arith.constant 0 : index
    %0 = vector.load %arg3[%c0, %c0_0] : memref<1x128xf32, #tpu.memory_space<vmem>>, vector<1x128xf32>
    %1 = vector.shape_cast %0 : vector<1x128xf32> to vector<1x128xf32>
    %2 = vector.broadcast %1 : vector<1x128xf32> to vector<256x128xf32>
    %c0_1 = arith.constant 0 : index
    %c0_2 = arith.constant 0 : index
    %c0_3 = arith.constant 0 : index
    %3 = vector.load %arg1[%c0_1, %c0_2, %c0_3] : memref<8x288x12xbf16, #tpu.memory_space<vmem>>, vector<1x288x12xbf16>
    %4 = vector.shape_cast %3 : vector<1x288x12xbf16> to vector<288x12xbf16>
    %cst = arith.constant 0.000000e+00 : f32
    %5 = vector.broadcast %cst : f32 to vector<256x128xf32>
    %6 = vector.extract_strided_slice %4 {offsets = [0, 0], sizes = [256, 12], strides = [1, 1]} : vector<288x12xbf16> to vector<256x12xbf16>
    %c0_4 = arith.constant 0 : index
    %c0_5 = arith.constant 0 : index
    %c0_6 = arith.constant 0 : index
    %7 = vector.load %arg2[%c0_4, %c0_5, %c0_6] : memref<3x12x128xbf16, #tpu.memory_space<vmem>>, vector<1x12x128xbf16>
    %8 = vector.shape_cast %7 : vector<1x12x128xbf16> to vector<12x128xbf16>
    %cst_7 = arith.constant dense<0.000000e+00> : vector<256x128xf32>
    %9 = tpu.matmul %6, %8, %cst_7 {dimension_numbers = #tpu.dot_dimension_numbers<[1], [0], [0], [1], [0, 0, 1, 1], [], []>} : vector<256x12xbf16>, vector<12x128xbf16>, vector<256x128xf32> -> vector<256x128xf32>
    %10 = arith.addf %5, %9 : vector<256x128xf32>
    %11 = vector.extract_strided_slice %4 {offsets = [16, 0], sizes = [256, 12], strides = [1, 1]} : vector<288x12xbf16> to vector<256x12xbf16>
    %c1 = arith.constant 1 : index
    %c0_8 = arith.constant 0 : index
    %c0_9 = arith.constant 0 : index
    %12 = vector.load %arg2[%c1, %c0_8, %c0_9] : memref<3x12x128xbf16, #tpu.memory_space<vmem>>, vector<1x12x128xbf16>
    %13 = vector.shape_cast %12 : vector<1x12x128xbf16> to vector<12x128xbf16>
    %cst_10 = arith.constant dense<0.000000e+00> : vector<256x128xf32>
    %14 = tpu.matmul %11, %13, %cst_10 {dimension_numbers = #tpu.dot_dimension_numbers<[1], [0], [0], [1], [0, 0, 1, 1], [], []>} : vector<256x12xbf16>, vector<12x128xbf16>, vector<256x128xf32> -> vector<256x128xf32>
    %15 = arith.addf %10, %14 : vector<256x128xf32>
    %16 = vector.extract_strided_slice %4 {offsets = [32, 0], sizes = [256, 12], strides = [1, 1]} : vector<288x12xbf16> to vector<256x12xbf16>
    %c2 = arith.constant 2 : index
    %c0_11 = arith.constant 0 : index
    %c0_12 = arith.constant 0 : index
    %17 = vector.load %arg2[%c2, %c0_11, %c0_12] : memref<3x12x128xbf16, #tpu.memory_space<vmem>>, vector<1x12x128xbf16>
    %18 = vector.shape_cast %17 : vector<1x12x128xbf16> to vector<12x128xbf16>
    %cst_13 = arith.constant dense<0.000000e+00> : vector<256x128xf32>
    %19 = tpu.matmul %16, %18, %cst_13 {dimension_numbers = #tpu.dot_dimension_numbers<[1], [0], [0], [1], [0, 0, 1, 1], [], []>} : vector<256x12xbf16>, vector<12x128xbf16>, vector<256x128xf32> -> vector<256x128xf32>
    %20 = arith.addf %15, %19 : vector<256x128xf32>
    %21 = arith.addf %20, %2 : vector<256x128xf32>
    %cst_14 = arith.constant 0.000000e+00 : f32
    %22 = vector.broadcast %cst_14 : f32 to vector<256x128xf32>
    %23 = arith.maximumf %21, %22 : vector<256x128xf32>
    %cst_15 = arith.constant dense<0.000000e+00> : vector<128xf32>
    %24 = vector.multi_reduction <add>, %23, %cst_15 [0] : vector<256x128xf32> to vector<128xf32>
    %25 = vector.shape_cast %24 : vector<128xf32> to vector<1x128xf32>
    %cst_16 = arith.constant 2.560000e+02 : f32
    %26 = vector.broadcast %cst_16 : f32 to vector<1x128xf32>
    %27 = arith.divf %25, %26 : vector<1x128xf32>
    %c0_17 = arith.constant 0 : index
    %c0_18 = arith.constant 0 : index
    %28 = vector.load %arg4[%c0_17, %c0_18] : memref<8x128xf32, #tpu.memory_space<vmem>>, vector<1x128xf32>
    tpu.vector_store %arg4[%c0_17, %c0_18], %27 {strides = array<i32>} : memref<8x128xf32, #tpu.memory_space<vmem>>, vector<1x128xf32>,
    %c1_19 = arith.constant 1 : index
    %c0_20 = arith.constant 0 : index
    %c0_21 = arith.constant 0 : index
    %29 = vector.load %arg1[%c1_19, %c0_20, %c0_21] : memref<8x288x12xbf16, #tpu.memory_space<vmem>>, vector<1x288x12xbf16>
    %30 = vector.shape_cast %29 : vector<1x288x12xbf16> to vector<288x12xbf16>
    %cst_22 = arith.constant 0.000000e+00 : f32
    %31 = vector.broadcast %cst_22 : f32 to vector<256x128xf32>
    %32 = vector.extract_strided_slice %30 {offsets = [0, 0], sizes = [256, 12], strides = [1, 1]} : vector<288x12xbf16> to vector<256x12xbf16>
    %c0_23 = arith.constant 0 : index
    %c0_24 = arith.constant 0 : index
    %c0_25 = arith.constant 0 : index
    %33 = vector.load %arg2[%c0_23, %c0_24, %c0_25] : memref<3x12x128xbf16, #tpu.memory_space<vmem>>, vector<1x12x128xbf16>
    %34 = vector.shape_cast %33 : vector<1x12x128xbf16> to vector<12x128xbf16>
    %cst_26 = arith.constant dense<0.000000e+00> : vector<256x128xf32>
    %35 = tpu.matmul %32, %34, %cst_26 {dimension_numbers = #tpu.dot_dimension_numbers<[1], [0], [0], [1], [0, 0, 1, 1], [], []>} : vector<256x12xbf16>, vector<12x128xbf16>, vector<256x128xf32> -> vector<256x128xf32>
    %36 = arith.addf %31, %35 : vector<256x128xf32>
    %37 = vector.extract_strided_slice %30 {offsets = [16, 0], sizes = [256, 12], strides = [1, 1]} : vector<288x12xbf16> to vector<256x12xbf16>
    %c1_27 = arith.constant 1 : index
    %c0_28 = arith.constant 0 : index
    %c0_29 = arith.constant 0 : index
    %38 = vector.load %arg2[%c1_27, %c0_28, %c0_29] : memref<3x12x128xbf16, #tpu.memory_space<vmem>>, vector<1x12x128xbf16>
    %39 = vector.shape_cast %38 : vector<1x12x128xbf16> to vector<12x128xbf16>
    %cst_30 = arith.constant dense<0.000000e+00> : vector<256x128xf32>
    %40 = tpu.matmul %37, %39, %cst_30 {dimension_numbers = #tpu.dot_dimension_numbers<[1], [0], [0], [1], [0, 0, 1, 1], [], []>} : vector<256x12xbf16>, vector<12x128xbf16>, vector<256x128xf32> -> vector<256x128xf32>
    %41 = arith.addf %36, %40 : vector<256x128xf32>
    %42 = vector.extract_strided_slice %30 {offsets = [32, 0], sizes = [256, 12], strides = [1, 1]} : vector<288x12xbf16> to vector<256x12xbf16>
    %c2_31 = arith.constant 2 : index
    %c0_32 = arith.constant 0 : index
    %c0_33 = arith.constant 0 : index
    %43 = vector.load %arg2[%c2_31, %c0_32, %c0_33] : memref<3x12x128xbf16, #tpu.memory_space<vmem>>, vector<1x12x128xbf16>
    %44 = vector.shape_cast %43 : vector<1x12x128xbf16> to vector<12x128xbf16>
    %cst_34 = arith.constant dense<0.000000e+00> : vector<256x128xf32>
    %45 = tpu.matmul %42, %44, %cst_34 {dimension_numbers = #tpu.dot_dimension_numbers<[1], [0], [0], [1], [0, 0, 1, 1], [], []>} : vector<256x12xbf16>, vector<12x128xbf16>, vector<256x128xf32> -> vector<256x128xf32>
    %46 = arith.addf %41, %45 : vector<256x128xf32>
    %47 = arith.addf %46, %2 : vector<256x128xf32>
    %cst_35 = arith.constant 0.000000e+00 : f32
    %48 = vector.broadcast %cst_35 : f32 to vector<256x128xf32>
    %49 = arith.maximumf %47, %48 : vector<256x128xf32>
    %cst_36 = arith.constant dense<0.000000e+00> : vector<128xf32>
    %50 = vector.multi_reduction <add>, %49, %cst_36 [0] : vector<256x128xf32> to vector<128xf32>
    %51 = vector.shape_cast %50 : vector<128xf32> to vector<1x128xf32>
    %cst_37 = arith.constant 2.560000e+02 : f32
    %52 = vector.broadcast %cst_37 : f32 to vector<1x128xf32>
    %53 = arith.divf %51, %52 : vector<1x128xf32>
    %c1_38 = arith.constant 1 : index
    %c0_39 = arith.constant 0 : index
    %54 = vector.load %arg4[%c1_38, %c0_39] : memref<8x128xf32, #tpu.memory_space<vmem>>, vector<1x128xf32>
    tpu.vector_store %arg4[%c1_38, %c0_39], %53 {strides = array<i32>} : memref<8x128xf32, #tpu.memory_space<vmem>>, vector<1x128xf32>,
    %c2_40 = arith.constant 2 : index
    %c0_41 = arith.constant 0 : index
    %c0_42 = arith.constant 0 : index
    %55 = vector.load %arg1[%c2_40, %c0_41, %c0_42] : memref<8x288x12xbf16, #tpu.memory_space<vmem>>, vector<1x288x12xbf16>
    %56 = vector.shape_cast %55 : vector<1x288x12xbf16> to vector<288x12xbf16>
    %cst_43 = arith.constant 0.000000e+00 : f32
    %57 = vector.broadcast %cst_43 : f32 to vector<256x128xf32>
    %58 = vector.extract_strided_slice %56 {offsets = [0, 0], sizes = [256, 12], strides = [1, 1]} : vector<288x12xbf16> to vector<256x12xbf16>
    %c0_44 = arith.constant 0 : index
    %c0_45 = arith.constant 0 : index
    %c0_46 = arith.constant 0 : index
    %59 = vector.load %arg2[%c0_44, %c0_45, %c0_46] : memref<3x12x128xbf16, #tpu.memory_space<vmem>>, vector<1x12x128xbf16>
    %60 = vector.shape_cast %59 : vector<1x12x128xbf16> to vector<12x128xbf16>
    %cst_47 = arith.constant dense<0.000000e+00> : vector<256x128xf32>
    %61 = tpu.matmul %58, %60, %cst_47 {dimension_numbers = #tpu.dot_dimension_numbers<[1], [0], [0], [1], [0, 0, 1, 1], [], []>} : vector<256x12xbf16>, vector<12x128xbf16>, vector<256x128xf32> -> vector<256x128xf32>
    %62 = arith.addf %57, %61 : vector<256x128xf32>
    %63 = vector.extract_strided_slice %56 {offsets = [16, 0], sizes = [256, 12], strides = [1, 1]} : vector<288x12xbf16> to vector<256x12xbf16>
    %c1_48 = arith.constant 1 : index
    %c0_49 = arith.constant 0 : index
    %c0_50 = arith.constant 0 : index
    %64 = vector.load %arg2[%c1_48, %c0_49, %c0_50] : memref<3x12x128xbf16, #tpu.memory_space<vmem>>, vector<1x12x128xbf16>
    %65 = vector.shape_cast %64 : vector<1x12x128xbf16> to vector<12x128xbf16>
    %cst_51 = arith.constant dense<0.000000e+00> : vector<256x128xf32>
    %66 = tpu.matmul %63, %65, %cst_51 {dimension_numbers = #tpu.dot_dimension_numbers<[1], [0], [0], [1], [0, 0, 1, 1], [], []>} : vector<256x12xbf16>, vector<12x128xbf16>, vector<256x128xf32> -> vector<256x128xf32>
    %67 = arith.addf %62, %66 : vector<256x128xf32>
    %68 = vector.extract_strided_slice %56 {offsets = [32, 0], sizes = [256, 12], strides = [1, 1]} : vector<288x12xbf16> to vector<256x12xbf16>
    %c2_52 = arith.constant 2 : index
    %c0_53 = arith.constant 0 : index
    %c0_54 = arith.constant 0 : index
    %69 = vector.load %arg2[%c2_52, %c0_53, %c0_54] : memref<3x12x128xbf16, #tpu.memory_space<vmem>>, vector<1x12x128xbf16>
    %70 = vector.shape_cast %69 : vector<1x12x128xbf16> to vector<12x128xbf16>
    %cst_55 = arith.constant dense<0.000000e+00> : vector<256x128xf32>
    %71 = tpu.matmul %68, %70, %cst_55 {dimension_numbers = #tpu.dot_dimension_numbers<[1], [0], [0], [1], [0, 0, 1, 1], [], []>} : vector<256x12xbf16>, vector<12x128xbf16>, vector<256x128xf32> -> vector<256x128xf32>
    %72 = arith.addf %67, %71 : vector<256x128xf32>
    %73 = arith.addf %72, %2 : vector<256x128xf32>
    %cst_56 = arith.constant 0.000000e+00 : f32
    %74 = vector.broadcast %cst_56 : f32 to vector<256x128xf32>
    %75 = arith.maximumf %73, %74 : vector<256x128xf32>
    %cst_57 = arith.constant dense<0.000000e+00> : vector<128xf32>
    %76 = vector.multi_reduction <add>, %75, %cst_57 [0] : vector<256x128xf32> to vector<128xf32>
    %77 = vector.shape_cast %76 : vector<128xf32> to vector<1x128xf32>
    %cst_58 = arith.constant 2.560000e+02 : f32
    %78 = vector.broadcast %cst_58 : f32 to vector<1x128xf32>
    %79 = arith.divf %77, %78 : vector<1x128xf32>
    %c2_59 = arith.constant 2 : index
    %c0_60 = arith.constant 0 : index
    %80 = vector.load %arg4[%c2_59, %c0_60] : memref<8x128xf32, #tpu.memory_space<vmem>>, vector<1x128xf32>
    tpu.vector_store %arg4[%c2_59, %c0_60], %79 {strides = array<i32>} : memref<8x128xf32, #tpu.memory_space<vmem>>, vector<1x128xf32>,
    %c3 = arith.constant 3 : index
    %c0_61 = arith.constant 0 : index
    %c0_62 = arith.constant 0 : index
    %81 = vector.load %arg1[%c3, %c0_61, %c0_62] : memref<8x288x12xbf16, #tpu.memory_space<vmem>>, vector<1x288x12xbf16>
    %82 = vector.shape_cast %81 : vector<1x288x12xbf16> to vector<288x12xbf16>
    %cst_63 = arith.constant 0.000000e+00 : f32
    %83 = vector.broadcast %cst_63 : f32 to vector<256x128xf32>
    %84 = vector.extract_strided_slice %82 {offsets = [0, 0], sizes = [256, 12], strides = [1, 1]} : vector<288x12xbf16> to vector<256x12xbf16>
    %c0_64 = arith.constant 0 : index
    %c0_65 = arith.constant 0 : index
    %c0_66 = arith.constant 0 : index
    %85 = vector.load %arg2[%c0_64, %c0_65, %c0_66] : memref<3x12x128xbf16, #tpu.memory_space<vmem>>, vector<1x12x128xbf16>
    %86 = vector.shape_cast %85 : vector<1x12x128xbf16> to vector<12x128xbf16>
    %cst_67 = arith.constant dense<0.000000e+00> : vector<256x128xf32>
    %87 = tpu.matmul %84, %86, %cst_67 {dimension_numbers = #tpu.dot_dimension_numbers<[1], [0], [0], [1], [0, 0, 1, 1], [], []>} : vector<256x12xbf16>, vector<12x128xbf16>, vector<256x128xf32> -> vector<256x128xf32>
    %88 = arith.addf %83, %87 : vector<256x128xf32>
    %89 = vector.extract_strided_slice %82 {offsets = [16, 0], sizes = [256, 12], strides = [1, 1]} : vector<288x12xbf16> to vector<256x12xbf16>
    %c1_68 = arith.constant 1 : index
    %c0_69 = arith.constant 0 : index
    %c0_70 = arith.constant 0 : index
    %90 = vector.load %arg2[%c1_68, %c0_69, %c0_70] : memref<3x12x128xbf16, #tpu.memory_space<vmem>>, vector<1x12x128xbf16>
    %91 = vector.shape_cast %90 : vector<1x12x128xbf16> to vector<12x128xbf16>
    %cst_71 = arith.constant dense<0.000000e+00> : vector<256x128xf32>
    %92 = tpu.matmul %89, %91, %cst_71 {dimension_numbers = #tpu.dot_dimension_numbers<[1], [0], [0], [1], [0, 0, 1, 1], [], []>} : vector<256x12xbf16>, vector<12x128xbf16>, vector<256x128xf32> -> vector<256x128xf32>
    %93 = arith.addf %88, %92 : vector<256x128xf32>
    %94 = vector.extract_strided_slice %82 {offsets = [32, 0], sizes = [256, 12], strides = [1, 1]} : vector<288x12xbf16> to vector<256x12xbf16>
    %c2_72 = arith.constant 2 : index
    %c0_73 = arith.constant 0 : index
    %c0_74 = arith.constant 0 : index
    %95 = vector.load %arg2[%c2_72, %c0_73, %c0_74] : memref<3x12x128xbf16, #tpu.memory_space<vmem>>, vector<1x12x128xbf16>
    %96 = vector.shape_cast %95 : vector<1x12x128xbf16> to vector<12x128xbf16>
    %cst_75 = arith.constant dense<0.000000e+00> : vector<256x128xf32>
    %97 = tpu.matmul %94, %96, %cst_75 {dimension_numbers = #tpu.dot_dimension_numbers<[1], [0], [0], [1], [0, 0, 1, 1], [], []>} : vector<256x12xbf16>, vector<12x128xbf16>, vector<256x128xf32> -> vector<256x128xf32>
    %98 = arith.addf %93, %97 : vector<256x128xf32>
    %99 = arith.addf %98, %2 : vector<256x128xf32>
    %cst_76 = arith.constant 0.000000e+00 : f32
    %100 = vector.broadcast %cst_76 : f32 to vector<256x128xf32>
    %101 = arith.maximumf %99, %100 : vector<256x128xf32>
    %cst_77 = arith.constant dense<0.000000e+00> : vector<128xf32>
    %102 = vector.multi_reduction <add>, %101, %cst_77 [0] : vector<256x128xf32> to vector<128xf32>
    %103 = vector.shape_cast %102 : vector<128xf32> to vector<1x128xf32>
    %cst_78 = arith.constant 2.560000e+02 : f32
    %104 = vector.broadcast %cst_78 : f32 to vector<1x128xf32>
    %105 = arith.divf %103, %104 : vector<1x128xf32>
    %c3_79 = arith.constant 3 : index
    %c0_80 = arith.constant 0 : index
    %106 = vector.load %arg4[%c3_79, %c0_80] : memref<8x128xf32, #tpu.memory_space<vmem>>, vector<1x128xf32>
    tpu.vector_store %arg4[%c3_79, %c0_80], %105 {strides = array<i32>} : memref<8x128xf32, #tpu.memory_space<vmem>>, vector<1x128xf32>,
    %c4 = arith.constant 4 : index
    %c0_81 = arith.constant 0 : index
    %c0_82 = arith.constant 0 : index
    %107 = vector.load %arg1[%c4, %c0_81, %c0_82] : memref<8x288x12xbf16, #tpu.memory_space<vmem>>, vector<1x288x12xbf16>
    %108 = vector.shape_cast %107 : vector<1x288x12xbf16> to vector<288x12xbf16>
    %cst_83 = arith.constant 0.000000e+00 : f32
    %109 = vector.broadcast %cst_83 : f32 to vector<256x128xf32>
    %110 = vector.extract_strided_slice %108 {offsets = [0, 0], sizes = [256, 12], strides = [1, 1]} : vector<288x12xbf16> to vector<256x12xbf16>
    %c0_84 = arith.constant 0 : index
    %c0_85 = arith.constant 0 : index
    %c0_86 = arith.constant 0 : index
    %111 = vector.load %arg2[%c0_84, %c0_85, %c0_86] : memref<3x12x128xbf16, #tpu.memory_space<vmem>>, vector<1x12x128xbf16>
    %112 = vector.shape_cast %111 : vector<1x12x128xbf16> to vector<12x128xbf16>
    %cst_87 = arith.constant dense<0.000000e+00> : vector<256x128xf32>
    %113 = tpu.matmul %110, %112, %cst_87 {dimension_numbers = #tpu.dot_dimension_numbers<[1], [0], [0], [1], [0, 0, 1, 1], [], []>} : vector<256x12xbf16>, vector<12x128xbf16>, vector<256x128xf32> -> vector<256x128xf32>
    %114 = arith.addf %109, %113 : vector<256x128xf32>
    %115 = vector.extract_strided_slice %108 {offsets = [16, 0], sizes = [256, 12], strides = [1, 1]} : vector<288x12xbf16> to vector<256x12xbf16>
    %c1_88 = arith.constant 1 : index
    %c0_89 = arith.constant 0 : index
    %c0_90 = arith.constant 0 : index
    %116 = vector.load %arg2[%c1_88, %c0_89, %c0_90] : memref<3x12x128xbf16, #tpu.memory_space<vmem>>, vector<1x12x128xbf16>
    %117 = vector.shape_cast %116 : vector<1x12x128xbf16> to vector<12x128xbf16>
    %cst_91 = arith.constant dense<0.000000e+00> : vector<256x128xf32>
    %118 = tpu.matmul %115, %117, %cst_91 {dimension_numbers = #tpu.dot_dimension_numbers<[1], [0], [0], [1], [0, 0, 1, 1], [], []>} : vector<256x12xbf16>, vector<12x128xbf16>, vector<256x128xf32> -> vector<256x128xf32>
    %119 = arith.addf %114, %118 : vector<256x128xf32>
    %120 = vector.extract_strided_slice %108 {offsets = [32, 0], sizes = [256, 12], strides = [1, 1]} : vector<288x12xbf16> to vector<256x12xbf16>
    %c2_92 = arith.constant 2 : index
    %c0_93 = arith.constant 0 : index
    %c0_94 = arith.constant 0 : index
    %121 = vector.load %arg2[%c2_92, %c0_93, %c0_94] : memref<3x12x128xbf16, #tpu.memory_space<vmem>>, vector<1x12x128xbf16>
    %122 = vector.shape_cast %121 : vector<1x12x128xbf16> to vector<12x128xbf16>
    %cst_95 = arith.constant dense<0.000000e+00> : vector<256x128xf32>
    %123 = tpu.matmul %120, %122, %cst_95 {dimension_numbers = #tpu.dot_dimension_numbers<[1], [0], [0], [1], [0, 0, 1, 1], [], []>} : vector<256x12xbf16>, vector<12x128xbf16>, vector<256x128xf32> -> vector<256x128xf32>
    %124 = arith.addf %119, %123 : vector<256x128xf32>
    %125 = arith.addf %124, %2 : vector<256x128xf32>
    %cst_96 = arith.constant 0.000000e+00 : f32
    %126 = vector.broadcast %cst_96 : f32 to vector<256x128xf32>
    %127 = arith.maximumf %125, %126 : vector<256x128xf32>
    %cst_97 = arith.constant dense<0.000000e+00> : vector<128xf32>
    %128 = vector.multi_reduction <add>, %127, %cst_97 [0] : vector<256x128xf32> to vector<128xf32>
    %129 = vector.shape_cast %128 : vector<128xf32> to vector<1x128xf32>
    %cst_98 = arith.constant 2.560000e+02 : f32
    %130 = vector.broadcast %cst_98 : f32 to vector<1x128xf32>
    %131 = arith.divf %129, %130 : vector<1x128xf32>
    %c4_99 = arith.constant 4 : index
    %c0_100 = arith.constant 0 : index
    %132 = vector.load %arg4[%c4_99, %c0_100] : memref<8x128xf32, #tpu.memory_space<vmem>>, vector<1x128xf32>
    tpu.vector_store %arg4[%c4_99, %c0_100], %131 {strides = array<i32>} : memref<8x128xf32, #tpu.memory_space<vmem>>, vector<1x128xf32>,
    %c5 = arith.constant 5 : index
    %c0_101 = arith.constant 0 : index
    %c0_102 = arith.constant 0 : index
    %133 = vector.load %arg1[%c5, %c0_101, %c0_102] : memref<8x288x12xbf16, #tpu.memory_space<vmem>>, vector<1x288x12xbf16>
    %134 = vector.shape_cast %133 : vector<1x288x12xbf16> to vector<288x12xbf16>
    %cst_103 = arith.constant 0.000000e+00 : f32
    %135 = vector.broadcast %cst_103 : f32 to vector<256x128xf32>
    %136 = vector.extract_strided_slice %134 {offsets = [0, 0], sizes = [256, 12], strides = [1, 1]} : vector<288x12xbf16> to vector<256x12xbf16>
    %c0_104 = arith.constant 0 : index
    %c0_105 = arith.constant 0 : index
    %c0_106 = arith.constant 0 : index
    %137 = vector.load %arg2[%c0_104, %c0_105, %c0_106] : memref<3x12x128xbf16, #tpu.memory_space<vmem>>, vector<1x12x128xbf16>
    %138 = vector.shape_cast %137 : vector<1x12x128xbf16> to vector<12x128xbf16>
    %cst_107 = arith.constant dense<0.000000e+00> : vector<256x128xf32>
    %139 = tpu.matmul %136, %138, %cst_107 {dimension_numbers = #tpu.dot_dimension_numbers<[1], [0], [0], [1], [0, 0, 1, 1], [], []>} : vector<256x12xbf16>, vector<12x128xbf16>, vector<256x128xf32> -> vector<256x128xf32>
    %140 = arith.addf %135, %139 : vector<256x128xf32>
    %141 = vector.extract_strided_slice %134 {offsets = [16, 0], sizes = [256, 12], strides = [1, 1]} : vector<288x12xbf16> to vector<256x12xbf16>
    %c1_108 = arith.constant 1 : index
    %c0_109 = arith.constant 0 : index
    %c0_110 = arith.constant 0 : index
    %142 = vector.load %arg2[%c1_108, %c0_109, %c0_110] : memref<3x12x128xbf16, #tpu.memory_space<vmem>>, vector<1x12x128xbf16>
    %143 = vector.shape_cast %142 : vector<1x12x128xbf16> to vector<12x128xbf16>
    %cst_111 = arith.constant dense<0.000000e+00> : vector<256x128xf32>
    %144 = tpu.matmul %141, %143, %cst_111 {dimension_numbers = #tpu.dot_dimension_numbers<[1], [0], [0], [1], [0, 0, 1, 1], [], []>} : vector<256x12xbf16>, vector<12x128xbf16>, vector<256x128xf32> -> vector<256x128xf32>
    %145 = arith.addf %140, %144 : vector<256x128xf32>
    %146 = vector.extract_strided_slice %134 {offsets = [32, 0], sizes = [256, 12], strides = [1, 1]} : vector<288x12xbf16> to vector<256x12xbf16>
    %c2_112 = arith.constant 2 : index
    %c0_113 = arith.constant 0 : index
    %c0_114 = arith.constant 0 : index
    %147 = vector.load %arg2[%c2_112, %c0_113, %c0_114] : memref<3x12x128xbf16, #tpu.memory_space<vmem>>, vector<1x12x128xbf16>
    %148 = vector.shape_cast %147 : vector<1x12x128xbf16> to vector<12x128xbf16>
    %cst_115 = arith.constant dense<0.000000e+00> : vector<256x128xf32>
    %149 = tpu.matmul %146, %148, %cst_115 {dimension_numbers = #tpu.dot_dimension_numbers<[1], [0], [0], [1], [0, 0, 1, 1], [], []>} : vector<256x12xbf16>, vector<12x128xbf16>, vector<256x128xf32> -> vector<256x128xf32>
    %150 = arith.addf %145, %149 : vector<256x128xf32>
    %151 = arith.addf %150, %2 : vector<256x128xf32>
    %cst_116 = arith.constant 0.000000e+00 : f32
    %152 = vector.broadcast %cst_116 : f32 to vector<256x128xf32>
    %153 = arith.maximumf %151, %152 : vector<256x128xf32>
    %cst_117 = arith.constant dense<0.000000e+00> : vector<128xf32>
    %154 = vector.multi_reduction <add>, %153, %cst_117 [0] : vector<256x128xf32> to vector<128xf32>
    %155 = vector.shape_cast %154 : vector<128xf32> to vector<1x128xf32>
    %cst_118 = arith.constant 2.560000e+02 : f32
    %156 = vector.broadcast %cst_118 : f32 to vector<1x128xf32>
    %157 = arith.divf %155, %156 : vector<1x128xf32>
    %c5_119 = arith.constant 5 : index
    %c0_120 = arith.constant 0 : index
    %158 = vector.load %arg4[%c5_119, %c0_120] : memref<8x128xf32, #tpu.memory_space<vmem>>, vector<1x128xf32>
    tpu.vector_store %arg4[%c5_119, %c0_120], %157 {strides = array<i32>} : memref<8x128xf32, #tpu.memory_space<vmem>>, vector<1x128xf32>,
    %c6 = arith.constant 6 : index
    %c0_121 = arith.constant 0 : index
    %c0_122 = arith.constant 0 : index
    %159 = vector.load %arg1[%c6, %c0_121, %c0_122] : memref<8x288x12xbf16, #tpu.memory_space<vmem>>, vector<1x288x12xbf16>
    %160 = vector.shape_cast %159 : vector<1x288x12xbf16> to vector<288x12xbf16>
    %cst_123 = arith.constant 0.000000e+00 : f32
    %161 = vector.broadcast %cst_123 : f32 to vector<256x128xf32>
    %162 = vector.extract_strided_slice %160 {offsets = [0, 0], sizes = [256, 12], strides = [1, 1]} : vector<288x12xbf16> to vector<256x12xbf16>
    %c0_124 = arith.constant 0 : index
    %c0_125 = arith.constant 0 : index
    %c0_126 = arith.constant 0 : index
    %163 = vector.load %arg2[%c0_124, %c0_125, %c0_126] : memref<3x12x128xbf16, #tpu.memory_space<vmem>>, vector<1x12x128xbf16>
    %164 = vector.shape_cast %163 : vector<1x12x128xbf16> to vector<12x128xbf16>
    %cst_127 = arith.constant dense<0.000000e+00> : vector<256x128xf32>
    %165 = tpu.matmul %162, %164, %cst_127 {dimension_numbers = #tpu.dot_dimension_numbers<[1], [0], [0], [1], [0, 0, 1, 1], [], []>} : vector<256x12xbf16>, vector<12x128xbf16>, vector<256x128xf32> -> vector<256x128xf32>
    %166 = arith.addf %161, %165 : vector<256x128xf32>
    %167 = vector.extract_strided_slice %160 {offsets = [16, 0], sizes = [256, 12], strides = [1, 1]} : vector<288x12xbf16> to vector<256x12xbf16>
    %c1_128 = arith.constant 1 : index
    %c0_129 = arith.constant 0 : index
    %c0_130 = arith.constant 0 : index
    %168 = vector.load %arg2[%c1_128, %c0_129, %c0_130] : memref<3x12x128xbf16, #tpu.memory_space<vmem>>, vector<1x12x128xbf16>
    %169 = vector.shape_cast %168 : vector<1x12x128xbf16> to vector<12x128xbf16>
    %cst_131 = arith.constant dense<0.000000e+00> : vector<256x128xf32>
    %170 = tpu.matmul %167, %169, %cst_131 {dimension_numbers = #tpu.dot_dimension_numbers<[1], [0], [0], [1], [0, 0, 1, 1], [], []>} : vector<256x12xbf16>, vector<12x128xbf16>, vector<256x128xf32> -> vector<256x128xf32>
    %171 = arith.addf %166, %170 : vector<256x128xf32>
    %172 = vector.extract_strided_slice %160 {offsets = [32, 0], sizes = [256, 12], strides = [1, 1]} : vector<288x12xbf16> to vector<256x12xbf16>
    %c2_132 = arith.constant 2 : index
    %c0_133 = arith.constant 0 : index
    %c0_134 = arith.constant 0 : index
    %173 = vector.load %arg2[%c2_132, %c0_133, %c0_134] : memref<3x12x128xbf16, #tpu.memory_space<vmem>>, vector<1x12x128xbf16>
    %174 = vector.shape_cast %173 : vector<1x12x128xbf16> to vector<12x128xbf16>
    %cst_135 = arith.constant dense<0.000000e+00> : vector<256x128xf32>
    %175 = tpu.matmul %172, %174, %cst_135 {dimension_numbers = #tpu.dot_dimension_numbers<[1], [0], [0], [1], [0, 0, 1, 1], [], []>} : vector<256x12xbf16>, vector<12x128xbf16>, vector<256x128xf32> -> vector<256x128xf32>
    %176 = arith.addf %171, %175 : vector<256x128xf32>
    %177 = arith.addf %176, %2 : vector<256x128xf32>
    %cst_136 = arith.constant 0.000000e+00 : f32
    %178 = vector.broadcast %cst_136 : f32 to vector<256x128xf32>
    %179 = arith.maximumf %177, %178 : vector<256x128xf32>
    %cst_137 = arith.constant dense<0.000000e+00> : vector<128xf32>
    %180 = vector.multi_reduction <add>, %179, %cst_137 [0] : vector<256x128xf32> to vector<128xf32>
    %181 = vector.shape_cast %180 : vector<128xf32> to vector<1x128xf32>
    %cst_138 = arith.constant 2.560000e+02 : f32
    %182 = vector.broadcast %cst_138 : f32 to vector<1x128xf32>
    %183 = arith.divf %181, %182 : vector<1x128xf32>
    %c6_139 = arith.constant 6 : index
    %c0_140 = arith.constant 0 : index
    %184 = vector.load %arg4[%c6_139, %c0_140] : memref<8x128xf32, #tpu.memory_space<vmem>>, vector<1x128xf32>
    tpu.vector_store %arg4[%c6_139, %c0_140], %183 {strides = array<i32>} : memref<8x128xf32, #tpu.memory_space<vmem>>, vector<1x128xf32>,
    %c7 = arith.constant 7 : index
    %c0_141 = arith.constant 0 : index
    %c0_142 = arith.constant 0 : index
    %185 = vector.load %arg1[%c7, %c0_141, %c0_142] : memref<8x288x12xbf16, #tpu.memory_space<vmem>>, vector<1x288x12xbf16>
    %186 = vector.shape_cast %185 : vector<1x288x12xbf16> to vector<288x12xbf16>
    %cst_143 = arith.constant 0.000000e+00 : f32
    %187 = vector.broadcast %cst_143 : f32 to vector<256x128xf32>
    %188 = vector.extract_strided_slice %186 {offsets = [0, 0], sizes = [256, 12], strides = [1, 1]} : vector<288x12xbf16> to vector<256x12xbf16>
    %c0_144 = arith.constant 0 : index
    %c0_145 = arith.constant 0 : index
    %c0_146 = arith.constant 0 : index
    %189 = vector.load %arg2[%c0_144, %c0_145, %c0_146] : memref<3x12x128xbf16, #tpu.memory_space<vmem>>, vector<1x12x128xbf16>
    %190 = vector.shape_cast %189 : vector<1x12x128xbf16> to vector<12x128xbf16>
    %cst_147 = arith.constant dense<0.000000e+00> : vector<256x128xf32>
    %191 = tpu.matmul %188, %190, %cst_147 {dimension_numbers = #tpu.dot_dimension_numbers<[1], [0], [0], [1], [0, 0, 1, 1], [], []>} : vector<256x12xbf16>, vector<12x128xbf16>, vector<256x128xf32> -> vector<256x128xf32>
    %192 = arith.addf %187, %191 : vector<256x128xf32>
    %193 = vector.extract_strided_slice %186 {offsets = [16, 0], sizes = [256, 12], strides = [1, 1]} : vector<288x12xbf16> to vector<256x12xbf16>
    %c1_148 = arith.constant 1 : index
    %c0_149 = arith.constant 0 : index
    %c0_150 = arith.constant 0 : index
    %194 = vector.load %arg2[%c1_148, %c0_149, %c0_150] : memref<3x12x128xbf16, #tpu.memory_space<vmem>>, vector<1x12x128xbf16>
    %195 = vector.shape_cast %194 : vector<1x12x128xbf16> to vector<12x128xbf16>
    %cst_151 = arith.constant dense<0.000000e+00> : vector<256x128xf32>
    %196 = tpu.matmul %193, %195, %cst_151 {dimension_numbers = #tpu.dot_dimension_numbers<[1], [0], [0], [1], [0, 0, 1, 1], [], []>} : vector<256x12xbf16>, vector<12x128xbf16>, vector<256x128xf32> -> vector<256x128xf32>
    %197 = arith.addf %192, %196 : vector<256x128xf32>
    %198 = vector.extract_strided_slice %186 {offsets = [32, 0], sizes = [256, 12], strides = [1, 1]} : vector<288x12xbf16> to vector<256x12xbf16>
    %c2_152 = arith.constant 2 : index
    %c0_153 = arith.constant 0 : index
    %c0_154 = arith.constant 0 : index
    %199 = vector.load %arg2[%c2_152, %c0_153, %c0_154] : memref<3x12x128xbf16, #tpu.memory_space<vmem>>, vector<1x12x128xbf16>
    %200 = vector.shape_cast %199 : vector<1x12x128xbf16> to vector<12x128xbf16>
    %cst_155 = arith.constant dense<0.000000e+00> : vector<256x128xf32>
    %201 = tpu.matmul %198, %200, %cst_155 {dimension_numbers = #tpu.dot_dimension_numbers<[1], [0], [0], [1], [0, 0, 1, 1], [], []>} : vector<256x12xbf16>, vector<12x128xbf16>, vector<256x128xf32> -> vector<256x128xf32>
    %202 = arith.addf %197, %201 : vector<256x128xf32>
    %203 = arith.addf %202, %2 : vector<256x128xf32>
    %cst_156 = arith.constant 0.000000e+00 : f32
    %204 = vector.broadcast %cst_156 : f32 to vector<256x128xf32>
    %205 = arith.maximumf %203, %204 : vector<256x128xf32>
    %cst_157 = arith.constant dense<0.000000e+00> : vector<128xf32>
    %206 = vector.multi_reduction <add>, %205, %cst_157 [0] : vector<256x128xf32> to vector<128xf32>
    %207 = vector.shape_cast %206 : vector<128xf32> to vector<1x128xf32>
    %cst_158 = arith.constant 2.560000e+02 : f32
    %208 = vector.broadcast %cst_158 : f32 to vector<1x128xf32>
    %209 = arith.divf %207, %208 : vector<1x128xf32>
    %c7_159 = arith.constant 7 : index
    %c0_160 = arith.constant 0 : index
    %210 = vector.load %arg4[%c7_159, %c0_160] : memref<8x128xf32, #tpu.memory_space<vmem>>, vector<1x128xf32>
    tpu.vector_store %arg4[%c7_159, %c0_160], %209 {strides = array<i32>} : memref<8x128xf32, #tpu.memory_space<vmem>>, vector<1x128xf32>,
    return
  }
  func.func @transform_0(%arg0: i32) -> (i32, i32, i32) {
    %c0_i32 = arith.constant 0 : i32
    %c0_i32_0 = arith.constant 0 : i32
    %c0_i32_1 = arith.constant 0 : i32
    return %arg0, %c0_i32, %c0_i32_0 : i32, i32, i32
  }
  func.func @transform_1(%arg0: i32) -> (i32, i32, i32) {
    %c0_i32 = arith.constant 0 : i32
    %c0_i32_0 = arith.constant 0 : i32
    %c0_i32_1 = arith.constant 0 : i32
    %c0_i32_2 = arith.constant 0 : i32
    return %c0_i32, %c0_i32_0, %c0_i32_1 : i32, i32, i32
  }
  func.func @transform_2(%arg0: i32) -> (i32, i32) {
    %c0_i32 = arith.constant 0 : i32
    %c0_i32_0 = arith.constant 0 : i32
    %c0_i32_1 = arith.constant 0 : i32
    return %c0_i32, %c0_i32_0 : i32, i32
  }
  func.func @transform_3(%arg0: i32) -> (i32, i32) {
    %c0_i32 = arith.constant 0 : i32
    %c0_i32_0 = arith.constant 0 : i32
    return %arg0, %c0_i32 : i32, i32
  }
}

module attributes {stable_mosaic.version = 11 : i64} {
  func.func @kernel(%arg0: memref<16x128xf32, #tpu.memory_space<vmem>>, %arg1: memref<8x1xf32, #tpu.memory_space<vmem>>, %arg2: memref<128x128xbf16, #tpu.memory_space<vmem>>, %arg3: memref<1x128xf32, #tpu.memory_space<vmem>>, %arg4: memref<1x128xf32, #tpu.memory_space<vmem>>, %arg5: memref<1x128xf32, #tpu.memory_space<vmem>>, %arg6: memref<1x128xf32, #tpu.memory_space<vmem>>, %arg7: memref<128x128xbf16, #tpu.memory_space<vmem>>, %arg8: memref<128x128xbf16, #tpu.memory_space<vmem>>, %arg9: memref<1x128xf32, #tpu.memory_space<vmem>>, %arg10: memref<1x128xf32, #tpu.memory_space<vmem>>, %arg11: memref<1x128xf32, #tpu.memory_space<vmem>>, %arg12: memref<128x128xbf16, #tpu.memory_space<vmem>>, %arg13: memref<1x128xf32, #tpu.memory_space<vmem>>, %arg14: memref<1x128xf32, #tpu.memory_space<vmem>>, %arg15: memref<1x128xf32, #tpu.memory_space<vmem>>, %arg16: memref<128x128xbf16, #tpu.memory_space<vmem>>, %arg17: memref<16x128xf32, #tpu.memory_space<vmem>>, %arg18: memref<8x128xf32, #tpu.memory_space<vmem>>) attributes {dimension_semantics = [], scalar_prefetch = 0 : i64, scratch_operands = 0 : i64, tpu.core_type = #tpu.core_type<tc>} {
    %c0 = arith.constant 0 : index
    %c0_0 = arith.constant 0 : index
    %0 = vector.load %arg0[%c0, %c0_0] : memref<16x128xf32, #tpu.memory_space<vmem>>, vector<16x128xf32>
    %1 = vector.extract_strided_slice %0 {offsets = [0, 0], sizes = [8, 128], strides = [1, 1]} : vector<16x128xf32> to vector<8x128xf32>
    %2 = arith.truncf %1 : vector<8x128xf32> to vector<8x128xbf16>
    %c0_1 = arith.constant 0 : index
    %c0_2 = arith.constant 0 : index
    %3 = vector.load %arg2[%c0_1, %c0_2] : memref<128x128xbf16, #tpu.memory_space<vmem>>, vector<128x128xbf16>
    %cst = arith.constant dense<0.000000e+00> : vector<8x128xf32>
    %4 = tpu.matmul %2, %3, %cst {dimension_numbers = #tpu.dot_dimension_numbers<[1], [0], [0], [1], [0, 0, 1, 1], [], []>} : vector<8x128xbf16>, vector<128x128xbf16>, vector<8x128xf32> -> vector<8x128xf32>
    %c0_3 = arith.constant 0 : index
    %c0_4 = arith.constant 0 : index
    %5 = vector.load %arg1[%c0_3, %c0_4] : memref<8x1xf32, #tpu.memory_space<vmem>>, vector<8x1xf32>
    %c0_5 = arith.constant 0 : index
    %c0_6 = arith.constant 0 : index
    %6 = vector.load %arg3[%c0_5, %c0_6] : memref<1x128xf32, #tpu.memory_space<vmem>>, vector<1x128xf32>
    %7 = vector.broadcast %5 : vector<8x1xf32> to vector<8x128xf32>
    %8 = vector.broadcast %6 : vector<1x128xf32> to vector<8x128xf32>
    %9 = arith.mulf %7, %8 : vector<8x128xf32>
    %10 = arith.addf %4, %9 : vector<8x128xf32>
    %c0_7 = arith.constant 0 : index
    %c0_8 = arith.constant 0 : index
    %11 = vector.load %arg4[%c0_7, %c0_8] : memref<1x128xf32, #tpu.memory_space<vmem>>, vector<1x128xf32>
    %12 = vector.broadcast %11 : vector<1x128xf32> to vector<8x128xf32>
    %13 = arith.addf %10, %12 : vector<8x128xf32>
    %c0_9 = arith.constant 0 : index
    %c0_10 = arith.constant 0 : index
    %14 = vector.load %arg5[%c0_9, %c0_10] : memref<1x128xf32, #tpu.memory_space<vmem>>, vector<1x128xf32>
    %c0_11 = arith.constant 0 : index
    %c0_12 = arith.constant 0 : index
    %15 = vector.load %arg6[%c0_11, %c0_12] : memref<1x128xf32, #tpu.memory_space<vmem>>, vector<1x128xf32>
    %cst_13 = arith.constant dense<0.000000e+00> : vector<128xf32>
    %16 = vector.multi_reduction <add>, %13, %cst_13 [0] : vector<8x128xf32> to vector<128xf32>
    %17 = vector.shape_cast %16 : vector<128xf32> to vector<1x128xf32>
    %cst_14 = arith.constant 8.000000e+00 : f32
    %18 = vector.broadcast %cst_14 : f32 to vector<1x128xf32>
    %19 = arith.divf %17, %18 : vector<1x128xf32>
    %20 = vector.broadcast %19 : vector<1x128xf32> to vector<8x128xf32>
    %21 = arith.subf %13, %20 : vector<8x128xf32>
    %22 = arith.mulf %21, %21 : vector<8x128xf32>
    %cst_15 = arith.constant dense<0.000000e+00> : vector<128xf32>
    %23 = vector.multi_reduction <add>, %22, %cst_15 [0] : vector<8x128xf32> to vector<128xf32>
    %24 = vector.shape_cast %23 : vector<128xf32> to vector<1x128xf32>
    %cst_16 = arith.constant 8.000000e+00 : f32
    %25 = vector.broadcast %cst_16 : f32 to vector<1x128xf32>
    %26 = arith.divf %24, %25 : vector<1x128xf32>
    %27 = vector.broadcast %19 : vector<1x128xf32> to vector<8x128xf32>
    %28 = arith.subf %13, %27 : vector<8x128xf32>
    %cst_17 = arith.constant 9.99999974E-6 : f32
    %29 = vector.broadcast %cst_17 : f32 to vector<1x128xf32>
    %30 = arith.addf %26, %29 : vector<1x128xf32>
    %31 = math.rsqrt %30 : vector<1x128xf32>
    %32 = vector.broadcast %31 : vector<1x128xf32> to vector<8x128xf32>
    %33 = arith.mulf %28, %32 : vector<8x128xf32>
    %34 = vector.broadcast %14 : vector<1x128xf32> to vector<8x128xf32>
    %35 = arith.mulf %33, %34 : vector<8x128xf32>
    %36 = vector.broadcast %15 : vector<1x128xf32> to vector<8x128xf32>
    %37 = arith.addf %35, %36 : vector<8x128xf32>
    %cst_18 = arith.constant 0.000000e+00 : f32
    %38 = vector.broadcast %cst_18 : f32 to vector<8x128xf32>
    %39 = arith.maximumf %37, %38 : vector<8x128xf32>
    %40 = arith.truncf %39 : vector<8x128xf32> to vector<8x128xbf16>
    %c0_19 = arith.constant 0 : index
    %c0_20 = arith.constant 0 : index
    %41 = vector.load %arg7[%c0_19, %c0_20] : memref<128x128xbf16, #tpu.memory_space<vmem>>, vector<128x128xbf16>
    %cst_21 = arith.constant dense<0.000000e+00> : vector<8x128xf32>
    %42 = tpu.matmul %40, %41, %cst_21 {dimension_numbers = #tpu.dot_dimension_numbers<[1], [0], [0], [1], [0, 0, 1, 1], [], []>} : vector<8x128xbf16>, vector<128x128xbf16>, vector<8x128xf32> -> vector<8x128xf32>
    %c0_22 = arith.constant 0 : index
    %c0_23 = arith.constant 0 : index
    %43 = vector.load %arg18[%c0_22, %c0_23] : memref<8x128xf32, #tpu.memory_space<vmem>>, vector<8x128xf32>
    tpu.vector_store %arg18[%c0_22, %c0_23], %42 {strides = array<i32>} : memref<8x128xf32, #tpu.memory_space<vmem>>, vector<8x128xf32>,
    %44 = arith.truncf %0 : vector<16x128xf32> to vector<16x128xbf16>
    %c0_24 = arith.constant 0 : index
    %c0_25 = arith.constant 0 : index
    %45 = vector.load %arg8[%c0_24, %c0_25] : memref<128x128xbf16, #tpu.memory_space<vmem>>, vector<128x128xbf16>
    %cst_26 = arith.constant dense<0.000000e+00> : vector<16x128xf32>
    %46 = tpu.matmul %44, %45, %cst_26 {dimension_numbers = #tpu.dot_dimension_numbers<[1], [0], [0], [1], [0, 0, 1, 1], [], []>} : vector<16x128xbf16>, vector<128x128xbf16>, vector<16x128xf32> -> vector<16x128xf32>
    %c0_27 = arith.constant 0 : index
    %c0_28 = arith.constant 0 : index
    %47 = vector.load %arg9[%c0_27, %c0_28] : memref<1x128xf32, #tpu.memory_space<vmem>>, vector<1x128xf32>
    %48 = vector.broadcast %47 : vector<1x128xf32> to vector<16x128xf32>
    %49 = arith.addf %46, %48 : vector<16x128xf32>
    %c0_29 = arith.constant 0 : index
    %c0_30 = arith.constant 0 : index
    %50 = vector.load %arg10[%c0_29, %c0_30] : memref<1x128xf32, #tpu.memory_space<vmem>>, vector<1x128xf32>
    %c0_31 = arith.constant 0 : index
    %c0_32 = arith.constant 0 : index
    %51 = vector.load %arg11[%c0_31, %c0_32] : memref<1x128xf32, #tpu.memory_space<vmem>>, vector<1x128xf32>
    %52 = vector.shape_cast %49 : vector<16x128xf32> to vector<2x8x128xf32>
    %cst_33 = arith.constant dense<0.000000e+00> : vector<2x128xf32>
    %53 = vector.multi_reduction <add>, %52, %cst_33 [1] : vector<2x8x128xf32> to vector<2x128xf32>
    %54 = vector.shape_cast %53 : vector<2x128xf32> to vector<2x1x128xf32>
    %cst_34 = arith.constant 8.000000e+00 : f32
    %55 = vector.broadcast %cst_34 : f32 to vector<2x1x128xf32>
    %56 = arith.divf %54, %55 : vector<2x1x128xf32>
    %57 = vector.broadcast %56 : vector<2x1x128xf32> to vector<2x8x128xf32>
    %58 = arith.subf %52, %57 : vector<2x8x128xf32>
    %59 = arith.mulf %58, %58 : vector<2x8x128xf32>
    %cst_35 = arith.constant dense<0.000000e+00> : vector<2x128xf32>
    %60 = vector.multi_reduction <add>, %59, %cst_35 [1] : vector<2x8x128xf32> to vector<2x128xf32>
    %61 = vector.shape_cast %60 : vector<2x128xf32> to vector<2x1x128xf32>
    %cst_36 = arith.constant 8.000000e+00 : f32
    %62 = vector.broadcast %cst_36 : f32 to vector<2x1x128xf32>
    %63 = arith.divf %61, %62 : vector<2x1x128xf32>
    %64 = vector.broadcast %56 : vector<2x1x128xf32> to vector<2x8x128xf32>
    %65 = arith.subf %52, %64 : vector<2x8x128xf32>
    %cst_37 = arith.constant 9.99999974E-6 : f32
    %66 = vector.broadcast %cst_37 : f32 to vector<2x1x128xf32>
    %67 = arith.addf %63, %66 : vector<2x1x128xf32>
    %68 = math.rsqrt %67 : vector<2x1x128xf32>
    %69 = vector.broadcast %68 : vector<2x1x128xf32> to vector<2x8x128xf32>
    %70 = arith.mulf %65, %69 : vector<2x8x128xf32>
    %71 = vector.shape_cast %50 : vector<1x128xf32> to vector<1x1x128xf32>
    %72 = vector.broadcast %71 : vector<1x1x128xf32> to vector<2x8x128xf32>
    %73 = arith.mulf %70, %72 : vector<2x8x128xf32>
    %74 = vector.shape_cast %51 : vector<1x128xf32> to vector<1x1x128xf32>
    %75 = vector.broadcast %74 : vector<1x1x128xf32> to vector<2x8x128xf32>
    %76 = arith.addf %73, %75 : vector<2x8x128xf32>
    %cst_38 = arith.constant 0.000000e+00 : f32
    %77 = vector.broadcast %cst_38 : f32 to vector<2x8x128xf32>
    %78 = arith.maximumf %76, %77 : vector<2x8x128xf32>
    %79 = vector.shape_cast %78 : vector<2x8x128xf32> to vector<16x128xf32>
    %80 = arith.truncf %79 : vector<16x128xf32> to vector<16x128xbf16>
    %c0_39 = arith.constant 0 : index
    %c0_40 = arith.constant 0 : index
    %81 = vector.load %arg12[%c0_39, %c0_40] : memref<128x128xbf16, #tpu.memory_space<vmem>>, vector<128x128xbf16>
    %cst_41 = arith.constant dense<0.000000e+00> : vector<16x128xf32>
    %82 = tpu.matmul %80, %81, %cst_41 {dimension_numbers = #tpu.dot_dimension_numbers<[1], [0], [0], [1], [0, 0, 1, 1], [], []>} : vector<16x128xbf16>, vector<128x128xbf16>, vector<16x128xf32> -> vector<16x128xf32>
    %c0_42 = arith.constant 0 : index
    %c0_43 = arith.constant 0 : index
    %83 = vector.load %arg13[%c0_42, %c0_43] : memref<1x128xf32, #tpu.memory_space<vmem>>, vector<1x128xf32>
    %84 = vector.broadcast %83 : vector<1x128xf32> to vector<16x128xf32>
    %85 = arith.addf %82, %84 : vector<16x128xf32>
    %c0_44 = arith.constant 0 : index
    %c0_45 = arith.constant 0 : index
    %86 = vector.load %arg14[%c0_44, %c0_45] : memref<1x128xf32, #tpu.memory_space<vmem>>, vector<1x128xf32>
    %c0_46 = arith.constant 0 : index
    %c0_47 = arith.constant 0 : index
    %87 = vector.load %arg15[%c0_46, %c0_47] : memref<1x128xf32, #tpu.memory_space<vmem>>, vector<1x128xf32>
    %88 = vector.shape_cast %85 : vector<16x128xf32> to vector<2x8x128xf32>
    %cst_48 = arith.constant dense<0.000000e+00> : vector<2x128xf32>
    %89 = vector.multi_reduction <add>, %88, %cst_48 [1] : vector<2x8x128xf32> to vector<2x128xf32>
    %90 = vector.shape_cast %89 : vector<2x128xf32> to vector<2x1x128xf32>
    %cst_49 = arith.constant 8.000000e+00 : f32
    %91 = vector.broadcast %cst_49 : f32 to vector<2x1x128xf32>
    %92 = arith.divf %90, %91 : vector<2x1x128xf32>
    %93 = vector.broadcast %92 : vector<2x1x128xf32> to vector<2x8x128xf32>
    %94 = arith.subf %88, %93 : vector<2x8x128xf32>
    %95 = arith.mulf %94, %94 : vector<2x8x128xf32>
    %cst_50 = arith.constant dense<0.000000e+00> : vector<2x128xf32>
    %96 = vector.multi_reduction <add>, %95, %cst_50 [1] : vector<2x8x128xf32> to vector<2x128xf32>
    %97 = vector.shape_cast %96 : vector<2x128xf32> to vector<2x1x128xf32>
    %cst_51 = arith.constant 8.000000e+00 : f32
    %98 = vector.broadcast %cst_51 : f32 to vector<2x1x128xf32>
    %99 = arith.divf %97, %98 : vector<2x1x128xf32>
    %100 = vector.broadcast %92 : vector<2x1x128xf32> to vector<2x8x128xf32>
    %101 = arith.subf %88, %100 : vector<2x8x128xf32>
    %cst_52 = arith.constant 9.99999974E-6 : f32
    %102 = vector.broadcast %cst_52 : f32 to vector<2x1x128xf32>
    %103 = arith.addf %99, %102 : vector<2x1x128xf32>
    %104 = math.rsqrt %103 : vector<2x1x128xf32>
    %105 = vector.broadcast %104 : vector<2x1x128xf32> to vector<2x8x128xf32>
    %106 = arith.mulf %101, %105 : vector<2x8x128xf32>
    %107 = vector.shape_cast %86 : vector<1x128xf32> to vector<1x1x128xf32>
    %108 = vector.broadcast %107 : vector<1x1x128xf32> to vector<2x8x128xf32>
    %109 = arith.mulf %106, %108 : vector<2x8x128xf32>
    %110 = vector.shape_cast %87 : vector<1x128xf32> to vector<1x1x128xf32>
    %111 = vector.broadcast %110 : vector<1x1x128xf32> to vector<2x8x128xf32>
    %112 = arith.addf %109, %111 : vector<2x8x128xf32>
    %cst_53 = arith.constant 0.000000e+00 : f32
    %113 = vector.broadcast %cst_53 : f32 to vector<2x8x128xf32>
    %114 = arith.maximumf %112, %113 : vector<2x8x128xf32>
    %115 = vector.shape_cast %114 : vector<2x8x128xf32> to vector<16x128xf32>
    %116 = arith.truncf %115 : vector<16x128xf32> to vector<16x128xbf16>
    %c0_54 = arith.constant 0 : index
    %c0_55 = arith.constant 0 : index
    %117 = vector.load %arg16[%c0_54, %c0_55] : memref<128x128xbf16, #tpu.memory_space<vmem>>, vector<128x128xbf16>
    %cst_56 = arith.constant dense<0.000000e+00> : vector<16x128xf32>
    %118 = tpu.matmul %116, %117, %cst_56 {dimension_numbers = #tpu.dot_dimension_numbers<[1], [0], [0], [1], [0, 0, 1, 1], [], []>} : vector<16x128xbf16>, vector<128x128xbf16>, vector<16x128xf32> -> vector<16x128xf32>
    %c0_57 = arith.constant 0 : index
    %c0_58 = arith.constant 0 : index
    %119 = vector.load %arg17[%c0_57, %c0_58] : memref<16x128xf32, #tpu.memory_space<vmem>>, vector<16x128xf32>
    tpu.vector_store %arg17[%c0_57, %c0_58], %118 {strides = array<i32>} : memref<16x128xf32, #tpu.memory_space<vmem>>, vector<16x128xf32>,
    return
  }
}

</mosaic_0001>

<bundles_post_ra>
// kernel: tc_vicreg_forward.2
= control target key start
LH: loop header
LB: loop body
LE: loop exit
PB: predicated region body
PF: predicated region fallthrough
CT: control target
= control target key end

     0   :  { %s6711_s12 = smov 0   ;;  %s8589_s0 = inlined_call_operand.vmem [shape: bf16[16,288,12], index: 0, kind: input, shape index: {}]   ;;  %s8590_s1 = inlined_call_operand.vmem [shape: bf16[3,12,128], index: 1, kind: input, shape index: {}]   ;;  %s8591_s2 = inlined_call_operand.vmem [shape: f32[1,128], index: 2, kind: input, shape index: {}]   ;;  %s8592_s3 = inlined_call_operand.vmem [shape: f32[16,128], index: 3, kind: output, shape index: {}]  }
   0x1 LB: > { %s6717_s13 = sadd.s32 4294967295, %s6688_s12   ;;  %p5150_p0 = scmp.ge.s32.totalorder %s6688_s12, 1  ;;  %s6688_s12 = sphi %s6711_s12, %s13_s12  }
   0x2   : > { %p139_p1 = scmp.lt.s32.totalorder %s6688_s12, 3 }
   0x4   : > { %p140_p2 = pnand %p5150_p0, %p139_p1 }
   0x6   : > { %143 = sbr.rel (%p140_p2) target bundleno = 1709 (0x6ad), region = 32 }
   0xb   : > { %v5222_v0 = vld [vmem:[%s8590_s1 + $0x8] sm:$0xf]  ;;  %v6515_v1 = vld [vmem:[%s8590_s1 + $0x8] sm:$0x30]  ;;  %vm354_vm0 = vcmask 1045504   ;;  %s5151_s18 = sshll.u32 %s6717_s13, 3 }
   0xc   : > { %v5223_v2 = vor.u32 %v6515_v1, %v5222_v0  ;;  %v5246_v3 = vld [vmem:[%s8590_s1] sm:$0xf]  ;;  %v6514_v4 = vld [vmem:[%s8590_s1] sm:$0x30]  ;;  %v5272_v5 = vld [vmem:[%s8590_s1 + $0x10] sm:$0xf] }
   0xd   : > { %v5247_v6 = vor.u32 %v6514_v4, %v5246_v3  ;;  %v6516_v7 = vld [vmem:[%s8590_s1 + $0x10] sm:$0x30]  ;;  %v5394_v8 = vld [vmem:[%s8590_s1 + $0x8] sm:$0xf]  ;;  %v6536_v9 = vld [vmem:[%s8590_s1 + $0x8] sm:$0x30] }
   0xe   : > { %v356_v10 = vsel %vm354_vm0, %v5223_v2, 0  ;;  %v5273_v11 = vor.u32 %v6516_v7, %v5272_v5  ;;  %v5395_v12 = vor.u32 %v6536_v9, %v5394_v8  ;;  %p164_p3 = scmp.lt.s32.totalorder %s5151_s18, 15  ;;  %v5566_v13 = vld [vmem:[%s8590_s1 + $0x8] sm:$0xf]  ;;  %v6557_v15 = vld [vmem:[%s8590_s1 + $0x8] sm:$0x30] }
   0xf   : > { %365 = vmatpush.bf16.msra.mxu0 %v356_v10  ;;  %v461_v14 = vsel %vm354_vm0, %v5247_v6, 0  ;;  %v5590_v16 = vld [vmem:[%s8590_s1] sm:$0xf]  ;;  %v5567_v19 = vor.u32 %v6557_v15, %v5566_v13  ;;  %v6556_v20 = vld [vmem:[%s8590_s1] sm:$0x30]  ;;  %vm305_vm1 = vcmask 97280  }
  0x10   : > { %470 = vmatpush.bf16.msra.mxu1 %v461_v14  ;;  %v569_v17 = vsel %vm354_vm0, %v5273_v11, 0  ;;  %v977_v18 = vsel %vm354_vm0, %v5395_v12, 0  ;;  %s8715_s18 = smov (!%p164_p3, %s5151_s18), 15  ;;  %v5591_v21 = vor.u32 %v6556_v20, %v5590_v16  ;;  %v5444_v22 = vld [vmem:[%s8590_s1 + $0x10] sm:$0xf]  ;;  %p170_p4 = scmp.lt.s32.totalorder %s6717_s13, 1 }
  0x11   : > { %578 = vmatpush.bf16.msra.mxu2 %v569_v17  ;;  %986 = vmatpush.bf16.msra.mxu3 %v977_v18  ;;  %v6537_v23 = vld [vmem:[%s8590_s1 + $0x10] sm:$0x30]  ;;  %v5418_v24 = vld [vmem:[%s8590_s1] sm:$0xf]  ;;  %s6664_s21 = smul.u32 144, %s8715_s18  ;;  %v1590_v25 = vsel %vm354_vm0, %v5567_v19, 0 }
  0x12   : > { %v5445_v26 = vor.u32 %v6537_v23, %v5444_v22  ;;  %v6535_v27 = vld [vmem:[%s8590_s1] sm:$0x30]  ;;  %v1695_v28 = vsel %vm354_vm0, %v5591_v21, 0  ;;  %v6871_v61 = vld [vmem:[%s8591_s2] ss:$0 sm:$0xff]  ;;  %s8717_s13 = smov (!%p170_p4, %s6717_s13), 1 }
  0x13   : > { %v5419_v29 = vor.u32 %v6535_v27, %v5418_v24  ;;  %s6779_s26 = scalar_lea.vmem %s8589_s0, %s6664_s21  ;;  %s5153_s20 = sshll.u32 %s8717_s13, 3 }
  0x14   : > { %v1189_v30 = vsel %vm354_vm0, %v5445_v26, 0  ;;  %v6497_v31 = vld [vmem:[%s6779_s26 + $0x8] sm:$0xff]  ;;  %v6496_v32 = vld [vmem:[%s6779_s26] sm:$0xff]  ;;  %v6498_v33 = vld [vmem:[%s6779_s26 + $0x10] sm:$0xff]  ;;  %s7180_s23 = scalar_lea.vmem %s8592_s3, %s5153_s20 }
  0x15   : > { %1599 = vmatpush.bf16.msrb.mxu2 %v1590_v25  ;;  %1704 = vmatpush.bf16.msrb.mxu3 %v1695_v28  ;;  %v1082_v34 = vsel %vm354_vm0, %v5419_v29, 0  ;;  %v6787_v35 = vld [vmem:[%s6779_s26 + $0x98] sm:$0xff]  ;;  %v6796_v37 = vld [vmem:[%s6779_s26 + $0xa0] sm:$0xff]  ;;  %v6805_v39 = vld [vmem:[%s6779_s26 + $0xa8] sm:$0xff] }
  0x16   : > { %1198 = vmatpush.bf16.msrb.mxu1 %v1189_v30  ;;  %1091 = vmatpush.bf16.msrb.mxu0 %v1082_v34  ;;  %v6499_v36 = vld [vmem:[%s6779_s26 + $0x18] sm:$0xff]  ;;  %v6500_v38 = vld [vmem:[%s6779_s26 + $0x20] sm:$0xff]  ;;  %v6501_v40 = vld [vmem:[%s6779_s26 + $0x28] sm:$0xff] }
  0x17   : > { %5224 = vmatmul.msk.bf16.vlgmr.msra.gmra.mxu0 %vm305_vm1, %v6497_v31  ;;  %5248 = vmatmul.msk.bf16.vlgmr.msra.gmra.mxu1 %vm305_vm1, %v6496_v32  ;;  %v6814_v41 = vld [vmem:[%s6779_s26 + $0xb0] sm:$0xff]  ;;  %v6823_v43 = vld [vmem:[%s6779_s26 + $0xb8] sm:$0xff]  ;;  %v6832_v45 = vld [vmem:[%s6779_s26 + $0xc0] sm:$0xff] }
  0x18   : > { %5274 = vmatmul.msk.bf16.vlgmr.msra.gmra.mxu2 %vm305_vm1, %v6498_v33  ;;  %5396 = vmatmul.msk.bf16.vlgmr.msra.gmra.mxu3 %vm305_vm1, %v6787_v35  ;;  %v6502_v42 = vld [vmem:[%s6779_s26 + $0x30] sm:$0xff]  ;;  %v6503_v44 = vld [vmem:[%s6779_s26 + $0x38] sm:$0xff]  ;;  %v6504_v46 = vld [vmem:[%s6779_s26 + $0x40] sm:$0xff] }
  0x19   : > { %v6841_v47 = vld [vmem:[%s6779_s26 + $0xc8] sm:$0xff]  ;;  %v6850_v49 = vld [vmem:[%s6779_s26 + $0xd0] sm:$0xff]  ;;  %v6859_v53 = vld [vmem:[%s6779_s26 + $0xd8] sm:$0xff] }
  0x1a   : > { %v6505_v48 = vld [vmem:[%s6779_s26 + $0x48] sm:$0xff]  ;;  %v6506_v52 = vld [vmem:[%s6779_s26 + $0x50] sm:$0xff]  ;;  %v6507_v4 = vld [vmem:[%s6779_s26 + $0x58] sm:$0xff] }
  0x1b   : > { %v6878_v5 = vld [vmem:[%s6779_s26 + $0xe0] sm:$0xff]  ;;  %v6893_v26 = vld [vmem:[%s6779_s26 + $0xe8] sm:$0xff] }
  0x1c   : > { %v6508_v25 = vld [vmem:[%s6779_s26 + $0x60] sm:$0xff] }
  0x27   : > { %5225 = vmatmul.msk.bf16.gmra.mxu0 %vm305_vm1, %v6498_v33  ;;  %5249 = vmatmul.msk.bf16.gmra.mxu1 %vm305_vm1, %v6497_v31 }
  0x28   : > { %5275 = vmatmul.msk.bf16.gmra.mxu2 %vm305_vm1, %v6499_v36  ;;  %5397 = vmatmul.msk.bf16.gmra.mxu3 %vm305_vm1, %v6796_v37 }
  0x37   : > { %5226 = vmatmul.msk.bf16.gmra.mxu0 %vm305_vm1, %v6499_v36  ;;  %5250 = vmatmul.msk.bf16.gmra.mxu1 %vm305_vm1, %v6498_v33 }
  0x38   : > { %5276 = vmatmul.msk.bf16.gmra.mxu2 %vm305_vm1, %v6500_v38  ;;  %5398 = vmatmul.msk.bf16.gmra.mxu3 %vm305_vm1, %v6805_v39 }
  0x47   : > { %5227 = vmatmul.msk.bf16.gmra.mxu0 %vm305_vm1, %v6500_v38  ;;  %5251 = vmatmul.msk.bf16.gmra.mxu1 %vm305_vm1, %v6499_v36 }
  0x48   : > { %5277 = vmatmul.msk.bf16.gmra.mxu2 %vm305_vm1, %v6501_v40  ;;  %5399 = vmatmul.msk.bf16.gmra.mxu3 %vm305_vm1, %v6814_v41 }
  0x57   : > { %5228 = vmatmul.msk.bf16.gmra.mxu0 %vm305_vm1, %v6501_v40  ;;  %5252 = vmatmul.msk.bf16.gmra.mxu1 %vm305_vm1, %v6500_v38 }
  0x58   : > { %5278 = vmatmul.msk.bf16.gmra.mxu2 %vm305_vm1, %v6502_v42  ;;  %5400 = vmatmul.msk.bf16.gmra.mxu3 %vm305_vm1, %v6823_v43 }
  0x67   : > { %5229 = vmatmul.msk.bf16.gmra.mxu0 %vm305_vm1, %v6502_v42  ;;  %5253 = vmatmul.msk.bf16.gmra.mxu1 %vm305_vm1, %v6501_v40 }
  0x68   : > { %5279 = vmatmul.msk.bf16.gmra.mxu2 %vm305_vm1, %v6503_v44  ;;  %5401 = vmatmul.msk.bf16.gmra.mxu3 %vm305_vm1, %v6832_v45 }
  0x77   : > { %5230 = vmatmul.msk.bf16.gmra.mxu0 %vm305_vm1, %v6503_v44  ;;  %5254 = vmatmul.msk.bf16.gmra.mxu1 %vm305_vm1, %v6502_v42 }
  0x78   : > { %5280 = vmatmul.msk.bf16.gmra.mxu2 %vm305_vm1, %v6504_v46  ;;  %5402 = vmatmul.msk.bf16.gmra.mxu3 %vm305_vm1, %v6841_v47 }
  0x87   : > { %5231 = vmatmul.msk.bf16.gmra.mxu0 %vm305_vm1, %v6504_v46  ;;  %5255 = vmatmul.msk.bf16.gmra.mxu1 %vm305_vm1, %v6503_v44 }
  0x88   : > { %5281 = vmatmul.msk.bf16.gmra.mxu2 %vm305_vm1, %v6505_v48  ;;  %5403 = vmatmul.msk.bf16.gmra.mxu3 %vm305_vm1, %v6850_v49 }
  0x94   : > { %v367_v50 = vpop.f32.mrf.mxu0  ;;  %v472_v51 = vpop.f32.mrf.mxu1 }
  0x95   : > { %v473_v54 = vadd.f32 %v472_v51, %v367_v50 }
  0x97   : > { %5232 = vmatmul.msk.bf16.gmra.mxu0 %vm305_vm1, %v6505_v48  ;;  %5256 = vmatmul.msk.bf16.gmra.mxu1 %vm305_vm1, %v6504_v46 }
  0x98   : > { %5282 = vmatmul.msk.bf16.gmra.mxu2 %vm305_vm1, %v6506_v52  ;;  %5404 = vmatmul.msk.bf16.gmra.mxu3 %vm305_vm1, %v6859_v53 }
  0x9b   : > { %v580_v55 = vpop.f32.mrf.mxu2  ;;  %v6866_v56 = vpop.f32.mrf.mxu3 }
  0x9c   : > { %v660_v57 = vadd.f32 %v580_v55, %v473_v54  ;;  %v369_v58 = vpop.f32.mrf.mxu0  ;;  %v474_v59 = vpop.f32.mrf.mxu1  ;;  %v6509_v54 = vld [vmem:[%s6779_s26 + $0x68] sm:$0xff]  ;;  %v6908_v55 = vld [vmem:[%s6779_s26 + $0xf0] sm:$0xff] }
  0x9d   : > { %v475_v60 = vadd.f32 %v474_v59, %v369_v58 }
  0x9e   : > { %v692_v0 = vadd.f32 %v6871_v61, %v660_v57 }
  0xa0   : > { %v724_v8 = vmax.f32 %v692_v0, 0.0 }
  0xa3   : > { %v582_v62 = vpop.f32.mrf.mxu2  ;;  %v6873_v63 = vpop.f32.mrf.mxu3 }
  0xa4   : > { %v661_v1 = vadd.f32 %v582_v62, %v475_v60  ;;  %v372_v2 = vpop.f32.mrf.mxu0  ;;  %v477_v3 = vpop.f32.mrf.mxu1 }
  0xa5   : > { %v478_v6 = vadd.f32 %v477_v3, %v372_v2 }
  0xa6   : > { %v693_v7 = vadd.f32 %v6871_v61, %v661_v1 }
  0xa7   : > { %5233 = vmatmul.msk.bf16.gmra.mxu0 %vm305_vm1, %v6506_v52  ;;  %5257 = vmatmul.msk.bf16.gmra.mxu1 %vm305_vm1, %v6505_v48 }
  0xa8   : > { %v725_v9 = vmax.f32 %v693_v7, 0.0  ;;  %5283 = vmatmul.msk.bf16.gmra.mxu2 %vm305_vm1, %v6507_v4  ;;  %5405 = vmatmul.msk.bf16.gmra.mxu3 %vm305_vm1, %v6878_v5 }
  0xaa   : > { %v756_v10 = vadd.f32 %v725_v9, %v724_v8 }
  0xab   : > { %v585_v11 = vpop.f32.mrf.mxu2  ;;  %v6886_v12 = vpop.f32.mrf.mxu3 }
  0xac   : > { %v662_v13 = vadd.f32 %v585_v11, %v478_v6  ;;  %v374_v14 = vpop.f32.mrf.mxu0  ;;  %v479_v15 = vpop.f32.mrf.mxu1 }
  0xad   : > { %v480_v16 = vadd.f32 %v479_v15, %v374_v14  ;;  %v6510_v15 = vld [vmem:[%s6779_s26 + $0x70] sm:$0xff] }
  0xae   : > { %v694_v17 = vadd.f32 %v6871_v61, %v662_v13 }
  0xb0   : > { %v726_v18 = vmax.f32 %v694_v17, 0.0 }
  0xb2   : > { %v757_v19 = vadd.f32 %v756_v10, %v726_v18 }
  0xb3   : > { %v587_v20 = vpop.f32.mrf.mxu2  ;;  %v6889_v21 = vpop.f32.mrf.mxu3 }
  0xb4   : > { %v663_v22 = vadd.f32 %v587_v20, %v480_v16  ;;  %v377_v23 = vpop.f32.mrf.mxu0  ;;  %v482_v24 = vpop.f32.mrf.mxu1  ;;  %v6923_v16 = vld [vmem:[%s6779_s26 + $0xf8] sm:$0xff] }
  0xb5   : > { %v483_v27 = vadd.f32 %v482_v24, %v377_v23 }
  0xb6   : > { %v695_v28 = vadd.f32 %v6871_v61, %v663_v22 }
  0xb7   : > { %5234 = vmatmul.msk.bf16.gmra.mxu0 %vm305_vm1, %v6507_v4  ;;  %5258 = vmatmul.msk.bf16.gmra.mxu1 %vm305_vm1, %v6506_v52 }
  0xb8   : > { %v727_v29 = vmax.f32 %v695_v28, 0.0  ;;  %5284 = vmatmul.msk.bf16.gmra.mxu2 %vm305_vm1, %v6508_v25  ;;  %5406 = vmatmul.msk.bf16.gmra.mxu3 %vm305_vm1, %v6893_v26 }
  0xba   : > { %v758_v30 = vadd.f32 %v757_v19, %v727_v29 }
  0xbb   : > { %v590_v31 = vpop.f32.mrf.mxu2  ;;  %v6901_v32 = vpop.f32.mrf.mxu3 }
  0xbc   : > { %v664_v33 = vadd.f32 %v590_v31, %v483_v27  ;;  %v379_v34 = vpop.f32.mrf.mxu0  ;;  %v484_v36 = vpop.f32.mrf.mxu1 }
  0xbd   : > { %v485_v38 = vadd.f32 %v484_v36, %v379_v34 }
  0xbe   : > { %v696_v40 = vadd.f32 %v6871_v61, %v664_v33 }
  0xc0   : > { %v728_v42 = vmax.f32 %v696_v40, 0.0 }
  0xc2   : > { %v759_v44 = vadd.f32 %v758_v30, %v728_v42  ;;  %v6937_v42 = vld [vmem:[%s6779_s26 + $0x78] sm:$0xff] }
  0xc3   : > { %v592_v46 = vpop.f32.mrf.mxu2  ;;  %v6904_v48 = vpop.f32.mrf.mxu3 }
  0xc4   : > { %v665_v50 = vadd.f32 %v592_v46, %v485_v38  ;;  %v382_v51 = vpop.f32.mrf.mxu0  ;;  %v487_v52 = vpop.f32.mrf.mxu1 }
  0xc5   : > { %v488_v57 = vadd.f32 %v487_v52, %v382_v51 }
  0xc6   : > { %v697_v58 = vadd.f32 %v6871_v61, %v665_v50 }
  0xc7   : > { %5235 = vmatmul.msk.bf16.gmra.mxu0 %vm305_vm1, %v6508_v25  ;;  %5259 = vmatmul.msk.bf16.gmra.mxu1 %vm305_vm1, %v6507_v4 }
  0xc8   : > { %v729_v59 = vmax.f32 %v697_v58, 0.0  ;;  %5285 = vmatmul.msk.bf16.gmra.mxu2 %vm305_vm1, %v6509_v54  ;;  %5407 = vmatmul.msk.bf16.gmra.mxu3 %vm305_vm1, %v6908_v55 }
  0xca   : > { %v760_v60 = vadd.f32 %v759_v44, %v729_v59  ;;  %v6940_v44 = vld [vmem:[%s6779_s26 + $0x100] sm:$0xff] }
  0xcb   : > { %v595_v62 = vpop.f32.mrf.mxu2  ;;  %v6916_v0 = vpop.f32.mrf.mxu3 }
  0xcc   : > { %v666_v1 = vadd.f32 %v595_v62, %v488_v57  ;;  %v384_v2 = vpop.f32.mrf.mxu0  ;;  %v489_v3 = vpop.f32.mrf.mxu1 }
  0xcd   : > { %v490_v6 = vadd.f32 %v489_v3, %v384_v2 }
  0xce   : > { %v698_v7 = vadd.f32 %v6871_v61, %v666_v1 }
  0xd0   : > { %v730_v8 = vmax.f32 %v698_v7, 0.0 }
  0xd2   : > { %v761_v4 = vadd.f32 %v760_v60, %v730_v8 }
  0xd3   : > { %v597_v9 = vpop.f32.mrf.mxu2  ;;  %v6919_v10 = vpop.f32.mrf.mxu3 }
  0xd4   : > { %v667_v11 = vadd.f32 %v597_v9, %v490_v6  ;;  %v387_v13 = vpop.f32.mrf.mxu0  ;;  %v492_v14 = vpop.f32.mrf.mxu1 }
  0xd5   : > { %v493_v17 = vadd.f32 %v492_v14, %v387_v13  ;;  %v6956_v13 = vld [vmem:[%s6779_s26 + $0x108] sm:$0xff] }
  0xd6   : > { %v699_v18 = vadd.f32 %v6871_v61, %v667_v11  ;;  %v6512_v11 = vld [vmem:[%s6779_s26 + $0x80] sm:$0xff] }
  0xd7   : > { %5236 = vmatmul.msk.bf16.gmra.mxu0 %vm305_vm1, %v6509_v54  ;;  %5260 = vmatmul.msk.bf16.gmra.mxu1 %vm305_vm1, %v6508_v25 }
  0xd8   : > { %v731_v19 = vmax.f32 %v699_v18, 0.0  ;;  %5286 = vmatmul.msk.bf16.gmra.mxu2 %vm305_vm1, %v6510_v15  ;;  %5408 = vmatmul.msk.bf16.gmra.mxu3 %vm305_vm1, %v6923_v16 }
  0xda   : > { %v762_v20 = vadd.f32 %v761_v4, %v731_v19 }
  0xdb   : > { %v600_v22 = vpop.f32.mrf.mxu2  ;;  %v6931_v23 = vpop.f32.mrf.mxu3 }
  0xdc   : > { %v668_v24 = vadd.f32 %v600_v22, %v493_v17  ;;  %v389_v27 = vpop.f32.mrf.mxu0  ;;  %v494_v28 = vpop.f32.mrf.mxu1  ;;  %v6577_v22 = vld [vmem:[%s8590_s1] sm:$0x30] }
  0xdd   : > { %v495_v29 = vadd.f32 %v494_v28, %v389_v27 }
  0xde   : > { %v700_v30 = vadd.f32 %v6871_v61, %v668_v24  ;;  %v5788_v24 = vld [vmem:[%s8590_s1 + $0x10] sm:$0xf] }
  0xe0   : > { %v732_v31 = vmax.f32 %v700_v30, 0.0 }
  0xe2   : > { %v763_v25 = vadd.f32 %v762_v20, %v732_v31  ;;  %v5762_v20 = vld [vmem:[%s8590_s1] sm:$0xf] }
  0xe3   : > { %v602_v33 = vpop.f32.mrf.mxu2  ;;  %v6934_v34 = vpop.f32.mrf.mxu3  ;;  %v5763_v28 = vor.u32 %v6577_v22, %v5762_v20 }
  0xe4   : > { %v669_v36 = vadd.f32 %v602_v33, %v495_v29  ;;  %v392_v38 = vpop.f32.mrf.mxu0  ;;  %v497_v40 = vpop.f32.mrf.mxu1  ;;  %v6579_v29 = vld [vmem:[%s8590_s1 + $0x10] sm:$0x30] }
  0xe5   : > { %v498_v46 = vadd.f32 %v497_v40, %v392_v38  ;;  %v5789_v33 = vor.u32 %v6579_v29, %v5788_v24  ;;  %v2308_v38 = vsel %vm354_vm0, %v5763_v28, 0 }
  0xe6   : > { %v701_v50 = vadd.f32 %v6871_v61, %v669_v36  ;;  %2317 = vmatpush.bf16.msra.mxu2 %v2308_v38  ;;  %v6517_v38 = vld [vmem:[%s6779_s26 + $0x90] sm:$0xff] }
  0xe7   : > { %5237 = vmatmul.msk.bf16.gmra.mxu0 %vm305_vm1, %v6510_v15  ;;  %5261 = vmatmul.msk.bf16.gmra.mxu1 %vm305_vm1, %v6509_v54 }
  0xe8   : > { %v733_v51 = vmax.f32 %v701_v50, 0.0  ;;  %5287 = vmatmul.msk.bf16.gmra.mxu2 %vm305_vm1, %v6937_v42  ;;  %5409 = vmatmul.msk.bf16.gmra.mxu3 %vm305_vm1, %v6940_v44 }
  0xea   : > { %v764_v52 = vadd.f32 %v763_v25, %v733_v51 }
  0xeb   : > { %v605_v57 = vpop.f32.mrf.mxu2  ;;  %v6949_v58 = vpop.f32.mrf.mxu3 }
  0xec   : > { %v670_v59 = vadd.f32 %v605_v57, %v498_v46  ;;  %v394_v60 = vpop.f32.mrf.mxu0  ;;  %v499_v62 = vpop.f32.mrf.mxu1  ;;  %v2415_v46 = vsel %vm354_vm0, %v5789_v33, 0  ;;  %v6578_v57 = vld [vmem:[%s8590_s1 + $0x8] sm:$0x30] }
  0xed   : > { %v500_v1 = vadd.f32 %v499_v62, %v394_v60  ;;  %2424 = vmatpush.bf16.msra.mxu3 %v2415_v46 }
  0xee   : > { %v702_v2 = vadd.f32 %v6871_v61, %v670_v59  ;;  %v5616_v59 = vld [vmem:[%s8590_s1 + $0x10] sm:$0xf] }
  0xf0   : > { %v734_v54 = vmax.f32 %v702_v2, 0.0  ;;  %v6558_v2 = vld [vmem:[%s8590_s1 + $0x10] sm:$0x30] }
  0xf2   : > { %v765_v3 = vadd.f32 %v764_v52, %v734_v54  ;;  %v5738_v52 = vld [vmem:[%s8590_s1 + $0x8] sm:$0xf] }
  0xf3   : > { %v607_v6 = vpop.f32.mrf.mxu2  ;;  %v6952_v7 = vpop.f32.mrf.mxu3 }
  0xf4   : > { %v671_v8 = vadd.f32 %v607_v6, %v500_v1  ;;  %v397_v4 = vpop.f32.mrf.mxu0  ;;  %v502_v9 = vpop.f32.mrf.mxu1  ;;  %v5739_v1 = vor.u32 %v6578_v57, %v5738_v52  ;;  %v6538_v52 = vld [vmem:[%s6779_s26 + $0x120] sm:$0xff] }
  0xf5   : > { %v503_v14 = vadd.f32 %v502_v9, %v397_v4  ;;  %v6998_v4 = vld [vmem:[%s6779_s26 + $0x110] sm:$0xff]  ;;  %v5617_v9 = vor.u32 %v6558_v2, %v5616_v59 }
  0xf6   : > { %v703_v17 = vadd.f32 %v6871_v61, %v671_v8  ;;  %v6513_v8 = vld [vmem:[%s6779_s26 + $0x88] sm:$0xff] }
  0xf7   : > { %5238 = vmatmul.msk.bf16.gmra.mxu0 %vm305_vm1, %v6937_v42  ;;  %5262 = vmatmul.msk.bf16.gmra.mxu1 %vm305_vm1, %v6510_v15 }
  0xf8   : > { %v735_v18 = vmax.f32 %v703_v17, 0.0  ;;  %5288 = vmatmul.msk.bf16.gmra.mxu2 %vm305_vm1, %v6512_v11  ;;  %5410 = vmatmul.msk.bf16.gmra.mxu3 %vm305_vm1, %v6956_v13  ;;  %v2203_v17 = vsel %vm354_vm0, %v5739_v1, 0 }
  0xf9   : > { %2212 = vmatpush.bf16.msra.mxu1 %v2203_v17 }
  0xfa   : > { %v766_v19 = vadd.f32 %v765_v3, %v735_v18 }
  0xfb   : > { %v610_v15 = vpop.f32.mrf.mxu2  ;;  %v6974_v27 = vpop.f32.mrf.mxu3 }
  0xfc   : > { %v672_v30 = vadd.f32 %v610_v15, %v503_v14  ;;  %v399_v31 = vpop.f32.mrf.mxu0  ;;  %v504_v25 = vpop.f32.mrf.mxu1 }
  0xfd   : > { %v505_v36 = vadd.f32 %v504_v25, %v399_v31 }
  0xfe   : > { %v704_v40 = vadd.f32 %v6871_v61, %v672_v30 }
 0x100   : > { %v736_v50 = vmax.f32 %v704_v40, 0.0 }
 0x102   : > { %v767_v51 = vadd.f32 %v766_v19, %v736_v50  ;;  %v1802_v19 = vsel %vm354_vm0, %v5617_v9, 0 }
 0x103   : > { %v612_v60 = vpop.f32.mrf.mxu2  ;;  %v6991_v62 = vpop.f32.mrf.mxu3  ;;  %1811 = vmatpush.bf16.msra.mxu0 %v1802_v19 }
 0x104   : > { %v673_v54 = vadd.f32 %v612_v60, %v505_v36  ;;  %v402_v3 = vpop.f32.mrf.mxu0  ;;  %v507_v6 = vpop.f32.mrf.mxu1 }
 0x105   : > { %v508_v14 = vadd.f32 %v507_v6, %v402_v3 }
 0x106   : > { %v705_v18 = vadd.f32 %v6871_v61, %v673_v54 }
 0x107   : > { %5239 = vmatmul.msk.bf16.gmra.mxu0 %vm305_vm1, %v6512_v11  ;;  %5263 = vmatmul.msk.bf16.gmra.mxu1 %vm305_vm1, %v6937_v42 }
 0x108   : > { %v737_v20 = vmax.f32 %v705_v18, 0.0  ;;  %5289 = vmatmul.msk.bf16.gmra.mxu2 %vm305_vm1, %v6513_v8  ;;  %5411 = vmatmul.msk.bf16.gmra.mxu3 %vm305_vm1, %v6998_v4 }
 0x10a   : > { %v768_v22 = vadd.f32 %v767_v51, %v737_v20  ;;  %v6539_v51 = vld [vmem:[%s6779_s26 + $0x128] sm:$0xff] }
 0x10b   : > { %v615_v24 = vpop.f32.mrf.mxu2  ;;  %v7009_v15 = vpop.f32.mrf.mxu3 }
 0x10c   : > { %v674_v28 = vadd.f32 %v615_v24, %v508_v14  ;;  %v404_v29 = vpop.f32.mrf.mxu0  ;;  %v509_v11 = vpop.f32.mrf.mxu1 }
 0x10d   : > { %v510_v30 = vadd.f32 %v509_v11, %v404_v29  ;;  %v7029_v29 = vld [vmem:[%s6779_s26 + $0x130] sm:$0xff] }
 0x10e   : > { %v706_v42 = vadd.f32 %v6871_v61, %v674_v28  ;;  %8604 = vst [vmem:[#allocation4_spill] sm:$0xff] %v7029_v29 }
 0x110   : > { %v738_v31 = vmax.f32 %v706_v42, 0.0 }
 0x112   : > { %v769_v25 = vadd.f32 %v768_v22, %v738_v31 }
 0x113   : > { %v617_v33 = vpop.f32.mrf.mxu2  ;;  %v7012_v36 = vpop.f32.mrf.mxu3 }
 0x114   : > { %v675_v40 = vadd.f32 %v617_v33, %v510_v30  ;;  %v407_v46 = vpop.f32.mrf.mxu0  ;;  %v512_v50 = vpop.f32.mrf.mxu1 }
 0x115   : > { %v513_v57 = vadd.f32 %v512_v50, %v407_v46 }
 0x116   : > { %v707_v59 = vadd.f32 %v6871_v61, %v675_v40 }
 0x117   : > { %5420 = vmatmul.msk.bf16.vlgmr.msrb.gmra.mxu0 %vm305_vm1, %v6517_v38  ;;  %5446 = vmatmul.msk.bf16.vlgmr.msrb.gmra.mxu1 %vm305_vm1, %v6796_v37 }
 0x118   : > { %v739_v60 = vmax.f32 %v707_v59, 0.0  ;;  %5568 = vmatmul.msk.bf16.vlgmr.msrb.gmra.mxu2 %vm305_vm1, %v6539_v51  ;;  %5592 = vmatmul.msk.bf16.vlgmr.msrb.gmra.mxu3 %vm305_vm1, %v6538_v52 }
 0x11a   : > { %v770_v1 = vadd.f32 %v769_v25, %v739_v60 }
 0x11b   : > { %v620_v2 = vpop.f32.mrf.mxu2  ;;  %v7023_v54 = vpop.f32.mrf.mxu3 }
 0x11c   : > { %8602 = vst [vmem:[#allocation2_spill] sm:$0xff] %v7023_v54  ;;  %v676_v3 = vadd.f32 %v620_v2, %v513_v57  ;;  %v409_v6 = vpop.f32.mrf.mxu0  ;;  %v514_v8 = vpop.f32.mrf.mxu1 }
 0x11d   : > { %v515_v9 = vadd.f32 %v514_v8, %v409_v6 }
 0x11e   : > { %v708_v14 = vadd.f32 %v6871_v61, %v676_v3 }
 0x120   : > { %v740_v17 = vmax.f32 %v708_v14, 0.0 }
 0x122   : > { %v771_v18 = vadd.f32 %v770_v1, %v740_v17 }
 0x123   : > { %v622_v19 = vpop.f32.mrf.mxu2  ;;  %v7026_v20 = vpop.f32.mrf.mxu3 }
 0x124   : > { %8603 = vst [vmem:[#allocation3_spill] sm:$0xff] %v7026_v20  ;;  %v677_v22 = vadd.f32 %v622_v19, %v515_v9  ;;  %v412_v24 = vpop.f32.mrf.mxu0  ;;  %v517_v28 = vpop.f32.mrf.mxu1 }
 0x125   : > { %v518_v11 = vadd.f32 %v517_v28, %v412_v24 }
 0x126   : > { %v709_v30 = vadd.f32 %v6871_v61, %v677_v22 }
 0x127   : > { %5421 = vmatmul.msk.bf16.gmra.mxu0 %vm305_vm1, %v6787_v35  ;;  %5447 = vmatmul.msk.bf16.gmra.mxu1 %vm305_vm1, %v6805_v39 }
 0x128   : > { %v741_v42 = vmax.f32 %v709_v30, 0.0  ;;  %5569 = vmatmul.msk.bf16.gmra.mxu2 %vm305_vm1, %v7029_v29  ;;  %5593 = vmatmul.msk.bf16.gmra.mxu3 %vm305_vm1, %v6539_v51  ;;  %v7045_v51 = vld [vmem:[%s6779_s26 + $0x138] sm:$0xff] }
 0x129   : > { %8607 = vst [vmem:[#allocation7_spill] sm:$0xff] %v7045_v51 }
 0x12a   : > { %v772_v31 = vadd.f32 %v771_v18, %v741_v42 }
 0x12b   : > { %v625_v25 = vpop.f32.mrf.mxu2  ;;  %v7039_v33 = vpop.f32.mrf.mxu3 }
 0x12c   : > { %8605 = vst [vmem:[#allocation5_spill] sm:$0xff] %v7039_v33  ;;  %v678_v38 = vadd.f32 %v625_v25, %v518_v11  ;;  %v414_v40 = vpop.f32.mrf.mxu0  ;;  %v519_v46 = vpop.f32.mrf.mxu1 }
 0x12d   : > { %v520_v50 = vadd.f32 %v519_v46, %v414_v40  ;;  %v7062_v46 = vld [vmem:[%s6779_s26 + $0x140] sm:$0xff] }
 0x12e   : > { %v710_v35 = vadd.f32 %v6871_v61, %v678_v38  ;;  %8610 = vst [vmem:[#allocation10_spill] sm:$0xff] %v7062_v46 }
 0x130   : > { %v742_v52 = vmax.f32 %v710_v35, 0.0 }
 0x132   : > { %v773_v57 = vadd.f32 %v772_v31, %v742_v52 }
 0x133   : > { %v627_v59 = vpop.f32.mrf.mxu2  ;;  %v7042_v60 = vpop.f32.mrf.mxu3 }
 0x134   : > { %8606 = vst [vmem:[#allocation6_spill] sm:$0xff] %v7042_v60  ;;  %v679_v1 = vadd.f32 %v627_v59, %v520_v50  ;;  %v417_v2 = vpop.f32.mrf.mxu0  ;;  %v522_v3 = vpop.f32.mrf.mxu1 }
 0x135   : > { %v523_v6 = vadd.f32 %v522_v3, %v417_v2 }
 0x136   : > { %v711_v8 = vadd.f32 %v6871_v61, %v679_v1 }
 0x137   : > { %5422 = vmatmul.msk.bf16.gmra.mxu0 %vm305_vm1, %v6796_v37  ;;  %5448 = vmatmul.msk.bf16.gmra.mxu1 %vm305_vm1, %v6814_v41 }
 0x138   : > { %v743_v9 = vmax.f32 %v711_v8, 0.0  ;;  %5570 = vmatmul.msk.bf16.gmra.mxu2 %vm305_vm1, %v7045_v51  ;;  %5594 = vmatmul.msk.bf16.gmra.mxu3 %vm305_vm1, %v7029_v29 }
 0x13a   : > { %v774_v14 = vadd.f32 %v773_v57, %v743_v9  ;;  %v7080_v9 = vld [vmem:[%s6779_s26 + $0x148] sm:$0xff] }
 0x13b   : > { %v630_v17 = vpop.f32.mrf.mxu2  ;;  %v7056_v18 = vpop.f32.mrf.mxu3  ;;  %8613 = vst [vmem:[#allocation13_spill] sm:$0xff] %v7080_v9 }
 0x13c   : > { %8608 = vst [vmem:[#allocation8_spill] sm:$0xff] %v7056_v18  ;;  %v680_v19 = vadd.f32 %v630_v17, %v523_v6  ;;  %v419_v22 = vpop.f32.mrf.mxu0  ;;  %v524_v24 = vpop.f32.mrf.mxu1 }
 0x13d   : > { %v525_v30 = vadd.f32 %v524_v24, %v419_v22 }
 0x13e   : > { %v712_v37 = vadd.f32 %v6871_v61, %v680_v19 }
 0x140   : > { %v744_v28 = vmax.f32 %v712_v37, 0.0 }
 0x142   : > { %v775_v11 = vadd.f32 %v774_v14, %v744_v28 }
 0x143   : > { %v632_v42 = vpop.f32.mrf.mxu2  ;;  %v7059_v31 = vpop.f32.mrf.mxu3 }
 0x144   : > { %8609 = vst [vmem:[#allocation9_spill] sm:$0xff] %v7059_v31  ;;  %v681_v25 = vadd.f32 %v632_v42, %v525_v30  ;;  %v422_v38 = vpop.f32.mrf.mxu0  ;;  %v527_v40 = vpop.f32.mrf.mxu1 }
 0x146   : > { %v713_v50 = vadd.f32 %v6871_v61, %v681_v25 }
 0x147   : > { %5423 = vmatmul.msk.bf16.gmra.mxu0 %vm305_vm1, %v6805_v39  ;;  %5449 = vmatmul.msk.bf16.gmra.mxu1 %vm305_vm1, %v6823_v43 }
 0x148   : > { %v745_v35 = vmax.f32 %v713_v50, 0.0  ;;  %5571 = vmatmul.msk.bf16.gmra.mxu2 %vm305_vm1, %v7062_v46  ;;  %5595 = vmatmul.msk.bf16.gmra.mxu3 %vm305_vm1, %v7045_v51 }
 0x14a   : > { %v7073_v52 = vadd.f32 %v775_v11, %v745_v35  ;;  %v7095_v11 = vld [vmem:[%s6779_s26 + $0x150] sm:$0xff] }
 0x14b   : > { %v635_v57 = vpop.f32.mrf.mxu2  ;;  %v7075_v59 = vpop.f32.mrf.mxu3 }
 0x14c   : > { %8611 = vst [vmem:[#allocation11_spill] sm:$0xff] %v7075_v59  ;;  %v424_v1 = vpop.f32.mrf.mxu0  ;;  %v529_v2 = vpop.f32.mrf.mxu1  ;;  %v528_v59 = vadd.f32 %v527_v40, %v422_v38 }
 0x14d   : > { %v530_v31 = vadd.f32 %v529_v2, %v424_v1 }
 0x153   : > { %v637_v3 = vpop.f32.mrf.mxu2  ;;  %v7077_v6 = vpop.f32.mrf.mxu3 }
 0x154   : > { %8612 = vst [vmem:[#allocation12_spill] sm:$0xff] %v7077_v6  ;;  %v427_v39 = vpop.f32.mrf.mxu0  ;;  %v532_v8 = vpop.f32.mrf.mxu1  ;;  %v683_v40 = vadd.f32 %v637_v3, %v530_v31  ;;  %v7128_v3 = vld [vmem:[%s6779_s26 + $0x160] sm:$0xff] }
 0x156   : > { %v715_v20 = vadd.f32 %v6871_v61, %v683_v40 }
 0x157   : > { %5424 = vmatmul.msk.bf16.gmra.mxu0 %vm305_vm1, %v6814_v41  ;;  %5450 = vmatmul.msk.bf16.gmra.mxu1 %vm305_vm1, %v6832_v45 }
 0x158   : > { %5572 = vmatmul.msk.bf16.gmra.mxu2 %vm305_vm1, %v7080_v9  ;;  %5596 = vmatmul.msk.bf16.gmra.mxu3 %vm305_vm1, %v7062_v46 }
 0x15b   : > { %v640_v14 = vpop.f32.mrf.mxu2  ;;  %v7090_v17 = vpop.f32.mrf.mxu3 }
 0x15c   : > { %8614 = vst [vmem:[#allocation14_spill] sm:$0xff] %v7090_v17  ;;  %v429_v19 = vpop.f32.mrf.mxu0  ;;  %v534_v22 = vpop.f32.mrf.mxu1 }
 0x15d   : > { %v535_v33 = vadd.f32 %v534_v22, %v429_v19 }
 0x163   : > { %v642_v24 = vpop.f32.mrf.mxu2  ;;  %v7092_v37 = vpop.f32.mrf.mxu3 }
 0x164   : > { %8615 = vst [vmem:[#allocation15_spill] sm:$0xff] %v7092_v37  ;;  %v432_v28 = vpop.f32.mrf.mxu0  ;;  %v537_v41 = vpop.f32.mrf.mxu1  ;;  %v685_v29 = vadd.f32 %v642_v24, %v535_v33 }
 0x165   : > { %v538_v51 = vadd.f32 %v537_v41, %v432_v28 }
 0x167   : > { %5425 = vmatmul.msk.bf16.gmra.mxu0 %vm305_vm1, %v6823_v43  ;;  %5451 = vmatmul.msk.bf16.gmra.mxu1 %vm305_vm1, %v6841_v47  ;;  %v7110_v43 = vld [vmem:[%s6779_s26 + $0x158] sm:$0xff] }
 0x168   : > { %5573 = vmatmul.msk.bf16.gmra.mxu2 %vm305_vm1, %v7095_v11  ;;  %5597 = vmatmul.msk.bf16.gmra.mxu3 %vm305_vm1, %v7080_v9 }
 0x16b   : > { %v645_v30 = vpop.f32.mrf.mxu2  ;;  %v7105_v42 = vpop.f32.mrf.mxu3 }
 0x16c   : > { %8616 = vst [vmem:[#allocation16_spill] sm:$0xff] %v7105_v42  ;;  %v434_v25 = vpop.f32.mrf.mxu0  ;;  %v539_v50 = vpop.f32.mrf.mxu1  ;;  %v682_v42 = vadd.f32 %v635_v57, %v528_v59  ;;  %v686_v59 = vadd.f32 %v645_v30, %v538_v51  ;;  %v6690_v30 = vmov 256.0  }
 0x16d   : > { %6675 = vrcp.f32 %v6690_v30 }
 0x16e   : > { %v718_v24 = vadd.f32 %v6871_v61, %v686_v59 }
 0x170   : > { %v750_v28 = vmax.f32 %v718_v24, 0.0  ;;  %v7150_v24 = vld [vmem:[%s6779_s26 + $0x168] sm:$0xff] }
 0x173   : > { %v647_v35 = vpop.f32.mrf.mxu2  ;;  %v7107_v37 = vpop.f32.mrf.mxu3 }
 0x174   : > { %8617 = vst [vmem:[#allocation17_spill] sm:$0xff] %v7107_v37  ;;  %v437_v17 = vpop.f32.mrf.mxu0  ;;  %v542_v6 = vpop.f32.mrf.mxu1  ;;  %v533_v37 = vadd.f32 %v532_v8, %v427_v39  ;;  %v540_v39 = vadd.f32 %v539_v50, %v434_v25 }
 0x175   : > { %v543_v8 = vadd.f32 %v542_v6, %v437_v17 }
 0x176   : > { %v684_v60 = vadd.f32 %v640_v14, %v533_v37  ;;  %v717_v14 = vadd.f32 %v6871_v61, %v685_v29  ;;  %v687_v19 = vadd.f32 %v647_v35, %v540_v39 }
 0x177   : > { %5426 = vmatmul.msk.bf16.gmra.mxu0 %vm305_vm1, %v6832_v45  ;;  %5452 = vmatmul.msk.bf16.gmra.mxu1 %vm305_vm1, %v6850_v49  ;;  %v714_v45 = vadd.f32 %v6871_v61, %v682_v42  ;;  %v747_v42 = vmax.f32 %v715_v20, 0.0 }
 0x178   : > { %5574 = vmatmul.msk.bf16.gmra.mxu2 %vm305_vm1, %v7110_v43  ;;  %5598 = vmatmul.msk.bf16.gmra.mxu3 %vm305_vm1, %v7095_v11  ;;  %v716_v57 = vadd.f32 %v6871_v61, %v684_v60  ;;  %v719_v29 = vadd.f32 %v6871_v61, %v687_v19 }
 0x179   : > { %v746_v54 = vmax.f32 %v714_v45, 0.0 }
 0x17a   : > { %v748_v33 = vmax.f32 %v716_v57, 0.0  ;;  %v751_v50 = vmax.f32 %v719_v29, 0.0  ;;  %v6676_v57 = vpop.eup %6675 }
 0x17b   : > { %v650_v9 = vpop.f32.mrf.mxu2  ;;  %v7120_v46 = vpop.f32.mrf.mxu3  ;;  %v777_v22 = vadd.f32 %v7073_v52, %v746_v54  ;;  %v749_v54 = vmax.f32 %v717_v14, 0.0  ;;  %vm798_vm2 = vweird.f32 %v6676_v57 }
 0x17c   : > { %8618 = vst [vmem:[#allocation18_spill] sm:$0xff] %v7120_v46  ;;  %v439_v18 = vpop.f32.mrf.mxu0  ;;  %v544_v38 = vpop.f32.mrf.mxu1  ;;  %v688_v60 = vadd.f32 %v650_v9, %v543_v8 }
 0x17d   : > { %v545_v51 = vadd.f32 %v544_v38, %v439_v18  ;;  %v778_v20 = vadd.f32 %v777_v22, %v747_v42 }
 0x17e   : > { %v720_v9 = vadd.f32 %v6871_v61, %v688_v60  ;;  %v794_v60 = vmul.f32 256.0, %v6676_v57 }
 0x17f   : > { %v779_v17 = vadd.f32 %v778_v20, %v748_v33 }
 0x180   : > { %v752_v40 = vmax.f32 %v720_v9, 0.0 }
 0x181   : > { %v780_v25 = vadd.f32 %v779_v17, %v749_v54 }
 0x183   : > { %v652_v1 = vpop.f32.mrf.mxu2  ;;  %v7125_v2 = vpop.f32.mrf.mxu3  ;;  %v781_v38 = vadd.f32 %v780_v25, %v750_v28 }
 0x184   : > { %v442_v46 = vpop.f32.mrf.mxu0  ;;  %v547_v31 = vpop.f32.mrf.mxu1  ;;  %v689_v52 = vadd.f32 %v652_v1, %v545_v51 }
 0x185   : > { %v548_v6 = vadd.f32 %v547_v31, %v442_v46  ;;  %v782_v59 = vadd.f32 %v781_v38, %v751_v50 }
 0x186   : > { %v721_v35 = vadd.f32 %v6871_v61, %v689_v52 }
 0x187   : > { %5427 = vmatmul.msk.bf16.gmra.mxu0 %vm305_vm1, %v6841_v47  ;;  %5453 = vmatmul.msk.bf16.gmra.mxu1 %vm305_vm1, %v6859_v53  ;;  %v783_v42 = vadd.f32 %v782_v59, %v752_v40 }
 0x188   : > { %5575 = vmatmul.msk.bf16.gmra.mxu2 %vm305_vm1, %v7128_v3  ;;  %5599 = vmatmul.msk.bf16.gmra.mxu3 %vm305_vm1, %v7110_v43  ;;  %v753_v1 = vmax.f32 %v721_v35, 0.0 }
 0x18b   : > { %v655_v37 = vpop.f32.mrf.mxu2  ;;  %v7142_v47 = vpop.f32.mrf.mxu3 }
 0x18c   : > { %v690_v18 = vadd.f32 %v655_v37, %v548_v6  ;;  %v444_v46 = vpop.f32.mrf.mxu0  ;;  %v549_v41 = vpop.f32.mrf.mxu1  ;;  %v784_v6 = vadd.f32 %v783_v42, %v753_v1 }
 0x18d   : > { %v550_v39 = vadd.f32 %v549_v41, %v444_v46 }
 0x18e   : > { %v722_v45 = vadd.f32 %v6871_v61, %v690_v18 }
 0x190   : > { %v754_v14 = vmax.f32 %v722_v45, 0.0 }
 0x192   : > { %v785_v29 = vadd.f32 %v784_v6, %v754_v14 }
 0x193   : > { %v657_v8 = vpop.f32.mrf.mxu2  ;;  %v7147_v31 = vpop.f32.mrf.mxu3 }
 0x194   : > { %v691_v19 = vadd.f32 %v657_v8, %v550_v39  ;;  %v1093_v22 = vpop.f32.mrf.mxu0  ;;  %v1200_v33 = vpop.f32.mrf.mxu1 }
 0x195   : > { %v1094_v51 = vadd.f32 %v1093_v22, %v6866_v56  ;;  %v795_v56 = vsub.f32 1.0, %v794_v60 }
 0x196   : > { %v723_v20 = vadd.f32 %v6871_v61, %v691_v19 }
 0x197   : > { %v1280_v54 = vadd.f32 %v1200_v33, %v1094_v51  ;;  %5428 = vmatmul.msk.bf16.gmra.mxu0 %vm305_vm1, %v6850_v49  ;;  %5454 = vmatmul.msk.bf16.gmra.mxu1 %vm305_vm1, %v6878_v5  ;;  %v796_v41 = vmul.f32 %v6676_v57, %v795_v56  ;;  %v7172_v33 = vld [vmem:[%s6779_s26 + $0x170] sm:$0xff] }
 0x198   : > { %v755_v52 = vmax.f32 %v723_v20, 0.0  ;;  %5576 = vmatmul.msk.bf16.gmra.mxu2 %vm305_vm1, %v7150_v24  ;;  %5600 = vmatmul.msk.bf16.gmra.mxu3 %vm305_vm1, %v7128_v3 }
 0x199   : > { %v1312_v50 = vadd.f32 %v6871_v61, %v1280_v54  ;;  %v797_v40 = vadd.f32 %v6676_v57, %v796_v41 }
 0x19a   : > { %v786_v17 = vadd.f32 %v785_v29, %v755_v52 }
 0x19b   : > { %v1601_v37 = vpop.f32.mrf.mxu2  ;;  %v1706_v28 = vpop.f32.mrf.mxu3  ;;  %v1344_v1 = vmax.f32 %v1312_v50, 0.0  ;;  %v7174_v60 = vsel %vm798_vm2, %v6676_v57, %v797_v40  ;;  %v7200_v40 = vld [vmem:[%s6779_s26 + $0x178] sm:$0xff] }
 0x19c   : > { %v787_v9 = vrot.slane %v786_v17, 4  ;;  %v7163_v18 = vadd.f32 %v1706_v28, %v1601_v37  ;;  %v1095_v49 = vpop.f32.mrf.mxu0  ;;  %v1202_v46 = vpop.f32.mrf.mxu1 }
 0x19d   : > { %v1096_v30 = vadd.f32 %v1095_v49, %v6873_v63 }
 0x19e   : > { %v788_v25 = vadd.f32 %v787_v9, %v786_v17 }
 0x19f   : > { %v1281_v35 = vadd.f32 %v1202_v46, %v1096_v30 }
 0x1a0   : > { %v789_v38 = vrot.slane %v788_v25, 2 }
 0x1a1   : > { %v1313_v45 = vadd.f32 %v6871_v61, %v1281_v35 }
 0x1a2   : > { %v790_v59 = vadd.f32 %v789_v38, %v788_v25 }
 0x1a3   : > { %v1345_v39 = vmax.f32 %v1313_v45, 0.0  ;;  %v1603_v8 = vpop.f32.mrf.mxu2  ;;  %v1708_v42 = vpop.f32.mrf.mxu3 }
 0x1a4   : > { %v791_v14 = vrot.slane %v790_v59, 1  ;;  %v7169_v19 = vadd.f32 %v1708_v42, %v1603_v8  ;;  %v1098_v63 = vpop.f32.mrf.mxu0  ;;  %v1205_v22 = vpop.f32.mrf.mxu1 }
 0x1a5   : > { %v1376_v51 = vadd.f32 %v1345_v39, %v1344_v1  ;;  %v1099_v6 = vadd.f32 %v1098_v63, %v6886_v12 }
 0x1a6   : > { %v792_v20 = vadd.f32 %v791_v14, %v790_v59 }
 0x1a7   : > { %v1282_v54 = vadd.f32 %v1205_v22, %v1099_v6  ;;  %5429 = vmatmul.msk.bf16.gmra.mxu0 %vm305_vm1, %v6859_v53  ;;  %5455 = vmatmul.msk.bf16.gmra.mxu1 %vm305_vm1, %v6893_v26 }
 0x1a8   : > { %v800_v57 = vmul.f32 %v7174_v60, %v792_v20  ;;  %5577 = vmatmul.msk.bf16.gmra.mxu2 %vm305_vm1, %v7172_v33  ;;  %5601 = vmatmul.msk.bf16.gmra.mxu3 %vm305_vm1, %v7150_v24 }
 0x1a9   : > { %v1314_v12 = vadd.f32 %v6871_v61, %v1282_v54 }
 0x1aa   : > { %801 = vst [vmem:[%s7180_s23] sm:$0x1] %v800_v57 }
 0x1ab   : > { %v1346_v29 = vmax.f32 %v1314_v12, 0.0  ;;  %v1606_v52 = vpop.f32.mrf.mxu2  ;;  %v1711_v56 = vpop.f32.mrf.mxu3 }
 0x1ac   : > { %v7193_v17 = vadd.f32 %v1711_v56, %v1606_v52  ;;  %v1100_v53 = vpop.f32.mrf.mxu0  ;;  %v1207_v37 = vpop.f32.mrf.mxu1  ;;  %v7219_v56 = vld [vmem:[%s6779_s26 + $0x180] sm:$0xff] }
 0x1ad   : > { %v1377_v28 = vadd.f32 %v1376_v51, %v1346_v29  ;;  %v1101_v9 = vadd.f32 %v1100_v53, %v6889_v21 }
 0x1af   : > { %v1283_v49 = vadd.f32 %v1207_v37, %v1101_v9 }
 0x1b1   : > { %v1315_v46 = vadd.f32 %v6871_v61, %v1283_v49 }
 0x1b3   : > { %v1347_v41 = vmax.f32 %v1315_v46, 0.0  ;;  %v1608_v30 = vpop.f32.mrf.mxu2  ;;  %v1713_v25 = vpop.f32.mrf.mxu3 }
 0x1b4   : > { %v7197_v50 = vadd.f32 %v1713_v25, %v1608_v30  ;;  %v1103_v35 = vpop.f32.mrf.mxu0  ;;  %v1210_v38 = vpop.f32.mrf.mxu1 }
 0x1b5   : > { %v1378_v45 = vadd.f32 %v1377_v28, %v1347_v41  ;;  %v1104_v59 = vadd.f32 %v1103_v35, %v6901_v32 }
 0x1b7   : > { %v1284_v1 = vadd.f32 %v1210_v38, %v1104_v59  ;;  %5430 = vmatmul.msk.bf16.gmra.mxu0 %vm305_vm1, %v6878_v5  ;;  %5456 = vmatmul.msk.bf16.gmra.mxu1 %vm305_vm1, %v6908_v55 }
 0x1b8   : > { %5578 = vmatmul.msk.bf16.gmra.mxu2 %vm305_vm1, %v7200_v40  ;;  %5602 = vmatmul.msk.bf16.gmra.mxu3 %vm305_vm1, %v7172_v33 }
 0x1b9   : > { %v1316_v21 = vadd.f32 %v6871_v61, %v1284_v1 }
 0x1bb   : > { %v1348_v39 = vmax.f32 %v1316_v21, 0.0  ;;  %v1611_v8 = vpop.f32.mrf.mxu2  ;;  %v1716_v42 = vpop.f32.mrf.mxu3 }
 0x1bc   : > { %v7212_v32 = vadd.f32 %v1716_v42, %v1611_v8  ;;  %v1105_v14 = vpop.f32.mrf.mxu0  ;;  %v1212_v63 = vpop.f32.mrf.mxu1  ;;  %v7238_v42 = vld [vmem:[%s6779_s26 + $0x188] sm:$0xff] }
 0x1bd   : > { %v1379_v5 = vadd.f32 %v1378_v45, %v1348_v39  ;;  %v1106_v22 = vadd.f32 %v1105_v14, %v6904_v48 }
 0x1bf   : > { %v1285_v51 = vadd.f32 %v1212_v63, %v1106_v22 }
 0x1c1   : > { %v1317_v6 = vadd.f32 %v6871_v61, %v1285_v51 }
 0x1c3   : > { %v1349_v20 = vmax.f32 %v1317_v6, 0.0  ;;  %v1613_v54 = vpop.f32.mrf.mxu2  ;;  %v1718_v57 = vpop.f32.mrf.mxu3 }
 0x1c4   : > { %v7216_v12 = vadd.f32 %v1718_v57, %v1613_v54  ;;  %v1108_v29 = vpop.f32.mrf.mxu0  ;;  %v1215_v52 = vpop.f32.mrf.mxu1 }
 0x1c5   : > { %v1380_v53 = vadd.f32 %v1379_v5, %v1349_v20  ;;  %v1109_v37 = vadd.f32 %v1108_v29, %v6916_v0 }
 0x1c7   : > { %v1286_v28 = vadd.f32 %v1215_v52, %v1109_v37  ;;  %5431 = vmatmul.msk.bf16.gmra.mxu0 %vm305_vm1, %v6893_v26  ;;  %5457 = vmatmul.msk.bf16.gmra.mxu1 %vm305_vm1, %v6923_v16 }
 0x1c8   : > { %5579 = vmatmul.msk.bf16.gmra.mxu2 %vm305_vm1, %v7219_v56  ;;  %5603 = vmatmul.msk.bf16.gmra.mxu3 %vm305_vm1, %v7200_v40 }
 0x1c9   : > { %v1318_v48 = vadd.f32 %v6871_v61, %v1286_v28 }
 0x1cb   : > { %v1350_v9 = vmax.f32 %v1318_v48, 0.0  ;;  %v1616_v49 = vpop.f32.mrf.mxu2  ;;  %v1721_v46 = vpop.f32.mrf.mxu3 }
 0x1cc   : > { %v7231_v0 = vadd.f32 %v1721_v46, %v1616_v49  ;;  %v1110_v41 = vpop.f32.mrf.mxu0  ;;  %v1217_v30 = vpop.f32.mrf.mxu1  ;;  %v7262_v46 = vld [vmem:[%s6779_s26 + $0x190] sm:$0xff] }
 0x1cd   : > { %v1381_v26 = vadd.f32 %v1380_v53, %v1350_v9  ;;  %v1111_v25 = vadd.f32 %v1110_v41, %v6919_v10 }
 0x1cf   : > { %v1287_v35 = vadd.f32 %v1217_v30, %v1111_v25 }
 0x1d1   : > { %v1319_v38 = vadd.f32 %v6871_v61, %v1287_v35  ;;  %v7252_v61 = vld [vmem:[%s8591_s2] ss:$0 sm:$0xff] }
 0x1d3   : > { %v1351_v45 = vmax.f32 %v1319_v38, 0.0  ;;  %v1618_v59 = vpop.f32.mrf.mxu2  ;;  %v1723_v1 = vpop.f32.mrf.mxu3 }
 0x1d4   : > { %v7235_v21 = vadd.f32 %v1723_v1, %v1618_v59  ;;  %v1113_v39 = vpop.f32.mrf.mxu0  ;;  %v1220_v8 = vpop.f32.mrf.mxu1 }
 0x1d5   : > { %v1382_v14 = vadd.f32 %v1381_v26, %v1351_v45  ;;  %v1114_v63 = vadd.f32 %v1113_v39, %v6931_v23 }
 0x1d7   : > { %v1288_v5 = vadd.f32 %v1220_v8, %v1114_v63  ;;  %5432 = vmatmul.msk.bf16.gmra.mxu0 %vm305_vm1, %v6908_v55  ;;  %5458 = vmatmul.msk.bf16.gmra.mxu1 %vm305_vm1, %v6940_v44 }
 0x1d8   : > { %5580 = vmatmul.msk.bf16.gmra.mxu2 %vm305_vm1, %v7238_v42  ;;  %5604 = vmatmul.msk.bf16.gmra.mxu3 %vm305_vm1, %v7219_v56 }
 0x1d9   : > { %v1320_v10 = vadd.f32 %v7252_v61, %v1288_v5 }
 0x1db   : > { %v1352_v23 = vmax.f32 %v1320_v10, 0.0  ;;  %v1621_v22 = vpop.f32.mrf.mxu2  ;;  %v1726_v55 = vpop.f32.mrf.mxu3 }
 0x1dc   : > { %v7255_v51 = vadd.f32 %v1726_v55, %v1621_v22  ;;  %v1115_v6 = vpop.f32.mrf.mxu0  ;;  %v1222_v20 = vpop.f32.mrf.mxu1  ;;  %v7281_v55 = vld [vmem:[%s6779_s26 + $0x198] sm:$0xff] }
 0x1dd   : > { %v1383_v54 = vadd.f32 %v1382_v14, %v1352_v23  ;;  %v1116_v57 = vadd.f32 %v1115_v6, %v6934_v34 }
 0x1df   : > { %v1289_v29 = vadd.f32 %v1222_v20, %v1116_v57 }
 0x1e1   : > { %v1321_v52 = vadd.f32 %v7252_v61, %v1289_v29 }
 0x1e3   : > { %v1353_v53 = vmax.f32 %v1321_v52, 0.0  ;;  %v1623_v37 = vpop.f32.mrf.mxu2  ;;  %v1728_v28 = vpop.f32.mrf.mxu3 }
 0x1e4   : > { %v7259_v48 = vadd.f32 %v1728_v28, %v1623_v37  ;;  %v1118_v9 = vpop.f32.mrf.mxu0  ;;  %v1225_v49 = vpop.f32.mrf.mxu1 }
 0x1e5   : > { %v1384_v41 = vadd.f32 %v1383_v54, %v1353_v53  ;;  %v1119_v30 = vadd.f32 %v1118_v9, %v6949_v58  ;;  %v6600_v9 = vld [vmem:[%s8590_s1 + $0x10] sm:$0x30] }
 0x1e7   : > { %v1290_v26 = vadd.f32 %v1225_v49, %v1119_v30  ;;  %5433 = vmatmul.msk.bf16.gmra.mxu0 %vm305_vm1, %v6923_v16  ;;  %5459 = vmatmul.msk.bf16.gmra.mxu1 %vm305_vm1, %v6956_v13  ;;  %v6082_v49 = vld [vmem:[%s8590_s1 + $0x8] sm:$0xf]  ;;  %v6620_v30 = vld [vmem:[%s8590_s1 + $0x8] sm:$0x30] }
 0x1e8   : > { %5581 = vmatmul.msk.bf16.gmra.mxu2 %vm305_vm1, %v7262_v46  ;;  %5605 = vmatmul.msk.bf16.gmra.mxu3 %vm305_vm1, %v7238_v42 }
 0x1e9   : > { %v1322_v34 = vadd.f32 %v7252_v61, %v1290_v26  ;;  %v6083_v26 = vor.u32 %v6620_v30, %v6082_v49 }
 0x1eb   : > { %v1354_v25 = vmax.f32 %v1322_v34, 0.0  ;;  %v1626_v35 = vpop.f32.mrf.mxu2  ;;  %v1731_v38 = vpop.f32.mrf.mxu3 }
 0x1ec   : > { %v7274_v58 = vadd.f32 %v1731_v38, %v1626_v35  ;;  %v1120_v45 = vpop.f32.mrf.mxu0  ;;  %v1227_v59 = vpop.f32.mrf.mxu1  ;;  %v3429_v35 = vsel %vm354_vm0, %v6083_v26, 0 }
 0x1ed   : > { %v1385_v16 = vadd.f32 %v1384_v41, %v1354_v25  ;;  %v1121_v1 = vadd.f32 %v1120_v45, %v6952_v7  ;;  %3438 = vmatpush.bf16.msrb.mxu3 %v3429_v35 }
 0x1ef   : > { %v1291_v39 = vadd.f32 %v1227_v59, %v1121_v1 }
 0x1f1   : > { %v1323_v8 = vadd.f32 %v7252_v61, %v1291_v39 }
 0x1f3   : > { %v1355_v14 = vmax.f32 %v1323_v8, 0.0  ;;  %v1628_v63 = vpop.f32.mrf.mxu2  ;;  %v1733_v5 = vpop.f32.mrf.mxu3 }
 0x1f4   : > { %v7278_v10 = vadd.f32 %v1733_v5, %v1628_v63  ;;  %v1123_v23 = vpop.f32.mrf.mxu0  ;;  %v1230_v22 = vpop.f32.mrf.mxu1 }
 0x1f5   : > { %v1386_v6 = vadd.f32 %v1385_v16, %v1355_v14  ;;  %v1124_v20 = vadd.f32 %v1123_v23, %v6974_v27  ;;  %v6534_v16 = vld [vmem:[%s6779_s26 + $0x118] sm:$0xff]  ;;  %v7315_v14 = vld [vmem:[%s6779_s26 + $0x1a0] sm:$0xff] }
 0x1f6   : > { %v5934_v23 = vld [vmem:[%s8590_s1] sm:$0xf] }
 0x1f7   : > { %v1292_v54 = vadd.f32 %v1230_v22, %v1124_v20  ;;  %5434 = vmatmul.msk.bf16.gmra.mxu0 %vm305_vm1, %v6940_v44  ;;  %5460 = vmatmul.msk.bf16.gmra.mxu1 %vm305_vm1, %v6998_v4  ;;  %v5960_v4 = vld [vmem:[%s8590_s1 + $0x10] sm:$0xf]  ;;  %v6598_v22 = vld [vmem:[%s8590_s1] sm:$0x30] }
 0x1f8   : > { %5582 = vmatmul.msk.bf16.gmra.mxu2 %vm305_vm1, %v7281_v55  ;;  %5606 = vmatmul.msk.bf16.gmra.mxu3 %vm305_vm1, %v7262_v46  ;;  %v5961_v41 = vor.u32 %v6600_v9, %v5960_v4  ;;  %v5935_v20 = vor.u32 %v6598_v22, %v5934_v23 }
 0x1f9   : > { %v1324_v7 = vadd.f32 %v7252_v61, %v1292_v54  ;;  %v6599_v54 = vld [vmem:[%s8590_s1 + $0x8] sm:$0x30] }
 0x1fa   : > { %v3028_v34 = vsel %vm354_vm0, %v5961_v41, 0 }
 0x1fb   : > { %v1356_v57 = vmax.f32 %v1324_v7, 0.0  ;;  %v1631_v29 = vpop.f32.mrf.mxu2  ;;  %v1736_v52 = vpop.f32.mrf.mxu3  ;;  %3037 = vmatpush.bf16.msrb.mxu2 %v3028_v34 }
 0x1fc   : > { %v7293_v53 = vadd.f32 %v1736_v52, %v1631_v29  ;;  %v1125_v27 = vpop.f32.mrf.mxu0  ;;  %v1232_v37 = vpop.f32.mrf.mxu1 }
 0x1fd   : > { %v1387_v28 = vadd.f32 %v1386_v6, %v1356_v57  ;;  %v1126_v44 = vadd.f32 %v1125_v27, %v6991_v62  ;;  %v5910_v6 = vld [vmem:[%s8590_s1 + $0x8] sm:$0xf]  ;;  %v2921_v57 = vsel %vm354_vm0, %v5935_v20, 0 }
 0x1fe   : > { %2930 = vmatpush.bf16.msrb.mxu1 %v2921_v57 }
 0x1ff   : > { %v1293_v62 = vadd.f32 %v1232_v37, %v1126_v44 }
 0x201   : > { %v1325_v25 = vadd.f32 %v7252_v61, %v1293_v62 }
 0x203   : > { %v1357_v38 = vmax.f32 %v1325_v25, 0.0  ;;  %v1633_v45 = vpop.f32.mrf.mxu2  ;;  %v1738_v59 = vpop.f32.mrf.mxu3  ;;  %v6560_v25 = vld [vmem:[%s6779_s26 + $0x1b8] sm:$0xff] }
 0x204   : > { %v7312_v1 = vadd.f32 %v1738_v59, %v1633_v45  ;;  %v1128_v39 = vpop.f32.mrf.mxu0  ;;  %v1235_v8 = vpop.f32.mrf.mxu1  ;;  %v6559_v59 = vld [vmem:[%s6779_s26 + $0x1b0] sm:$0xff] }
 0x205   : > { %v1388_v63 = vadd.f32 %v1387_v28, %v1357_v38  ;;  %v1129_v5 = vadd.f32 %v1128_v39, %v7009_v15  ;;  %v5911_v15 = vor.u32 %v6599_v54, %v5910_v6 }
 0x207   : > { %v1294_v7 = vadd.f32 %v1235_v8, %v1129_v5  ;;  %5435 = vmatmul.msk.bf16.gmra.mxu0 %vm305_vm1, %v6956_v13  ;;  %5461 = vmatmul.msk.bf16.gmra.mxu1 %vm305_vm1, %v6534_v16  ;;  %v2816_v52 = vsel %vm354_vm0, %v5911_v15, 0  ;;  %v6561_v16 = vld [vmem:[%s6779_s26 + $0x1c0] sm:$0xff] }
 0x208   : > { %5583 = vmatmul.msk.bf16.gmra.mxu2 %vm305_vm1, %v7315_v14  ;;  %5607 = vmatmul.msk.bf16.gmra.mxu3 %vm305_vm1, %v7281_v55  ;;  %v8619_v8 = vld [vmem:[#allocation2_spill] sm:$0xff] }
 0x209   : > { %v1326_v29 = vadd.f32 %v7252_v61, %v1294_v7  ;;  %2825 = vmatpush.bf16.msrb.mxu0 %v2816_v52 }
 0x20b   : > { %v1358_v27 = vmax.f32 %v1326_v29, 0.0  ;;  %v1636_v13 = vpop.f32.mrf.mxu2  ;;  %v1741_v37 = vpop.f32.mrf.mxu3  ;;  %v8622_v29 = vld [vmem:[#allocation3_spill] sm:$0xff] }
 0x20c   : > { %v7340_v28 = vadd.f32 %v1741_v37, %v1636_v13  ;;  %v1130_v44 = vpop.f32.mrf.mxu0  ;;  %v1237_v4 = vpop.f32.mrf.mxu1 }
 0x20d   : > { %v1389_v9 = vadd.f32 %v1388_v63, %v1358_v27  ;;  %v1131_v49 = vadd.f32 %v1130_v44, %v7012_v36  ;;  %v8620_v63 = vld [vmem:[#allocation4_spill] sm:$0xff] }
 0x20f   : > { %v1295_v41 = vadd.f32 %v1237_v4, %v1131_v49 }
 0x211   : > { %v1327_v30 = vadd.f32 %v7252_v61, %v1295_v41 }
 0x213   : > { %v1359_v62 = vmax.f32 %v1327_v30, 0.0  ;;  %v1638_v26 = vpop.f32.mrf.mxu2  ;;  %v1743_v34 = vpop.f32.mrf.mxu3  ;;  %v6562_v30 = vld [vmem:[%s6779_s26 + $0x1c8] sm:$0xff] }
 0x214   : > { %v7345_v35 = vadd.f32 %v1743_v34, %v1638_v26  ;;  %v1133_v38 = vpop.f32.mrf.mxu0  ;;  %v1240_v45 = vpop.f32.mrf.mxu1  ;;  %v8624_v26 = vld [vmem:[#allocation5_spill] sm:$0xff] }
 0x215   : > { %v1390_v39 = vadd.f32 %v1389_v9, %v1359_v62  ;;  %v1134_v5 = vadd.f32 %v1133_v38, %v8619_v8 }
 0x217   : > { %v1296_v23 = vadd.f32 %v1240_v45, %v1134_v5  ;;  %5618 = vmatmul.msk.bf16.vlgmr.msra.gmra.mxu0 %vm305_vm1, %v8620_v63  ;;  %5740 = vmatmul.msk.bf16.vlgmr.msra.gmra.mxu1 %vm305_vm1, %v6560_v25  ;;  %v8625_v45 = vld [vmem:[#allocation7_spill] sm:$0xff] }
 0x218   : > { %5764 = vmatmul.msk.bf16.vlgmr.msra.gmra.mxu2 %vm305_vm1, %v6559_v59  ;;  %5790 = vmatmul.msk.bf16.vlgmr.msra.gmra.mxu3 %vm305_vm1, %v6561_v16 }
 0x219   : > { %v1328_v36 = vadd.f32 %v7252_v61, %v1296_v23 }
 0x21b   : > { %v1360_v22 = vmax.f32 %v1328_v36, 0.0  ;;  %v1641_v6 = vpop.f32.mrf.mxu2  ;;  %v1746_v20 = vpop.f32.mrf.mxu3 }
 0x21c   : > { %v7356_v54 = vadd.f32 %v1746_v20, %v1641_v6  ;;  %v1135_v7 = vpop.f32.mrf.mxu0  ;;  %v1242_v15 = vpop.f32.mrf.mxu1  ;;  %v8627_v6 = vld [vmem:[#allocation6_spill] sm:$0xff] }
 0x21d   : > { %v1391_v57 = vadd.f32 %v1390_v39, %v1360_v22  ;;  %v1136_v52 = vadd.f32 %v1135_v7, %v8622_v29 }
 0x21e   : > { %8621 = vst [vmem:[#allocation2_spill] sm:$0xff] %v7356_v54 }
 0x21f   : > { %v1297_v27 = vadd.f32 %v1242_v15, %v1136_v52 }
 0x221   : > { %v1329_v13 = vadd.f32 %v7252_v61, %v1297_v27 }
 0x223   : > { %v1361_v37 = vmax.f32 %v1329_v13, 0.0  ;;  %v1643_v44 = vpop.f32.mrf.mxu2  ;;  %v1748_v4 = vpop.f32.mrf.mxu3 }
 0x224   : > { %v7360_v9 = vadd.f32 %v1748_v4, %v1643_v44  ;;  %v1138_v49 = vpop.f32.mrf.mxu0  ;;  %v1245_v41 = vpop.f32.mrf.mxu1  ;;  %v8629_v4 = vld [vmem:[#allocation8_spill] sm:$0xff] }
 0x225   : > { %v1392_v62 = vadd.f32 %v1391_v57, %v1361_v37  ;;  %v1139_v34 = vadd.f32 %v1138_v49, %v8624_v26  ;;  %v6563_v37 = vld [vmem:[%s6779_s26 + $0x1d0] sm:$0xff]  ;;  %v8630_v26 = vld [vmem:[#allocation10_spill] sm:$0xff] }
 0x226   : > { %8623 = vst [vmem:[#allocation4_spill] sm:$0xff] %v7360_v9  ;;  %v7427_v9 = vld [vmem:[%s6779_s26 + $0x1f0] sm:$0xff] }
 0x227   : > { %v1298_v38 = vadd.f32 %v1245_v41, %v1139_v34  ;;  %5619 = vmatmul.msk.bf16.gmra.mxu0 %vm305_vm1, %v8625_v45  ;;  %5741 = vmatmul.msk.bf16.gmra.mxu1 %vm305_vm1, %v6561_v16 }
 0x228   : > { %5765 = vmatmul.msk.bf16.gmra.mxu2 %vm305_vm1, %v6560_v25  ;;  %5791 = vmatmul.msk.bf16.gmra.mxu3 %vm305_vm1, %v6562_v30 }
 0x229   : > { %v1330_v59 = vadd.f32 %v7252_v61, %v1298_v38 }
 0x22b   : > { %v1362_v39 = vmax.f32 %v1330_v59, 0.0  ;;  %v1646_v8 = vpop.f32.mrf.mxu2  ;;  %v1751_v5 = vpop.f32.mrf.mxu3 }
 0x22c   : > { %v7370_v23 = vadd.f32 %v1751_v5, %v1646_v8  ;;  %v1140_v63 = vpop.f32.mrf.mxu0  ;;  %v1247_v36 = vpop.f32.mrf.mxu1 }
 0x22d   : > { %v1393_v22 = vadd.f32 %v1392_v62, %v1362_v39  ;;  %v1141_v20 = vadd.f32 %v1140_v63, %v8627_v6 }
 0x22e   : > { %8626 = vst [vmem:[#allocation3_spill] sm:$0xff] %v7370_v23 }
 0x22f   : > { %v1299_v7 = vadd.f32 %v1247_v36, %v1141_v20 }
 0x231   : > { %v1331_v15 = vadd.f32 %v7252_v61, %v1299_v7  ;;  %v8633_v7 = vld [vmem:[#allocation13_spill] sm:$0xff] }
 0x233   : > { %v1363_v57 = vmax.f32 %v1331_v15, 0.0  ;;  %v1648_v25 = vpop.f32.mrf.mxu2  ;;  %v1753_v29 = vpop.f32.mrf.mxu3 }
 0x234   : > { %v7374_v52 = vadd.f32 %v1753_v29, %v1648_v25  ;;  %v1143_v27 = vpop.f32.mrf.mxu0  ;;  %v1250_v13 = vpop.f32.mrf.mxu1 }
 0x235   : > { %v1394_v44 = vadd.f32 %v1393_v22, %v1363_v57  ;;  %v1144_v49 = vadd.f32 %v1143_v27, %v8629_v4 }
 0x236   : > { %8628 = vst [vmem:[#allocation5_spill] sm:$0xff] %v7374_v52 }
 0x237   : > { %v1300_v41 = vadd.f32 %v1250_v13, %v1144_v49  ;;  %5620 = vmatmul.msk.bf16.gmra.mxu0 %vm305_vm1, %v8630_v26  ;;  %5742 = vmatmul.msk.bf16.gmra.mxu1 %vm305_vm1, %v6562_v30  ;;  %v6565_v26 = vld [vmem:[%s6779_s26 + $0x1e0] sm:$0xff] }
 0x238   : > { %5766 = vmatmul.msk.bf16.gmra.mxu2 %vm305_vm1, %v6561_v16  ;;  %5792 = vmatmul.msk.bf16.gmra.mxu3 %vm305_vm1, %v6563_v37  ;;  %v6564_v16 = vld [vmem:[%s6779_s26 + $0x1d8] sm:$0xff] }
 0x239   : > { %v1332_v62 = vadd.f32 %v7252_v61, %v1300_v41 }
 0x23b   : > { %v1364_v34 = vmax.f32 %v1332_v62, 0.0  ;;  %v1651_v38 = vpop.f32.mrf.mxu2  ;;  %v1756_v45 = vpop.f32.mrf.mxu3 }
 0x23c   : > { %v7384_v59 = vadd.f32 %v1756_v45, %v1651_v38  ;;  %v1145_v39 = vpop.f32.mrf.mxu0  ;;  %v1252_v8 = vpop.f32.mrf.mxu1 }
 0x23d   : > { %v7386_v5 = vadd.f32 %v1394_v44, %v1364_v34 }
 0x23e   : > { %8631 = vst [vmem:[#allocation7_spill] sm:$0xff] %v7384_v59 }
 0x243   : > { %v1653_v63 = vpop.f32.mrf.mxu2  ;;  %v1758_v36 = vpop.f32.mrf.mxu3 }
 0x244   : > { %v7388_v22 = vadd.f32 %v1758_v36, %v1653_v63  ;;  %v1148_v6 = vpop.f32.mrf.mxu0  ;;  %v1255_v20 = vpop.f32.mrf.mxu1 }
 0x246   : > { %8632 = vst [vmem:[#allocation6_spill] sm:$0xff] %v7388_v22  ;;  %v8640_v22 = vld [vmem:[#allocation12_spill] sm:$0xff] }
 0x247   : > { %5621 = vmatmul.msk.bf16.gmra.mxu0 %vm305_vm1, %v8633_v7  ;;  %5743 = vmatmul.msk.bf16.gmra.mxu1 %vm305_vm1, %v6563_v37 }
 0x248   : > { %5767 = vmatmul.msk.bf16.gmra.mxu2 %vm305_vm1, %v6562_v30  ;;  %5793 = vmatmul.msk.bf16.gmra.mxu3 %vm305_vm1, %v6564_v16 }
 0x24b   : > { %v1656_v15 = vpop.f32.mrf.mxu2  ;;  %v1761_v57 = vpop.f32.mrf.mxu3 }
 0x24c   : > { %v7396_v25 = vadd.f32 %v1761_v57, %v1656_v15  ;;  %v1150_v29 = vpop.f32.mrf.mxu0  ;;  %v1257_v27 = vpop.f32.mrf.mxu1 }
 0x24d   : > { %v1151_v59 = vadd.f32 %v1150_v29, %v8640_v22  ;;  %v8642_v22 = vld [vmem:[#allocation15_spill] sm:$0xff] }
 0x24e   : > { %8634 = vst [vmem:[#allocation8_spill] sm:$0xff] %v7396_v25 }
 0x253   : > { %v1658_v13 = vpop.f32.mrf.mxu2  ;;  %v1763_v44 = vpop.f32.mrf.mxu3 }
 0x254   : > { %v7398_v4 = vadd.f32 %v1763_v44, %v1658_v13  ;;  %v1153_v49 = vpop.f32.mrf.mxu0  ;;  %v1260_v41 = vpop.f32.mrf.mxu1  ;;  %v7411_v13 = vld [vmem:[%s6779_s26 + $0x1e8] sm:$0xff] }
 0x256   : > { %8635 = vst [vmem:[#allocation10_spill] sm:$0xff] %v7398_v4 }
 0x257   : > { %5622 = vmatmul.msk.bf16.gmra.mxu0 %vm305_vm1, %v7095_v11  ;;  %5744 = vmatmul.msk.bf16.gmra.mxu1 %vm305_vm1, %v6564_v16 }
 0x258   : > { %5768 = vmatmul.msk.bf16.gmra.mxu2 %vm305_vm1, %v6563_v37  ;;  %5794 = vmatmul.msk.bf16.gmra.mxu3 %vm305_vm1, %v6565_v26 }
 0x25b   : > { %v1661_v30 = vpop.f32.mrf.mxu2  ;;  %v1766_v62 = vpop.f32.mrf.mxu3 }
 0x25c   : > { %v7406_v34 = vadd.f32 %v1766_v62, %v1661_v30  ;;  %v1155_v38 = vpop.f32.mrf.mxu0  ;;  %v1262_v45 = vpop.f32.mrf.mxu1 }
 0x25e   : > { %8636 = vst [vmem:[#allocation13_spill] sm:$0xff] %v7406_v34 }
 0x263   : > { %v1663_v63 = vpop.f32.mrf.mxu2  ;;  %v1768_v36 = vpop.f32.mrf.mxu3 }
 0x264   : > { %v7408_v7 = vadd.f32 %v1768_v36, %v1663_v63  ;;  %v1158_v15 = vpop.f32.mrf.mxu0  ;;  %v1265_v57 = vpop.f32.mrf.mxu1  ;;  %v8638_v63 = vld [vmem:[#allocation9_spill] sm:$0xff] }
 0x265   : > { %v1146_v36 = vadd.f32 %v1145_v39, %v8638_v63 }
 0x266   : > { %8637 = vst [vmem:[#allocation19_spill] sm:$0xff] %v7408_v7  ;;  %v8639_v7 = vld [vmem:[#allocation11_spill] sm:$0xff] }
 0x267   : > { %5623 = vmatmul.msk.bf16.gmra.mxu0 %vm305_vm1, %v7110_v43  ;;  %5745 = vmatmul.msk.bf16.gmra.mxu1 %vm305_vm1, %v6565_v26  ;;  %v1149_v34 = vadd.f32 %v1148_v6, %v8639_v7  ;;  %v1301_v25 = vadd.f32 %v1252_v8, %v1146_v36  ;;  %v1303_v8 = vadd.f32 %v1257_v27, %v1151_v59 }
 0x268   : > { %5769 = vmatmul.msk.bf16.gmra.mxu2 %vm305_vm1, %v6564_v16  ;;  %5795 = vmatmul.msk.bf16.gmra.mxu3 %vm305_vm1, %v7411_v13  ;;  %v1156_v6 = vadd.f32 %v1155_v38, %v8642_v22 }
 0x269   : > { %v1302_v54 = vadd.f32 %v1255_v20, %v1149_v34  ;;  %v1333_v39 = vadd.f32 %v7252_v61, %v1301_v25  ;;  %v1335_v63 = vadd.f32 %v7252_v61, %v1303_v8 }
 0x26a   : > { %v1305_v27 = vadd.f32 %v1262_v45, %v1156_v6 }
 0x26b   : > { %v1666_v11 = vpop.f32.mrf.mxu2  ;;  %v1771_v37 = vpop.f32.mrf.mxu3  ;;  %v1334_v20 = vadd.f32 %v7252_v61, %v1302_v54  ;;  %v1365_v7 = vmax.f32 %v1333_v39, 0.0  ;;  %v8645_v54 = vld [vmem:[#allocation18_spill] sm:$0xff] }
 0x26c   : > { %v7419_v44 = vadd.f32 %v1771_v37, %v1666_v11  ;;  %v1160_v30 = vpop.f32.mrf.mxu0  ;;  %v1267_v62 = vpop.f32.mrf.mxu1  ;;  %v8641_v11 = vld [vmem:[#allocation14_spill] sm:$0xff]  ;;  %v1337_v39 = vadd.f32 %v7252_v61, %v1305_v27 }
 0x26d   : > { %v1154_v37 = vadd.f32 %v1153_v49, %v8641_v11  ;;  %v1366_v11 = vmax.f32 %v1334_v20, 0.0 }
 0x26f   : > { %v1304_v29 = vadd.f32 %v1260_v41, %v1154_v37  ;;  %v1367_v37 = vmax.f32 %v1335_v63, 0.0 }
 0x271   : > { %v1336_v38 = vadd.f32 %v7252_v61, %v1304_v29 }
 0x273   : > { %v1668_v4 = vpop.f32.mrf.mxu2  ;;  %v1773_v43 = vpop.f32.mrf.mxu3 }
 0x274   : > { %v7424_v16 = vadd.f32 %v1773_v43, %v1668_v4  ;;  %v1163_v52 = vpop.f32.mrf.mxu0  ;;  %v1270_v23 = vpop.f32.mrf.mxu1  ;;  %v8643_v4 = vld [vmem:[#allocation16_spill] sm:$0xff] }
 0x275   : > { %v1159_v49 = vadd.f32 %v1158_v15, %v8643_v4  ;;  %v1164_v41 = vadd.f32 %v1163_v52, %v8645_v54  ;;  %v1396_v15 = vadd.f32 %v7386_v5, %v1365_v7  ;;  %v1369_v5 = vmax.f32 %v1337_v39, 0.0 }
 0x277   : > { %5624 = vmatmul.msk.bf16.gmra.mxu0 %vm305_vm1, %v7128_v3  ;;  %5746 = vmatmul.msk.bf16.gmra.mxu1 %vm305_vm1, %v7411_v13  ;;  %v1306_v22 = vadd.f32 %v1265_v57, %v1159_v49 }
 0x278   : > { %5770 = vmatmul.msk.bf16.gmra.mxu2 %vm305_vm1, %v6565_v26  ;;  %5796 = vmatmul.msk.bf16.gmra.mxu3 %vm305_vm1, %v7427_v9  ;;  %v8644_v26 = vld [vmem:[#allocation17_spill] sm:$0xff] }
 0x279   : > { %v1161_v43 = vadd.f32 %v1160_v30, %v8644_v26  ;;  %v1338_v45 = vadd.f32 %v7252_v61, %v1306_v22  ;;  %v1308_v30 = vadd.f32 %v1270_v23, %v1164_v41  ;;  %v7454_v26 = vld [vmem:[%s6779_s26 + $0x1f8] sm:$0xff] }
 0x27b   : > { %v1671_v34 = vpop.f32.mrf.mxu2  ;;  %v1776_v3 = vpop.f32.mrf.mxu3  ;;  %v1307_v8 = vadd.f32 %v1267_v62, %v1161_v43  ;;  %v1340_v27 = vadd.f32 %v7252_v61, %v1308_v30 }
 0x27c   : > { %v7442_v36 = vadd.f32 %v1776_v3, %v1671_v34  ;;  %v1165_v59 = vpop.f32.mrf.mxu0  ;;  %v1272_v25 = vpop.f32.mrf.mxu1  ;;  %v1397_v34 = vadd.f32 %v1396_v15, %v1366_v11  ;;  %v1368_v3 = vmax.f32 %v1336_v38, 0.0 }
 0x27d   : > { %v1166_v4 = vadd.f32 %v1165_v59, %v7125_v2  ;;  %v1339_v7 = vadd.f32 %v7252_v61, %v1307_v8  ;;  %v1370_v59 = vmax.f32 %v1338_v45, 0.0  ;;  %v1372_v38 = vmax.f32 %v1340_v27, 0.0 }
 0x27e   : > { %v1398_v29 = vadd.f32 %v1397_v34, %v1367_v37 }
 0x27f   : > { %v1309_v62 = vadd.f32 %v1272_v25, %v1166_v4  ;;  %v1371_v43 = vmax.f32 %v1339_v7, 0.0 }
 0x280   : > { %v1399_v63 = vadd.f32 %v1398_v29, %v1368_v3 }
 0x282   : > { %v1400_v25 = vadd.f32 %v1399_v63, %v1369_v5 }
 0x283   : > { %v1673_v6 = vpop.f32.mrf.mxu2  ;;  %v1778_v20 = vpop.f32.mrf.mxu3 }
 0x284   : > { %v7451_v57 = vadd.f32 %v1778_v20, %v1673_v6  ;;  %v1168_v52 = vpop.f32.mrf.mxu0  ;;  %v1275_v49 = vpop.f32.mrf.mxu1  ;;  %v1401_v11 = vadd.f32 %v1400_v25, %v1370_v59 }
 0x285   : > { %v1169_v2 = vadd.f32 %v1168_v52, %v7142_v47  ;;  %v1341_v47 = vadd.f32 %v7252_v61, %v1309_v62  ;;  %v7476_v62 = vld [vmem:[%s6779_s26 + $0x200] sm:$0xff] }
 0x286   : > { %v1402_v39 = vadd.f32 %v1401_v11, %v1371_v43 }
 0x287   : > { %v1310_v23 = vadd.f32 %v1275_v49, %v1169_v2  ;;  %5625 = vmatmul.msk.bf16.gmra.mxu0 %vm305_vm1, %v7150_v24  ;;  %5747 = vmatmul.msk.bf16.gmra.mxu1 %vm305_vm1, %v7427_v9 }
 0x288   : > { %5771 = vmatmul.msk.bf16.gmra.mxu2 %vm305_vm1, %v7411_v13  ;;  %5797 = vmatmul.msk.bf16.gmra.mxu3 %vm305_vm1, %v7454_v26  ;;  %v1373_v13 = vmax.f32 %v1341_v47, 0.0  ;;  %v1403_v4 = vadd.f32 %v1402_v39, %v1372_v38 }
 0x289   : > { %v1342_v22 = vadd.f32 %v7252_v61, %v1310_v23 }
 0x28a   : > { %v1404_v45 = vadd.f32 %v1403_v4, %v1373_v13 }
 0x28b   : > { %v1676_v54 = vpop.f32.mrf.mxu2  ;;  %v1781_v41 = vpop.f32.mrf.mxu3  ;;  %v1374_v34 = vmax.f32 %v1342_v22, 0.0 }
 0x28c   : > { %v7469_v24 = vadd.f32 %v1781_v41, %v1676_v54  ;;  %v1170_v15 = vpop.f32.mrf.mxu0  ;;  %v1277_v37 = vpop.f32.mrf.mxu1 }
 0x28d   : > { %v1171_v8 = vadd.f32 %v1170_v15, %v7147_v31  ;;  %v1405_v6 = vadd.f32 %v1404_v45, %v1374_v34 }
 0x28f   : > { %v1311_v3 = vadd.f32 %v1277_v37, %v1171_v8 }
 0x291   : > { %v1343_v30 = vadd.f32 %v7252_v61, %v1311_v3 }
 0x293   : > { %v1375_v20 = vmax.f32 %v1343_v30, 0.0  ;;  %v1678_v29 = vpop.f32.mrf.mxu2  ;;  %v1783_v52 = vpop.f32.mrf.mxu3  ;;  %v7492_v30 = vld [vmem:[%s6779_s26 + $0x208] sm:$0xff] }
 0x294   : > { %v7473_v49 = vadd.f32 %v1783_v52, %v1678_v29  ;;  %v1813_v5 = vpop.f32.mrf.mxu0  ;;  %v2214_v7 = vpop.f32.mrf.mxu1 }
 0x295   : > { %v1406_v2 = vadd.f32 %v1405_v6, %v1375_v20  ;;  %v1893_v63 = vadd.f32 %v1813_v5, %v7163_v18 }
 0x297   : > { %v1407_v31 = vrot.slane %v1406_v2, 4  ;;  %5626 = vmatmul.msk.bf16.gmra.mxu0 %vm305_vm1, %v7172_v33  ;;  %5748 = vmatmul.msk.bf16.gmra.mxu1 %vm305_vm1, %v7454_v26  ;;  %v1925_v33 = vadd.f32 %v7252_v61, %v1893_v63 }
 0x298   : > { %5772 = vmatmul.msk.bf16.gmra.mxu2 %vm305_vm1, %v7427_v9  ;;  %5798 = vmatmul.msk.bf16.gmra.mxu3 %vm305_vm1, %v7476_v62 }
 0x299   : > { %v1408_v59 = vadd.f32 %v1407_v31, %v1406_v2  ;;  %v1957_v15 = vmax.f32 %v1925_v33, 0.0 }
 0x29b   : > { %v1409_v27 = vrot.slane %v1408_v59, 2  ;;  %v2319_v23 = vpop.f32.mrf.mxu2  ;;  %v2426_v25 = vpop.f32.mrf.mxu3 }
 0x29c   : > { %v2320_v43 = vadd.f32 %v2319_v23, %v2214_v7  ;;  %v1815_v47 = vpop.f32.mrf.mxu0  ;;  %v2216_v18 = vpop.f32.mrf.mxu1 }
 0x29d   : > { %v1410_v11 = vadd.f32 %v1409_v27, %v1408_v59  ;;  %v1894_v38 = vadd.f32 %v1815_v47, %v7169_v19 }
 0x29e   : > { %v2506_v22 = vadd.f32 %v2426_v25, %v2320_v43 }
 0x29f   : > { %v1411_v54 = vrot.slane %v1410_v11, 1  ;;  %v1926_v9 = vadd.f32 %v7252_v61, %v1894_v38 }
 0x2a0   : > { %v2538_v6 = vadd.f32 %v7252_v61, %v2506_v22 }
 0x2a1   : > { %v1412_v41 = vadd.f32 %v1411_v54, %v1410_v11  ;;  %v1958_v37 = vmax.f32 %v1926_v9, 0.0 }
 0x2a2   : > { %v2570_v5 = vmax.f32 %v2538_v6, 0.0 }
 0x2a3   : > { %v1413_v39 = vmul.f32 %v1412_v41, %v7174_v60  ;;  %v1989_v13 = vadd.f32 %v1958_v37, %v1957_v15  ;;  %v2321_v8 = vpop.f32.mrf.mxu2  ;;  %v2428_v4 = vpop.f32.mrf.mxu3  ;;  %v7511_v37 = vld [vmem:[%s6779_s26 + $0x210] sm:$0xff] }
 0x2a4   : > { %v2322_v34 = vadd.f32 %v2321_v8, %v2216_v18  ;;  %v1818_v3 = vpop.f32.mrf.mxu0  ;;  %v2219_v45 = vpop.f32.mrf.mxu1 }
 0x2a5   : > { %1414 = vst [vmem:[%s7180_s23 + $0x1] sm:$0x1] %v1413_v39  ;;  %v1895_v19 = vadd.f32 %v1818_v3, %v7193_v17 }
 0x2a6   : > { %v2507_v20 = vadd.f32 %v2428_v4, %v2322_v34 }
 0x2a7   : > { %v1927_v29 = vadd.f32 %v7252_v61, %v1895_v19  ;;  %5627 = vmatmul.msk.bf16.gmra.mxu0 %vm305_vm1, %v7200_v40  ;;  %5749 = vmatmul.msk.bf16.gmra.mxu1 %vm305_vm1, %v7476_v62 }
 0x2a8   : > { %v2539_v52 = vadd.f32 %v7252_v61, %v2507_v20  ;;  %5773 = vmatmul.msk.bf16.gmra.mxu2 %vm305_vm1, %v7454_v26  ;;  %5799 = vmatmul.msk.bf16.gmra.mxu3 %vm305_vm1, %v7492_v30 }
 0x2a9   : > { %v1959_v17 = vmax.f32 %v1927_v29, 0.0 }
 0x2aa   : > { %v2571_v7 = vmax.f32 %v2539_v52, 0.0 }
 0x2ab   : > { %v1990_v2 = vadd.f32 %v1989_v13, %v1959_v17  ;;  %v2324_v63 = vpop.f32.mrf.mxu2  ;;  %v2431_v31 = vpop.f32.mrf.mxu3 }
 0x2ac   : > { %v2602_v59 = vadd.f32 %v2571_v7, %v2570_v5  ;;  %v2325_v27 = vadd.f32 %v2324_v63, %v2219_v45  ;;  %v1820_v40 = vpop.f32.mrf.mxu0  ;;  %v2221_v23 = vpop.f32.mrf.mxu1 }
 0x2ad   : > { %v1896_v25 = vadd.f32 %v1820_v40, %v7197_v50 }
 0x2ae   : > { %v2508_v43 = vadd.f32 %v2431_v31, %v2325_v27 }
 0x2af   : > { %v1928_v47 = vadd.f32 %v7252_v61, %v1896_v25  ;;  %v7528_v25 = vld [vmem:[%s6779_s26 + $0x218] sm:$0xff] }
 0x2b0   : > { %v2540_v26 = vadd.f32 %v7252_v61, %v2508_v43 }
 0x2b1   : > { %v1960_v18 = vmax.f32 %v1928_v47, 0.0 }
 0x2b2   : > { %v2572_v11 = vmax.f32 %v2540_v26, 0.0 }
 0x2b3   : > { %v1991_v33 = vadd.f32 %v1990_v2, %v1960_v18  ;;  %v2326_v38 = vpop.f32.mrf.mxu2  ;;  %v2433_v22 = vpop.f32.mrf.mxu3 }
 0x2b4   : > { %v2603_v54 = vadd.f32 %v2602_v59, %v2572_v11  ;;  %v2327_v9 = vadd.f32 %v2326_v38, %v2221_v23  ;;  %v1823_v41 = vpop.f32.mrf.mxu0  ;;  %v2224_v15 = vpop.f32.mrf.mxu1 }
 0x2b5   : > { %v1897_v39 = vadd.f32 %v1823_v41, %v7212_v32 }
 0x2b6   : > { %v2509_v13 = vadd.f32 %v2433_v22, %v2327_v9 }
 0x2b7   : > { %v1929_v50 = vadd.f32 %v7252_v61, %v1897_v39  ;;  %5628 = vmatmul.msk.bf16.gmra.mxu0 %vm305_vm1, %v7219_v56  ;;  %5750 = vmatmul.msk.bf16.gmra.mxu1 %vm305_vm1, %v7492_v30 }
 0x2b8   : > { %v2541_v8 = vadd.f32 %v7252_v61, %v2509_v13  ;;  %5774 = vmatmul.msk.bf16.gmra.mxu2 %vm305_vm1, %v7476_v62  ;;  %5800 = vmatmul.msk.bf16.gmra.mxu3 %vm305_vm1, %v7511_v37 }
 0x2b9   : > { %v1961_v4 = vmax.f32 %v1929_v50, 0.0 }
 0x2ba   : > { %v2573_v34 = vmax.f32 %v2541_v8, 0.0 }
 0x2bb   : > { %v1992_v32 = vadd.f32 %v1991_v33, %v1961_v4  ;;  %v2329_v3 = vpop.f32.mrf.mxu2  ;;  %v2436_v45 = vpop.f32.mrf.mxu3 }
 0x2bc   : > { %v2604_v19 = vadd.f32 %v2603_v54, %v2573_v34  ;;  %v2330_v6 = vadd.f32 %v2329_v3, %v2224_v15  ;;  %v1825_v56 = vpop.f32.mrf.mxu0  ;;  %v2226_v20 = vpop.f32.mrf.mxu1 }
 0x2bd   : > { %v1898_v29 = vadd.f32 %v1825_v56, %v7216_v12 }
 0x2be   : > { %v2510_v52 = vadd.f32 %v2436_v45, %v2330_v6  ;;  %v7545_v6 = vld [vmem:[%s6779_s26 + $0x220] sm:$0xff] }
 0x2bf   : > { %v1930_v17 = vadd.f32 %v7252_v61, %v1898_v29 }
 0x2c0   : > { %v2542_v62 = vadd.f32 %v7252_v61, %v2510_v52 }
 0x2c1   : > { %v1962_v5 = vmax.f32 %v1930_v17, 0.0 }
 0x2c2   : > { %v2574_v7 = vmax.f32 %v2542_v62, 0.0 }
 0x2c3   : > { %v1993_v2 = vadd.f32 %v1992_v32, %v1962_v5  ;;  %v2331_v63 = vpop.f32.mrf.mxu2  ;;  %v2438_v31 = vpop.f32.mrf.mxu3 }
 0x2c4   : > { %v2605_v59 = vadd.f32 %v2604_v19, %v2574_v7  ;;  %v2332_v27 = vadd.f32 %v2331_v63, %v2226_v20  ;;  %v1828_v40 = vpop.f32.mrf.mxu0  ;;  %v2229_v23 = vpop.f32.mrf.mxu1 }
 0x2c5   : > { %v1899_v43 = vadd.f32 %v1828_v40, %v7231_v0 }
 0x2c6   : > { %v2511_v47 = vadd.f32 %v2438_v31, %v2332_v27 }
 0x2c7   : > { %v1931_v12 = vadd.f32 %v7252_v61, %v1899_v43  ;;  %5629 = vmatmul.msk.bf16.gmra.mxu0 %vm305_vm1, %v7238_v42  ;;  %5751 = vmatmul.msk.bf16.gmra.mxu1 %vm305_vm1, %v7511_v37 }
 0x2c8   : > { %v2543_v26 = vadd.f32 %v7252_v61, %v2511_v47  ;;  %5775 = vmatmul.msk.bf16.gmra.mxu2 %vm305_vm1, %v7492_v30  ;;  %5801 = vmatmul.msk.bf16.gmra.mxu3 %vm305_vm1, %v7528_v25 }
 0x2c9   : > { %v1963_v18 = vmax.f32 %v1931_v12, 0.0 }
 0x2ca   : > { %v2575_v11 = vmax.f32 %v2543_v26, 0.0 }
 0x2cb   : > { %v1994_v0 = vadd.f32 %v1993_v2, %v1963_v18  ;;  %v2334_v33 = vpop.f32.mrf.mxu2  ;;  %v2441_v38 = vpop.f32.mrf.mxu3 }
 0x2cc   : > { %v2606_v22 = vadd.f32 %v2605_v59, %v2575_v11  ;;  %v2335_v54 = vadd.f32 %v2334_v33, %v2229_v23  ;;  %v1830_v42 = vpop.f32.mrf.mxu0  ;;  %v2231_v9 = vpop.f32.mrf.mxu1  ;;  %v7562_v33 = vld [vmem:[%s6779_s26 + $0x228] sm:$0xff] }
 0x2cd   : > { %v1900_v41 = vadd.f32 %v1830_v42, %v7235_v21 }
 0x2ce   : > { %v2512_v15 = vadd.f32 %v2441_v38, %v2335_v54 }
 0x2cf   : > { %v1932_v39 = vadd.f32 %v7252_v61, %v1900_v41 }
 0x2d0   : > { %v2544_v30 = vadd.f32 %v7252_v61, %v2512_v15 }
 0x2d1   : > { %v1964_v13 = vmax.f32 %v1932_v39, 0.0 }
 0x2d2   : > { %v2576_v50 = vmax.f32 %v2544_v30, 0.0 }
 0x2d3   : > { %v1995_v8 = vadd.f32 %v1994_v0, %v1964_v13  ;;  %v2336_v4 = vpop.f32.mrf.mxu2  ;;  %v2443_v34 = vpop.f32.mrf.mxu3 }
 0x2d4   : > { %v2607_v32 = vadd.f32 %v2606_v22, %v2576_v50  ;;  %v2337_v3 = vadd.f32 %v2336_v4, %v2231_v9  ;;  %v1833_v45 = vpop.f32.mrf.mxu0  ;;  %v2234_v19 = vpop.f32.mrf.mxu1 }
 0x2d5   : > { %v1901_v56 = vadd.f32 %v1833_v45, %v7255_v51 }
 0x2d6   : > { %v2513_v20 = vadd.f32 %v2443_v34, %v2337_v3 }
 0x2d7   : > { %v1933_v21 = vadd.f32 %v7252_v61, %v1901_v56  ;;  %5630 = vmatmul.msk.bf16.gmra.mxu0 %vm305_vm1, %v7262_v46  ;;  %5752 = vmatmul.msk.bf16.gmra.mxu1 %vm305_vm1, %v7528_v25 }
 0x2d8   : > { %v2545_v29 = vadd.f32 %v7252_v61, %v2513_v20  ;;  %5776 = vmatmul.msk.bf16.gmra.mxu2 %vm305_vm1, %v7511_v37  ;;  %5802 = vmatmul.msk.bf16.gmra.mxu3 %vm305_vm1, %v7545_v6 }
 0x2d9   : > { %v1965_v52 = vmax.f32 %v1933_v21, 0.0 }
 0x2da   : > { %v2577_v17 = vmax.f32 %v2545_v29, 0.0 }
 0x2db   : > { %v1996_v51 = vadd.f32 %v1995_v8, %v1965_v52  ;;  %v2339_v62 = vpop.f32.mrf.mxu2  ;;  %v2446_v5 = vpop.f32.mrf.mxu3  ;;  %v6575_v52 = vld [vmem:[%s6779_s26 + $0x230] sm:$0xff] }
 0x2dc   : > { %v2608_v7 = vadd.f32 %v2607_v32, %v2577_v17  ;;  %v2340_v2 = vadd.f32 %v2339_v62, %v2234_v19  ;;  %v1835_v46 = vpop.f32.mrf.mxu0  ;;  %v2236_v63 = vpop.f32.mrf.mxu1 }
 0x2dd   : > { %v1902_v31 = vadd.f32 %v1835_v46, %v7259_v48 }
 0x2de   : > { %v2514_v59 = vadd.f32 %v2446_v5, %v2340_v2 }
 0x2df   : > { %v1934_v27 = vadd.f32 %v7252_v61, %v1902_v31 }
 0x2e0   : > { %v2546_v37 = vadd.f32 %v7252_v61, %v2514_v59 }
 0x2e1   : > { %v1966_v40 = vmax.f32 %v1934_v27, 0.0 }
 0x2e2   : > { %v2578_v23 = vmax.f32 %v2546_v37, 0.0 }
 0x2e3   : > { %v1997_v43 = vadd.f32 %v1996_v51, %v1966_v40  ;;  %v2341_v47 = vpop.f32.mrf.mxu2  ;;  %v2448_v12 = vpop.f32.mrf.mxu3 }
 0x2e4   : > { %v2609_v26 = vadd.f32 %v2608_v7, %v2578_v23  ;;  %v2342_v18 = vadd.f32 %v2341_v47, %v2236_v63  ;;  %v1838_v11 = vpop.f32.mrf.mxu0  ;;  %v2239_v0 = vpop.f32.mrf.mxu1  ;;  %v6640_v23 = vld [vmem:[%s8590_s1] sm:$0x30] }
 0x2e5   : > { %v1903_v38 = vadd.f32 %v1838_v11, %v7274_v58 }
 0x2e6   : > { %v2515_v22 = vadd.f32 %v2448_v12, %v2342_v18  ;;  %v7605_v12 = vld [vmem:[%s8591_s2] ss:$0 sm:$0xff] }
 0x2e7   : > { %v1935_v48 = vadd.f32 %v7252_v61, %v1903_v38  ;;  %5631 = vmatmul.msk.bf16.gmra.mxu0 %vm305_vm1, %v7281_v55  ;;  %5753 = vmatmul.msk.bf16.gmra.mxu1 %vm305_vm1, %v7545_v6 }
 0x2e8   : > { %v2547_v54 = vadd.f32 %v7252_v61, %v2515_v22  ;;  %5777 = vmatmul.msk.bf16.gmra.mxu2 %vm305_vm1, %v7528_v25  ;;  %5803 = vmatmul.msk.bf16.gmra.mxu3 %vm305_vm1, %v7562_v33 }
 0x2e9   : > { %v1967_v42 = vmax.f32 %v1935_v48, 0.0 }
 0x2ea   : > { %v2579_v9 = vmax.f32 %v2547_v54, 0.0 }
 0x2eb   : > { %v1998_v58 = vadd.f32 %v1997_v43, %v1967_v42  ;;  %v2344_v41 = vpop.f32.mrf.mxu2  ;;  %v2451_v15 = vpop.f32.mrf.mxu3  ;;  %v6555_v42 = vld [vmem:[%s6779_s26 + $0x1a8] sm:$0xff] }
 0x2ec   : > { %v2610_v39 = vadd.f32 %v2609_v26, %v2579_v9  ;;  %v2345_v30 = vadd.f32 %v2344_v41, %v2239_v0  ;;  %v1840_v55 = vpop.f32.mrf.mxu0  ;;  %v2241_v13 = vpop.f32.mrf.mxu1  ;;  %v6576_v9 = vld [vmem:[%s6779_s26 + $0x238] sm:$0xff] }
 0x2ed   : > { %v1904_v50 = vadd.f32 %v1840_v55, %v7278_v10  ;;  %v6621_v55 = vld [vmem:[%s8590_s1 + $0x10] sm:$0x30] }
 0x2ee   : > { %v2516_v8 = vadd.f32 %v2451_v15, %v2345_v30  ;;  %v6132_v30 = vld [vmem:[%s8590_s1 + $0x10] sm:$0xf] }
 0x2ef   : > { %v1936_v4 = vadd.f32 %v7252_v61, %v1904_v50 }
 0x2f0   : > { %v2548_v25 = vadd.f32 %v7252_v61, %v2516_v8  ;;  %v6133_v8 = vor.u32 %v6621_v55, %v6132_v30 }
 0x2f1   : > { %v1968_v34 = vmax.f32 %v1936_v4, 0.0  ;;  %v6619_v4 = vld [vmem:[%s8590_s1] sm:$0x30] }
 0x2f2   : > { %v2580_v32 = vmax.f32 %v2548_v25, 0.0 }
 0x2f3   : > { %v1999_v3 = vadd.f32 %v1998_v58, %v1968_v34  ;;  %v2346_v45 = vpop.f32.mrf.mxu2  ;;  %v2453_v19 = vpop.f32.mrf.mxu3 }
 0x2f4   : > { %v2611_v56 = vadd.f32 %v2610_v39, %v2580_v32  ;;  %v2347_v20 = vadd.f32 %v2346_v45, %v2241_v13  ;;  %v1843_v21 = vpop.f32.mrf.mxu0  ;;  %v2244_v29 = vpop.f32.mrf.mxu1  ;;  %v6106_v13 = vld [vmem:[%s8590_s1] sm:$0xf] }
 0x2f5   : > { %v1905_v17 = vadd.f32 %v1843_v21, %v7293_v53  ;;  %v6107_v34 = vor.u32 %v6619_v4, %v6106_v13 }
 0x2f6   : > { %v2517_v51 = vadd.f32 %v2453_v19, %v2347_v20 }
 0x2f7   : > { %v1937_v10 = vadd.f32 %v7252_v61, %v1905_v17  ;;  %5632 = vmatmul.msk.bf16.gmra.mxu0 %vm305_vm1, %v7315_v14  ;;  %5754 = vmatmul.msk.bf16.gmra.mxu1 %vm305_vm1, %v7562_v33  ;;  %v6254_v14 = vld [vmem:[%s8590_s1 + $0x8] sm:$0xf] }
 0x2f8   : > { %v2549_v62 = vadd.f32 %v7252_v61, %v2517_v51  ;;  %5778 = vmatmul.msk.bf16.gmra.mxu2 %vm305_vm1, %v7545_v6  ;;  %5804 = vmatmul.msk.bf16.gmra.mxu3 %vm305_vm1, %v6575_v52  ;;  %v6641_v61 = vld [vmem:[%s8590_s1 + $0x8] sm:$0x30]  ;;  %v6278_v6 = vld [vmem:[%s8590_s1] sm:$0xf] }
 0x2f9   : > { %v1969_v5 = vmax.f32 %v1937_v10, 0.0  ;;  %v6255_v40 = vor.u32 %v6641_v61, %v6254_v14  ;;  %v6279_v47 = vor.u32 %v6640_v23, %v6278_v6  ;;  %v8646_v23 = vld [vmem:[#allocation2_spill] sm:$0xff] }
 0x2fa   : > { %v2581_v7 = vmax.f32 %v2549_v62, 0.0 }
 0x2fb   : > { %v2000_v2 = vadd.f32 %v1999_v3, %v1969_v5  ;;  %v2349_v53 = vpop.f32.mrf.mxu2  ;;  %v2456_v46 = vpop.f32.mrf.mxu3  ;;  %v4042_v18 = vsel %vm354_vm0, %v6255_v40, 0  ;;  %v4147_v11 = vsel %vm354_vm0, %v6279_v47, 0  ;;  %v3641_v3 = vsel %vm354_vm0, %v6133_v8, 0  ;;  %v7641_v40 = vld [vmem:[%s6779_s26 + $0x250] sm:$0xff] }
 0x2fc   : > { %v2612_v63 = vadd.f32 %v2611_v56, %v2581_v7  ;;  %v2350_v31 = vadd.f32 %v2349_v53, %v2244_v29  ;;  %v1845_v59 = vpop.f32.mrf.mxu0  ;;  %v2246_v27 = vpop.f32.mrf.mxu1  ;;  %4051 = vmatpush.bf16.msra.mxu2 %v4042_v18  ;;  %4156 = vmatpush.bf16.msra.mxu3 %v4147_v11 }
 0x2fd   : > { %v1906_v37 = vadd.f32 %v1845_v59, %v7312_v1  ;;  %3650 = vmatpush.bf16.msra.mxu1 %v3641_v3  ;;  %v6581_v59 = vld [vmem:[%s6779_s26 + $0x248] sm:$0xff] }
 0x2fe   : > { %v2518_v43 = vadd.f32 %v2456_v46, %v2350_v31 }
 0x2ff   : > { %v1938_v26 = vadd.f32 %v7605_v12, %v1906_v37 }
 0x300   : > { %v2550_v1 = vadd.f32 %v7605_v12, %v2518_v43 }
 0x301   : > { %v1970_v0 = vmax.f32 %v1938_v26, 0.0 }
 0x302   : > { %v2582_v38 = vmax.f32 %v2550_v1, 0.0 }
 0x303   : > { %v2001_v22 = vadd.f32 %v2000_v2, %v1970_v0  ;;  %v2351_v48 = vpop.f32.mrf.mxu2  ;;  %v2458_v54 = vpop.f32.mrf.mxu3 }
 0x304   : > { %v2613_v58 = vadd.f32 %v2612_v63, %v2582_v38  ;;  %v2352_v41 = vadd.f32 %v2351_v48, %v2246_v27  ;;  %v1848_v15 = vpop.f32.mrf.mxu0  ;;  %v2249_v39 = vpop.f32.mrf.mxu1  ;;  %v6580_v27 = vld [vmem:[%s6779_s26 + $0x240] sm:$0xff] }
 0x305   : > { %v1907_v50 = vadd.f32 %v1848_v15, %v7340_v28  ;;  %v3534_v28 = vsel %vm354_vm0, %v6107_v34, 0 }
 0x306   : > { %v2519_v25 = vadd.f32 %v2458_v54, %v2352_v41  ;;  %3543 = vmatpush.bf16.msra.mxu0 %v3534_v28  ;;  %v7662_v28 = vld [vmem:[%s6779_s26 + $0x2e0] sm:$0xff] }
 0x307   : > { %v1939_v32 = vadd.f32 %v7605_v12, %v1907_v50  ;;  %5633 = vmatmul.msk.bf16.gmra.mxu0 %vm305_vm1, %v6555_v42  ;;  %5755 = vmatmul.msk.bf16.gmra.mxu1 %vm305_vm1, %v6575_v52 }
 0x308   : > { %v2551_v45 = vadd.f32 %v7605_v12, %v2519_v25  ;;  %5779 = vmatmul.msk.bf16.gmra.mxu2 %vm305_vm1, %v7562_v33  ;;  %5805 = vmatmul.msk.bf16.gmra.mxu3 %vm305_vm1, %v6576_v9 }
 0x309   : > { %v1971_v19 = vmax.f32 %v1939_v32, 0.0 }
 0x30a   : > { %v2583_v56 = vmax.f32 %v2551_v45, 0.0  ;;  %v7659_v45 = vld [vmem:[%s6779_s26 + $0x258] sm:$0xff] }
 0x30b   : > { %v2002_v20 = vadd.f32 %v2001_v22, %v1971_v19  ;;  %v2354_v21 = vpop.f32.mrf.mxu2  ;;  %v2461_v29 = vpop.f32.mrf.mxu3  ;;  %v8648_v19 = vld [vmem:[#allocation3_spill] sm:$0xff] }
 0x30c   : > { %v2614_v52 = vadd.f32 %v2613_v58, %v2583_v56  ;;  %v2355_v17 = vadd.f32 %v2354_v21, %v2249_v39  ;;  %v1850_v51 = vpop.f32.mrf.mxu0  ;;  %v2251_v10 = vpop.f32.mrf.mxu1  ;;  %v8647_v58 = vld [vmem:[#allocation4_spill] sm:$0xff] }
 0x30d   : > { %v1908_v33 = vadd.f32 %v1850_v51, %v7345_v35  ;;  %v7644_v35 = vld [vmem:[%s6779_s26 + $0x2d8] sm:$0xff] }
 0x30e   : > { %v2520_v62 = vadd.f32 %v2461_v29, %v2355_v17 }
 0x30f   : > { %v1940_v5 = vadd.f32 %v7605_v12, %v1908_v33 }
 0x310   : > { %v2552_v7 = vadd.f32 %v7605_v12, %v2520_v62 }
 0x311   : > { %v1972_v2 = vmax.f32 %v1940_v5, 0.0 }
 0x312   : > { %v2584_v53 = vmax.f32 %v2552_v7, 0.0 }
 0x313   : > { %v2003_v46 = vadd.f32 %v2002_v20, %v1972_v2  ;;  %v2356_v63 = vpop.f32.mrf.mxu2  ;;  %v2463_v31 = vpop.f32.mrf.mxu3 }
 0x314   : > { %v2615_v14 = vadd.f32 %v2614_v52, %v2584_v53  ;;  %v2357_v61 = vadd.f32 %v2356_v63, %v2251_v10  ;;  %v1853_v6 = vpop.f32.mrf.mxu0  ;;  %v2254_v37 = vpop.f32.mrf.mxu1  ;;  %v8649_v53 = vld [vmem:[#allocation5_spill] sm:$0xff] }
 0x315   : > { %v1909_v43 = vadd.f32 %v1853_v6, %v8646_v23 }
 0x316   : > { %v2521_v47 = vadd.f32 %v2463_v31, %v2357_v61 }
 0x317   : > { %v1941_v26 = vadd.f32 %v7605_v12, %v1909_v43  ;;  %5912 = vmatmul.msk.bf16.vlgmr.msrb.gmra.mxu0 %vm305_vm1, %v6581_v59  ;;  %5936 = vmatmul.msk.bf16.vlgmr.msrb.gmra.mxu1 %vm305_vm1, %v6580_v27 }
 0x318   : > { %v2553_v18 = vadd.f32 %v7605_v12, %v2521_v47  ;;  %5962 = vmatmul.msk.bf16.vlgmr.msrb.gmra.mxu2 %vm305_vm1, %v7641_v40  ;;  %6084 = vmatmul.msk.bf16.vlgmr.msrb.gmra.mxu3 %vm305_vm1, %v7644_v35 }
 0x319   : > { %v1973_v1 = vmax.f32 %v1941_v26, 0.0 }
 0x31a   : > { %v2585_v11 = vmax.f32 %v2553_v18, 0.0  ;;  %v7678_v18 = vld [vmem:[%s6779_s26 + $0x260] sm:$0xff] }
 0x31b   : > { %v2004_v0 = vadd.f32 %v2003_v46, %v1973_v1  ;;  %v2359_v38 = vpop.f32.mrf.mxu2  ;;  %v2466_v22 = vpop.f32.mrf.mxu3  ;;  %v7681_v1 = vld [vmem:[%s6779_s26 + $0x2e8] sm:$0xff] }
 0x31c   : > { %v2616_v48 = vadd.f32 %v2615_v14, %v2585_v11  ;;  %v2360_v54 = vadd.f32 %v2359_v38, %v2254_v37  ;;  %v1855_v42 = vpop.f32.mrf.mxu0  ;;  %v2256_v9 = vpop.f32.mrf.mxu1  ;;  %v8650_v11 = vld [vmem:[#allocation7_spill] sm:$0xff] }
 0x31d   : > { %v1910_v41 = vadd.f32 %v1855_v42, %v8647_v58 }
 0x31e   : > { %v2522_v15 = vadd.f32 %v2466_v22, %v2360_v54 }
 0x31f   : > { %v1942_v39 = vadd.f32 %v7605_v12, %v1910_v41 }
 0x320   : > { %v2554_v30 = vadd.f32 %v7605_v12, %v2522_v15 }
 0x321   : > { %v1974_v55 = vmax.f32 %v1942_v39, 0.0 }
 0x322   : > { %v2586_v13 = vmax.f32 %v2554_v30, 0.0 }
 0x323   : > { %v2005_v50 = vadd.f32 %v2004_v0, %v1974_v55  ;;  %v2361_v8 = vpop.f32.mrf.mxu2  ;;  %v2468_v4 = vpop.f32.mrf.mxu3 }
 0x324   : > { %v2617_v25 = vadd.f32 %v2616_v48, %v2586_v13  ;;  %v2362_v34 = vadd.f32 %v2361_v8, %v2256_v9  ;;  %v1858_v32 = vpop.f32.mrf.mxu0  ;;  %v2259_v3 = vpop.f32.mrf.mxu1 }
 0x325   : > { %v1911_v56 = vadd.f32 %v1858_v32, %v8648_v19 }
 0x326   : > { %v2523_v20 = vadd.f32 %v2468_v4, %v2362_v34 }
 0x327   : > { %v1943_v21 = vadd.f32 %v7605_v12, %v1911_v56  ;;  %5913 = vmatmul.msk.bf16.gmra.mxu0 %vm305_vm1, %v7641_v40  ;;  %5937 = vmatmul.msk.bf16.gmra.mxu1 %vm305_vm1, %v6581_v59 }
 0x328   : > { %v2555_v29 = vadd.f32 %v7605_v12, %v2523_v20  ;;  %5963 = vmatmul.msk.bf16.gmra.mxu2 %vm305_vm1, %v7659_v45  ;;  %6085 = vmatmul.msk.bf16.gmra.mxu3 %vm305_vm1, %v7662_v28 }
 0x329   : > { %v1975_v52 = vmax.f32 %v1943_v21, 0.0 }
 0x32a   : > { %v2587_v17 = vmax.f32 %v2555_v29, 0.0 }
 0x32b   : > { %v2006_v51 = vadd.f32 %v2005_v50, %v1975_v52  ;;  %v2364_v10 = vpop.f32.mrf.mxu2  ;;  %v2471_v33 = vpop.f32.mrf.mxu3  ;;  %v6585_v52 = vld [vmem:[%s6779_s26 + $0x268] sm:$0xff] }
 0x32c   : > { %v2618_v62 = vadd.f32 %v2617_v25, %v2587_v17  ;;  %v2365_v5 = vadd.f32 %v2364_v10, %v2259_v3  ;;  %v1860_v7 = vpop.f32.mrf.mxu0  ;;  %v2261_v2 = vpop.f32.mrf.mxu1  ;;  %v7701_v17 = vld [vmem:[%s6779_s26 + $0x2f0] sm:$0xff] }
 0x32d   : > { %v1912_v46 = vadd.f32 %v1860_v7, %v8649_v53 }
 0x32e   : > { %v2524_v63 = vadd.f32 %v2471_v33, %v2365_v5 }
 0x32f   : > { %v1944_v31 = vadd.f32 %v7605_v12, %v1912_v46 }
 0x330   : > { %v2556_v59 = vadd.f32 %v7605_v12, %v2524_v63 }
 0x331   : > { %v1976_v27 = vmax.f32 %v1944_v31, 0.0 }
 0x332   : > { %v2588_v14 = vmax.f32 %v2556_v59, 0.0 }
 0x333   : > { %v2007_v61 = vadd.f32 %v2006_v51, %v1976_v27  ;;  %v2366_v6 = vpop.f32.mrf.mxu2  ;;  %v2473_v37 = vpop.f32.mrf.mxu3  ;;  %v8652_v51 = vld [vmem:[#allocation8_spill] sm:$0xff]  ;;  %v8653_v27 = vld [vmem:[#allocation10_spill] sm:$0xff] }
 0x334   : > { %v2619_v23 = vadd.f32 %v2618_v62, %v2588_v14  ;;  %v2367_v43 = vadd.f32 %v2366_v6, %v2261_v2  ;;  %v1863_v47 = vpop.f32.mrf.mxu0  ;;  %v2264_v26 = vpop.f32.mrf.mxu1 }
 0x335   : > { %v1913_v0 = vadd.f32 %v1863_v47, %v8650_v11  ;;  %v6586_v11 = vld [vmem:[%s6779_s26 + $0x270] sm:$0xff] }
 0x336   : > { %v2525_v38 = vadd.f32 %v2473_v37, %v2367_v43 }
 0x337   : > { %v1945_v22 = vadd.f32 %v7605_v12, %v1913_v0  ;;  %5914 = vmatmul.msk.bf16.gmra.mxu0 %vm305_vm1, %v7659_v45  ;;  %5938 = vmatmul.msk.bf16.gmra.mxu1 %vm305_vm1, %v7641_v40  ;;  %v8651_v40 = vld [vmem:[#allocation6_spill] sm:$0xff]  ;;  %v7729_v0 = vld [vmem:[%s6779_s26 + $0x2f8] sm:$0xff] }
 0x338   : > { %v2557_v48 = vadd.f32 %v7605_v12, %v2525_v38  ;;  %5964 = vmatmul.msk.bf16.gmra.mxu2 %vm305_vm1, %v7678_v18  ;;  %6086 = vmatmul.msk.bf16.gmra.mxu3 %vm305_vm1, %v7681_v1  ;;  %v8654_v38 = vld [vmem:[#allocation13_spill] sm:$0xff] }
 0x339   : > { %v1977_v54 = vmax.f32 %v1945_v22, 0.0 }
 0x33a   : > { %v2589_v42 = vmax.f32 %v2557_v48, 0.0 }
 0x33b   : > { %v2008_v9 = vadd.f32 %v2007_v61, %v1977_v54  ;;  %v2369_v58 = vpop.f32.mrf.mxu2  ;;  %v2476_v41 = vpop.f32.mrf.mxu3 }
 0x33c   : > { %v2620_v15 = vadd.f32 %v2619_v23, %v2589_v42  ;;  %v2370_v39 = vadd.f32 %v2369_v58, %v2264_v26  ;;  %v1865_v30 = vpop.f32.mrf.mxu0  ;;  %v2266_v55 = vpop.f32.mrf.mxu1 }
 0x33d   : > { %v1914_v13 = vadd.f32 %v1865_v30, %v8651_v40 }
 0x33e   : > { %v2526_v50 = vadd.f32 %v2476_v41, %v2370_v39  ;;  %v8655_v39 = vld [vmem:[#allocation19_spill] sm:$0xff] }
 0x33f   : > { %v1946_v8 = vadd.f32 %v7605_v12, %v1914_v13 }
 0x340   : > { %v2558_v4 = vadd.f32 %v7605_v12, %v2526_v50 }
 0x341   : > { %v1978_v25 = vmax.f32 %v1946_v8, 0.0 }
 0x342   : > { %v2590_v34 = vmax.f32 %v2558_v4, 0.0 }
 0x343   : > { %v2009_v32 = vadd.f32 %v2008_v9, %v1978_v25  ;;  %v2371_v3 = vpop.f32.mrf.mxu2  ;;  %v2478_v19 = vpop.f32.mrf.mxu3  ;;  %v7742_v25 = vld [vmem:[%s6779_s26 + $0x278] sm:$0xff] }
 0x344   : > { %v2621_v56 = vadd.f32 %v2620_v15, %v2590_v34  ;;  %v2372_v20 = vadd.f32 %v2371_v3, %v2266_v55  ;;  %v1868_v21 = vpop.f32.mrf.mxu0  ;;  %v7697_v29 = vpop.f32.mrf.mxu1  ;;  %v7745_v34 = vld [vmem:[%s6779_s26 + $0x300] sm:$0xff] }
 0x345   : > { %v1915_v10 = vadd.f32 %v1868_v21, %v8652_v51 }
 0x346   : > { %v2527_v33 = vadd.f32 %v2478_v19, %v2372_v20 }
 0x347   : > { %v1947_v62 = vadd.f32 %v7605_v12, %v1915_v10  ;;  %5915 = vmatmul.msk.bf16.gmra.mxu0 %vm305_vm1, %v7678_v18  ;;  %5939 = vmatmul.msk.bf16.gmra.mxu1 %vm305_vm1, %v7659_v45 }
 0x348   : > { %v2559_v5 = vadd.f32 %v7605_v12, %v2527_v33  ;;  %5965 = vmatmul.msk.bf16.gmra.mxu2 %vm305_vm1, %v6585_v52  ;;  %6087 = vmatmul.msk.bf16.gmra.mxu3 %vm305_vm1, %v7701_v17 }
 0x349   : > { %v1979_v7 = vmax.f32 %v1947_v62, 0.0 }
 0x34a   : > { %v2591_v2 = vmax.f32 %v2559_v5, 0.0 }
 0x34b   : > { %v2010_v53 = vadd.f32 %v2009_v32, %v1979_v7  ;;  %v7713_v46 = vpop.f32.mrf.mxu2  ;;  %v7715_v63 = vpop.f32.mrf.mxu3 }
 0x34c   : > { %v7717_v31 = vadd.f32 %v2621_v56, %v2591_v2  ;;  %v1870_v59 = vpop.f32.mrf.mxu0  ;;  %v7719_v45 = vpop.f32.mrf.mxu1 }
 0x34d   : > { %v1916_v14 = vadd.f32 %v1870_v59, %v8653_v27  ;;  %v7758_v59 = vld [vmem:[%s6779_s26 + $0x280] sm:$0xff]  ;;  %v7761_v27 = vld [vmem:[%s6779_s26 + $0x308] sm:$0xff] }
 0x34f   : > { %v1948_v61 = vadd.f32 %v7605_v12, %v1916_v14 }
 0x351   : > { %v1980_v6 = vmax.f32 %v1948_v61, 0.0 }
 0x353   : > { %v2011_v37 = vadd.f32 %v2010_v53, %v1980_v6  ;;  %v2376_v23 = vpop.f32.mrf.mxu2  ;;  %v7723_v43 = vpop.f32.mrf.mxu3 }
 0x354   : > { %v1873_v47 = vpop.f32.mrf.mxu0  ;;  %v7725_v26 = vpop.f32.mrf.mxu1 }
 0x355   : > { %v1917_v22 = vadd.f32 %v1873_v47, %v8654_v38 }
 0x357   : > { %v1949_v48 = vadd.f32 %v7605_v12, %v1917_v22  ;;  %5916 = vmatmul.msk.bf16.gmra.mxu0 %vm305_vm1, %v6585_v52  ;;  %5940 = vmatmul.msk.bf16.gmra.mxu1 %vm305_vm1, %v7678_v18 }
 0x358   : > { %5966 = vmatmul.msk.bf16.gmra.mxu2 %vm305_vm1, %v6586_v11  ;;  %6088 = vmatmul.msk.bf16.gmra.mxu3 %vm305_vm1, %v7729_v0 }
 0x359   : > { %v1981_v54 = vmax.f32 %v1949_v48, 0.0 }
 0x35b   : > { %v2012_v42 = vadd.f32 %v2011_v37, %v1981_v54  ;;  %v2379_v9 = vpop.f32.mrf.mxu2  ;;  %v2486_v58 = vpop.f32.mrf.mxu3  ;;  %v2377_v37 = vadd.f32 %v2376_v23, %v7719_v45 }
 0x35c   : > { %v1875_v41 = vpop.f32.mrf.mxu0  ;;  %v2276_v15 = vpop.f32.mrf.mxu1 }
 0x35d   : > { %v1918_v30 = vadd.f32 %v1875_v41, %v8655_v39  ;;  %v2529_v41 = vadd.f32 %v7723_v43, %v2377_v37  ;;  %v7786_v43 = vld [vmem:[%s6779_s26 + $0x310] sm:$0xff] }
 0x35f   : > { %v1950_v55 = vadd.f32 %v7605_v12, %v1918_v30 }
 0x361   : > { %v1982_v40 = vmax.f32 %v1950_v55, 0.0  ;;  %v2561_v55 = vadd.f32 %v7605_v12, %v2529_v41 }
 0x363   : > { %v2013_v13 = vadd.f32 %v2012_v42, %v1982_v40  ;;  %v2381_v18 = vpop.f32.mrf.mxu2  ;;  %v2488_v50 = vpop.f32.mrf.mxu3  ;;  %v2380_v42 = vadd.f32 %v2379_v9, %v7725_v26 }
 0x364   : > { %v1878_v8 = vpop.f32.mrf.mxu0  ;;  %v2279_v4 = vpop.f32.mrf.mxu1 }
 0x365   : > { %v1919_v32 = vadd.f32 %v1878_v8, %v7419_v44  ;;  %v2530_v39 = vadd.f32 %v2486_v58, %v2380_v42 }
 0x367   : > { %v1951_v3 = vadd.f32 %v7605_v12, %v1919_v32  ;;  %5917 = vmatmul.msk.bf16.gmra.mxu0 %vm305_vm1, %v6586_v11  ;;  %5941 = vmatmul.msk.bf16.gmra.mxu1 %vm305_vm1, %v6585_v52  ;;  %v7783_v32 = vld [vmem:[%s6779_s26 + $0x288] sm:$0xff] }
 0x368   : > { %5967 = vmatmul.msk.bf16.gmra.mxu2 %vm305_vm1, %v7742_v25  ;;  %6089 = vmatmul.msk.bf16.gmra.mxu3 %vm305_vm1, %v7745_v34 }
 0x369   : > { %v1983_v19 = vmax.f32 %v1951_v3, 0.0 }
 0x36b   : > { %v2014_v56 = vadd.f32 %v2013_v13, %v1983_v19  ;;  %v2384_v20 = vpop.f32.mrf.mxu2  ;;  %v2491_v21 = vpop.f32.mrf.mxu3  ;;  %v2593_v19 = vmax.f32 %v2561_v55, 0.0 }
 0x36c   : > { %v1880_v51 = vpop.f32.mrf.mxu0  ;;  %v2281_v44 = vpop.f32.mrf.mxu1  ;;  %v2385_v30 = vadd.f32 %v2384_v20, %v2279_v4 }
 0x36d   : > { %v1920_v10 = vadd.f32 %v1880_v51, %v7424_v16  ;;  %v2375_v16 = vadd.f32 %v7713_v46, %v7697_v29  ;;  %v2382_v46 = vadd.f32 %v2381_v18, %v2276_v15  ;;  %v2562_v18 = vadd.f32 %v7605_v12, %v2530_v39 }
 0x36e   : > { %v2532_v58 = vadd.f32 %v2491_v21, %v2385_v30 }
 0x36f   : > { %v1952_v33 = vadd.f32 %v7605_v12, %v1920_v10  ;;  %v2528_v54 = vadd.f32 %v7715_v63, %v2375_v16 }
 0x370   : > { %v2564_v10 = vadd.f32 %v7605_v12, %v2532_v58 }
 0x371   : > { %v1984_v62 = vmax.f32 %v1952_v33, 0.0  ;;  %v2560_v45 = vadd.f32 %v7605_v12, %v2528_v54 }
 0x373   : > { %v2015_v52 = vadd.f32 %v2014_v56, %v1984_v62  ;;  %v2386_v5 = vpop.f32.mrf.mxu2  ;;  %v2493_v7 = vpop.f32.mrf.mxu3  ;;  %v2592_v3 = vmax.f32 %v2560_v45, 0.0 }
 0x374   : > { %v1883_v2 = vpop.f32.mrf.mxu0  ;;  %v2284_v53 = vpop.f32.mrf.mxu1  ;;  %v2387_v8 = vadd.f32 %v2386_v5, %v2281_v44  ;;  %v2594_v44 = vmax.f32 %v2562_v18, 0.0 }
 0x375   : > { %v1921_v14 = vadd.f32 %v1883_v2, %v7442_v36 }
 0x376   : > { %v2533_v20 = vadd.f32 %v2493_v7, %v2387_v8 }
 0x377   : > { %v1953_v61 = vadd.f32 %v7605_v12, %v1921_v14  ;;  %5918 = vmatmul.msk.bf16.gmra.mxu0 %vm305_vm1, %v7742_v25  ;;  %5942 = vmatmul.msk.bf16.gmra.mxu1 %vm305_vm1, %v6586_v11 }
 0x378   : > { %5968 = vmatmul.msk.bf16.gmra.mxu2 %vm305_vm1, %v7758_v59  ;;  %6090 = vmatmul.msk.bf16.gmra.mxu3 %vm305_vm1, %v7761_v27  ;;  %v2565_v7 = vadd.f32 %v7605_v12, %v2533_v20 }
 0x379   : > { %v1985_v6 = vmax.f32 %v1953_v61, 0.0 }
 0x37b   : > { %v2016_v36 = vadd.f32 %v2015_v52, %v1985_v6  ;;  %v2389_v47 = vpop.f32.mrf.mxu2  ;;  %v2496_v38 = vpop.f32.mrf.mxu3 }
 0x37c   : > { %v1885_v22 = vpop.f32.mrf.mxu0  ;;  %v2286_v48 = vpop.f32.mrf.mxu1  ;;  %v2390_v4 = vadd.f32 %v2389_v47, %v2284_v53 }
 0x37d   : > { %v1922_v11 = vadd.f32 %v1885_v22, %v7451_v57  ;;  %v2531_v57 = vadd.f32 %v2488_v50, %v2382_v46 }
 0x37e   : > { %v2534_v33 = vadd.f32 %v2496_v38, %v2390_v4 }
 0x37f   : > { %v1954_v29 = vadd.f32 %v7605_v12, %v1922_v11  ;;  %v2563_v50 = vadd.f32 %v7605_v12, %v2531_v57 }
 0x381   : > { %v1986_v23 = vmax.f32 %v1954_v29, 0.0  ;;  %v2595_v2 = vmax.f32 %v2563_v50, 0.0 }
 0x383   : > { %v2017_v40 = vadd.f32 %v2016_v36, %v1986_v23  ;;  %v2391_v63 = vpop.f32.mrf.mxu2  ;;  %v2498_v13 = vpop.f32.mrf.mxu3  ;;  %v2566_v36 = vadd.f32 %v7605_v12, %v2534_v33 }
 0x384   : > { %v1888_v26 = vpop.f32.mrf.mxu0  ;;  %v2289_v9 = vpop.f32.mrf.mxu1  ;;  %v2392_v51 = vadd.f32 %v2391_v63, %v2286_v48  ;;  %v2597_v48 = vmax.f32 %v2565_v7, 0.0  ;;  %v7809_v63 = vld [vmem:[%s6779_s26 + $0x290] sm:$0xff] }
 0x385   : > { %v1923_v15 = vadd.f32 %v1888_v26, %v7469_v24  ;;  %v2623_v24 = vadd.f32 %v7717_v31, %v2592_v3  ;;  %v2596_v31 = vmax.f32 %v2564_v10, 0.0  ;;  %v2598_v41 = vmax.f32 %v2566_v36, 0.0  ;;  %v7832_v36 = vld [vmem:[%s6779_s26 + $0x320] sm:$0xff] }
 0x386   : > { %v2535_v53 = vadd.f32 %v2498_v13, %v2392_v51  ;;  %v7812_v13 = vld [vmem:[%s6779_s26 + $0x318] sm:$0xff] }
 0x387   : > { %v1955_v56 = vadd.f32 %v7605_v12, %v1923_v15  ;;  %5919 = vmatmul.msk.bf16.gmra.mxu0 %vm305_vm1, %v7758_v59  ;;  %5943 = vmatmul.msk.bf16.gmra.mxu1 %vm305_vm1, %v7742_v25  ;;  %v2624_v62 = vadd.f32 %v2623_v24, %v2593_v19 }
 0x388   : > { %5969 = vmatmul.msk.bf16.gmra.mxu2 %vm305_vm1, %v7783_v32  ;;  %6091 = vmatmul.msk.bf16.gmra.mxu3 %vm305_vm1, %v7786_v43  ;;  %v2567_v54 = vadd.f32 %v7605_v12, %v2535_v53 }
 0x389   : > { %v1987_v21 = vmax.f32 %v1955_v56, 0.0  ;;  %v2625_v37 = vadd.f32 %v2624_v62, %v2594_v44 }
 0x38a   : > { %v2599_v39 = vmax.f32 %v2567_v54, 0.0 }
 0x38b   : > { %v2018_v52 = vadd.f32 %v2017_v40, %v1987_v21  ;;  %v2394_v25 = vpop.f32.mrf.mxu2  ;;  %v2501_v5 = vpop.f32.mrf.mxu3  ;;  %v2626_v22 = vadd.f32 %v2625_v37, %v2595_v2 }
 0x38c   : > { %v2395_v14 = vadd.f32 %v2394_v25, %v2289_v9  ;;  %v1890_v61 = vpop.f32.mrf.mxu0  ;;  %v2291_v16 = vpop.f32.mrf.mxu1 }
 0x38d   : > { %v1924_v6 = vadd.f32 %v1890_v61, %v7473_v49  ;;  %v2627_v42 = vadd.f32 %v2626_v22, %v2596_v31  ;;  %v6591_v31 = vld [vmem:[%s6779_s26 + $0x298] sm:$0xff] }
 0x38e   : > { %v2536_v47 = vadd.f32 %v2501_v5, %v2395_v14 }
 0x38f   : > { %v1956_v38 = vadd.f32 %v7605_v12, %v1924_v6  ;;  %v2628_v23 = vadd.f32 %v2627_v42, %v2597_v48 }
 0x390   : > { %v2568_v29 = vadd.f32 %v7605_v12, %v2536_v47 }
 0x391   : > { %v1988_v11 = vmax.f32 %v1956_v38, 0.0  ;;  %v2629_v26 = vadd.f32 %v2628_v23, %v2598_v41 }
 0x392   : > { %v2600_v9 = vmax.f32 %v2568_v29, 0.0 }
 0x393   : > { %v2019_v46 = vadd.f32 %v2018_v52, %v1988_v11  ;;  %v2396_v49 = vpop.f32.mrf.mxu2  ;;  %v2503_v45 = vpop.f32.mrf.mxu3  ;;  %v2630_v18 = vadd.f32 %v2629_v26, %v2599_v39 }
 0x394   : > { %v2397_v30 = vadd.f32 %v2396_v49, %v2291_v16  ;;  %v2827_v55 = vpop.f32.mrf.mxu0  ;;  %v2932_v40 = vpop.f32.mrf.mxu1 }
 0x395   : > { %v2020_v57 = vrot.slane %v2019_v46, 4  ;;  %v2933_v8 = vadd.f32 %v2932_v40, %v2827_v55  ;;  %v2631_v19 = vadd.f32 %v2630_v18, %v2600_v9 }
 0x396   : > { %v2537_v3 = vadd.f32 %v2503_v45, %v2397_v30 }
 0x397   : > { %v2021_v15 = vadd.f32 %v2020_v57, %v2019_v46  ;;  %5920 = vmatmul.msk.bf16.gmra.mxu0 %vm305_vm1, %v7783_v32  ;;  %5944 = vmatmul.msk.bf16.gmra.mxu1 %vm305_vm1, %v7758_v59 }
 0x398   : > { %v2569_v58 = vadd.f32 %v7605_v12, %v2537_v3  ;;  %5970 = vmatmul.msk.bf16.gmra.mxu2 %vm305_vm1, %v7809_v63  ;;  %6092 = vmatmul.msk.bf16.gmra.mxu3 %vm305_vm1, %v7812_v13  ;;  %v6592_v3 = vld [vmem:[%s6779_s26 + $0x2a0] sm:$0xff] }
 0x399   : > { %v2022_v4 = vrot.slane %v2021_v15, 2 }
 0x39a   : > { %v2601_v56 = vmax.f32 %v2569_v58, 0.0 }
 0x39b   : > { %v2023_v50 = vadd.f32 %v2022_v4, %v2021_v15  ;;  %v3039_v20 = vpop.f32.mrf.mxu2  ;;  %v7823_v51 = vpop.f32.mrf.mxu3  ;;  %v7851_v15 = vld [vmem:[%s6779_s26 + $0x328] sm:$0xff] }
 0x39c   : > { %v2632_v24 = vadd.f32 %v2631_v19, %v2601_v56  ;;  %v3119_v21 = vadd.f32 %v3039_v20, %v2933_v8  ;;  %v2829_v59 = vpop.f32.mrf.mxu0  ;;  %v2934_v44 = vpop.f32.mrf.mxu1 }
 0x39d   : > { %v2024_v10 = vrot.slane %v2023_v50, 1  ;;  %v2935_v33 = vadd.f32 %v2934_v44, %v2829_v59 }
 0x39e   : > { %v2633_v62 = vrot.slane %v2632_v24, 4  ;;  %v3151_v61 = vadd.f32 %v7605_v12, %v3119_v21 }
 0x39f   : > { %v2025_v52 = vadd.f32 %v2024_v10, %v2023_v50 }
 0x3a0   : > { %v2634_v25 = vadd.f32 %v2633_v62, %v2632_v24  ;;  %v3183_v54 = vmax.f32 %v3151_v61, 0.0 }
 0x3a1   : > { %v2026_v5 = vmul.f32 %v2025_v52, %v7174_v60 }
 0x3a2   : > { %v2635_v2 = vrot.slane %v2634_v25, 2 }
 0x3a3   : > { %2027 = vst [vmem:[%s7180_s23 + $0x2] sm:$0x1] %v2026_v5  ;;  %v3041_v7 = vpop.f32.mrf.mxu2  ;;  %v7827_v53 = vpop.f32.mrf.mxu3 }
 0x3a4   : > { %v2636_v14 = vadd.f32 %v2635_v2, %v2634_v25  ;;  %v3120_v16 = vadd.f32 %v3041_v7, %v2935_v33  ;;  %v2832_v6 = vpop.f32.mrf.mxu0  ;;  %v2937_v37 = vpop.f32.mrf.mxu1  ;;  %v6593_v2 = vld [vmem:[%s6779_s26 + $0x2a8] sm:$0xff]  ;;  %v7867_v7 = vld [vmem:[%s6779_s26 + $0x330] sm:$0xff] }
 0x3a5   : > { %v2938_v47 = vadd.f32 %v2937_v37, %v2832_v6 }
 0x3a6   : > { %v2637_v38 = vrot.slane %v2636_v14, 1  ;;  %v3152_v22 = vadd.f32 %v7605_v12, %v3120_v16 }
 0x3a7   : > { %5921 = vmatmul.msk.bf16.gmra.mxu0 %vm305_vm1, %v7809_v63  ;;  %5945 = vmatmul.msk.bf16.gmra.mxu1 %vm305_vm1, %v7783_v32 }
 0x3a8   : > { %v2638_v48 = vadd.f32 %v2637_v38, %v2636_v14  ;;  %v3184_v11 = vmax.f32 %v3152_v22, 0.0  ;;  %5971 = vmatmul.msk.bf16.gmra.mxu2 %vm305_vm1, %v6591_v31  ;;  %6093 = vmatmul.msk.bf16.gmra.mxu3 %vm305_vm1, %v7832_v36 }
 0x3aa   : > { %v2639_v42 = vmul.f32 %v2638_v48, %v7174_v60  ;;  %v3215_v41 = vadd.f32 %v3184_v11, %v3183_v54 }
 0x3ab   : > { %v3044_v29 = vpop.f32.mrf.mxu2  ;;  %v7843_v46 = vpop.f32.mrf.mxu3 }
 0x3ac   : > { %2640 = vst [vmem:[%s7180_s23 + $0x3] sm:$0x1] %v2639_v42  ;;  %v3121_v49 = vadd.f32 %v3044_v29, %v2938_v47  ;;  %v2834_v45 = vpop.f32.mrf.mxu0  ;;  %v2939_v32 = vpop.f32.mrf.mxu1 }
 0x3ad   : > { %v2940_v23 = vadd.f32 %v2939_v32, %v2834_v45 }
 0x3ae   : > { %v3153_v39 = vadd.f32 %v7605_v12, %v3121_v49 }
 0x3b0   : > { %v3185_v30 = vmax.f32 %v3153_v39, 0.0  ;;  %v7882_v39 = vld [vmem:[%s6779_s26 + $0x338] sm:$0xff] }
 0x3b2   : > { %v3216_v55 = vadd.f32 %v3215_v41, %v3185_v30 }
 0x3b3   : > { %v3046_v40 = vpop.f32.mrf.mxu2  ;;  %v7847_v57 = vpop.f32.mrf.mxu3 }
 0x3b4   : > { %v3122_v8 = vadd.f32 %v3046_v40, %v2940_v23  ;;  %v2837_v26 = vpop.f32.mrf.mxu0  ;;  %v2942_v9 = vpop.f32.mrf.mxu1  ;;  %v6594_v23 = vld [vmem:[%s6779_s26 + $0x2b0] sm:$0xff] }
 0x3b5   : > { %v2943_v18 = vadd.f32 %v2942_v9, %v2837_v26 }
 0x3b6   : > { %v3154_v58 = vadd.f32 %v7605_v12, %v3122_v8 }
 0x3b7   : > { %5922 = vmatmul.msk.bf16.gmra.mxu0 %vm305_vm1, %v6591_v31  ;;  %5946 = vmatmul.msk.bf16.gmra.mxu1 %vm305_vm1, %v7809_v63 }
 0x3b8   : > { %v3186_v4 = vmax.f32 %v3154_v58, 0.0  ;;  %5972 = vmatmul.msk.bf16.gmra.mxu2 %vm305_vm1, %v6592_v3  ;;  %6094 = vmatmul.msk.bf16.gmra.mxu3 %vm305_vm1, %v7851_v15 }
 0x3ba   : > { %v3217_v19 = vadd.f32 %v3216_v55, %v3186_v4 }
 0x3bb   : > { %v3049_v56 = vpop.f32.mrf.mxu2  ;;  %v7860_v50 = vpop.f32.mrf.mxu3 }
 0x3bc   : > { %v3123_v20 = vadd.f32 %v3049_v56, %v2943_v18  ;;  %v2839_v24 = vpop.f32.mrf.mxu0  ;;  %v2944_v21 = vpop.f32.mrf.mxu1 }
 0x3bd   : > { %v2945_v59 = vadd.f32 %v2944_v21, %v2839_v24 }
 0x3be   : > { %v3155_v44 = vadd.f32 %v7605_v12, %v3123_v20 }
 0x3c0   : > { %v3187_v10 = vmax.f32 %v3155_v44, 0.0 }
 0x3c2   : > { %v3218_v63 = vadd.f32 %v3217_v19, %v3187_v10 }
 0x3c3   : > { %v3051_v33 = vpop.f32.mrf.mxu2  ;;  %v7863_v62 = vpop.f32.mrf.mxu3 }
 0x3c4   : > { %v3124_v52 = vadd.f32 %v3051_v33, %v2945_v59  ;;  %v2842_v25 = vpop.f32.mrf.mxu0  ;;  %v2947_v5 = vpop.f32.mrf.mxu1  ;;  %v7899_v33 = vld [vmem:[%s6779_s26 + $0x340] sm:$0xff] }
 0x3c5   : > { %v2948_v14 = vadd.f32 %v2947_v5, %v2842_v25 }
 0x3c6   : > { %v3156_v61 = vadd.f32 %v7605_v12, %v3124_v52 }
 0x3c7   : > { %5923 = vmatmul.msk.bf16.gmra.mxu0 %vm305_vm1, %v6592_v3  ;;  %5947 = vmatmul.msk.bf16.gmra.mxu1 %vm305_vm1, %v6591_v31 }
 0x3c8   : > { %v3188_v16 = vmax.f32 %v3156_v61, 0.0  ;;  %5973 = vmatmul.msk.bf16.gmra.mxu2 %vm305_vm1, %v6593_v2  ;;  %6095 = vmatmul.msk.bf16.gmra.mxu3 %vm305_vm1, %v7867_v7 }
 0x3ca   : > { %v3219_v6 = vadd.f32 %v3218_v63, %v3188_v16  ;;  %v7896_v63 = vld [vmem:[%s6779_s26 + $0x2b8] sm:$0xff] }
 0x3cb   : > { %v3054_v37 = vpop.f32.mrf.mxu2  ;;  %v7875_v47 = vpop.f32.mrf.mxu3 }
 0x3cc   : > { %v3125_v38 = vadd.f32 %v3054_v37, %v2948_v14  ;;  %v2844_v22 = vpop.f32.mrf.mxu0  ;;  %v2949_v48 = vpop.f32.mrf.mxu1 }
 0x3cd   : > { %v2950_v54 = vadd.f32 %v2949_v48, %v2844_v22 }
 0x3ce   : > { %v3157_v11 = vadd.f32 %v7605_v12, %v3125_v38 }
 0x3d0   : > { %v3189_v42 = vmax.f32 %v3157_v11, 0.0 }
 0x3d2   : > { %v3220_v31 = vadd.f32 %v3219_v6, %v3189_v42 }
 0x3d3   : > { %v3056_v41 = vpop.f32.mrf.mxu2  ;;  %v7878_v29 = vpop.f32.mrf.mxu3 }
 0x3d4   : > { %v3126_v49 = vadd.f32 %v3056_v41, %v2950_v54  ;;  %v2847_v45 = vpop.f32.mrf.mxu0  ;;  %v2952_v32 = vpop.f32.mrf.mxu1 }
 0x3d5   : > { %v2953_v30 = vadd.f32 %v2952_v32, %v2847_v45  ;;  %v6596_v45 = vld [vmem:[%s6779_s26 + $0x2c0] sm:$0xff]  ;;  %v7915_v32 = vld [vmem:[%s6779_s26 + $0x348] sm:$0xff] }
 0x3d6   : > { %v3158_v55 = vadd.f32 %v7605_v12, %v3126_v49 }
 0x3d7   : > { %5924 = vmatmul.msk.bf16.gmra.mxu0 %vm305_vm1, %v6593_v2  ;;  %5948 = vmatmul.msk.bf16.gmra.mxu1 %vm305_vm1, %v6592_v3 }
 0x3d8   : > { %v3190_v40 = vmax.f32 %v3158_v55, 0.0  ;;  %5974 = vmatmul.msk.bf16.gmra.mxu2 %vm305_vm1, %v6594_v23  ;;  %6096 = vmatmul.msk.bf16.gmra.mxu3 %vm305_vm1, %v7882_v39 }
 0x3da   : > { %v3221_v8 = vadd.f32 %v3220_v31, %v3190_v40 }
 0x3db   : > { %v3059_v26 = vpop.f32.mrf.mxu2  ;;  %v7890_v9 = vpop.f32.mrf.mxu3 }
 0x3dc   : > { %v3127_v18 = vadd.f32 %v3059_v26, %v2953_v30  ;;  %v2849_v58 = vpop.f32.mrf.mxu0  ;;  %v2954_v4 = vpop.f32.mrf.mxu1  ;;  %v6450_v26 = vld [vmem:[%s8590_s1] sm:$0xf] }
 0x3dd   : > { %v2955_v19 = vadd.f32 %v2954_v4, %v2849_v58  ;;  %v6476_v58 = vld [vmem:[%s8590_s1 + $0x10] sm:$0xf] }
 0x3de   : > { %v3159_v56 = vadd.f32 %v7605_v12, %v3127_v18  ;;  %v6661_v18 = vld [vmem:[%s8590_s1] sm:$0x30] }
 0x3e0   : > { %v3191_v20 = vmax.f32 %v3159_v56, 0.0  ;;  %v6663_v56 = vld [vmem:[%s8590_s1 + $0x10] sm:$0x30] }
 0x3e2   : > { %v3222_v3 = vadd.f32 %v3221_v8, %v3191_v20 }
 0x3e3   : > { %v3061_v24 = vpop.f32.mrf.mxu2  ;;  %v7893_v21 = vpop.f32.mrf.mxu3 }
 0x3e4   : > { %v3128_v59 = vadd.f32 %v3061_v24, %v2955_v19  ;;  %v2852_v44 = vpop.f32.mrf.mxu0  ;;  %v2957_v10 = vpop.f32.mrf.mxu1  ;;  %v6451_v19 = vor.u32 %v6661_v18, %v6450_v26 }
 0x3e5   : > { %v2958_v52 = vadd.f32 %v2957_v10, %v2852_v44 }
 0x3e6   : > { %v3160_v25 = vadd.f32 %v7605_v12, %v3128_v59  ;;  %v6477_v59 = vor.u32 %v6663_v56, %v6476_v58  ;;  %v4760_v10 = vsel %vm354_vm0, %v6451_v19, 0 }
 0x3e7   : > { %5925 = vmatmul.msk.bf16.gmra.mxu0 %vm305_vm1, %v6594_v23  ;;  %5949 = vmatmul.msk.bf16.gmra.mxu1 %vm305_vm1, %v6593_v2 }
 0x3e8   : > { %v3192_v5 = vmax.f32 %v3160_v25, 0.0  ;;  %5975 = vmatmul.msk.bf16.gmra.mxu2 %vm305_vm1, %v7896_v63  ;;  %6097 = vmatmul.msk.bf16.gmra.mxu3 %vm305_vm1, %v7899_v33  ;;  %v4867_v25 = vsel %vm354_vm0, %v6477_v59, 0 }
 0x3e9   : > { %4769 = vmatpush.bf16.msrb.mxu2 %v4760_v10  ;;  %4876 = vmatpush.bf16.msrb.mxu3 %v4867_v25 }
 0x3ea   : > { %v3223_v14 = vadd.f32 %v3222_v3, %v3192_v5 }
 0x3eb   : > { %v3064_v61 = vpop.f32.mrf.mxu2  ;;  %v7908_v16 = vpop.f32.mrf.mxu3 }
 0x3ec   : > { %v3129_v6 = vadd.f32 %v3064_v61, %v2958_v52  ;;  %v2854_v37 = vpop.f32.mrf.mxu0  ;;  %v2959_v38 = vpop.f32.mrf.mxu1  ;;  %v6426_v61 = vld [vmem:[%s8590_s1 + $0x8] sm:$0xf] }
 0x3ed   : > { %v2960_v22 = vadd.f32 %v2959_v38, %v2854_v37 }
 0x3ee   : > { %v3161_v48 = vadd.f32 %v7605_v12, %v3129_v6  ;;  %v6662_v6 = vld [vmem:[%s8590_s1 + $0x8] sm:$0x30] }
 0x3f0   : > { %v3193_v2 = vmax.f32 %v3161_v48, 0.0  ;;  %v6642_v48 = vld [vmem:[%s8590_s1 + $0x10] sm:$0x30] }
 0x3f2   : > { %v3224_v54 = vadd.f32 %v3223_v14, %v3193_v2 }
 0x3f3   : > { %v3066_v11 = vpop.f32.mrf.mxu2  ;;  %v7911_v42 = vpop.f32.mrf.mxu3 }
 0x3f4   : > { %v3130_v31 = vadd.f32 %v3066_v11, %v2960_v22  ;;  %v2857_v41 = vpop.f32.mrf.mxu0  ;;  %v2962_v49 = vpop.f32.mrf.mxu1  ;;  %v6427_v22 = vor.u32 %v6662_v6, %v6426_v61  ;;  %v6623_v61 = vld [vmem:[%s6779_s26 + $0x368] sm:$0xff]  ;;  %v6622_v6 = vld [vmem:[%s6779_s26 + $0x360] sm:$0xff] }
 0x3f5   : > { %v2963_v30 = vadd.f32 %v2962_v49, %v2857_v41  ;;  %v7957_v41 = vld [vmem:[%s6779_s26 + $0x350] sm:$0xff] }
 0x3f6   : > { %v3162_v55 = vadd.f32 %v7605_v12, %v3130_v31  ;;  %v6597_v31 = vld [vmem:[%s6779_s26 + $0x2c8] sm:$0xff] }
 0x3f7   : > { %5926 = vmatmul.msk.bf16.gmra.mxu0 %vm305_vm1, %v7896_v63  ;;  %5950 = vmatmul.msk.bf16.gmra.mxu1 %vm305_vm1, %v6594_v23 }
 0x3f8   : > { %v3194_v40 = vmax.f32 %v3162_v55, 0.0  ;;  %5976 = vmatmul.msk.bf16.gmra.mxu2 %vm305_vm1, %v6596_v45  ;;  %6098 = vmatmul.msk.bf16.gmra.mxu3 %vm305_vm1, %v7915_v32  ;;  %v4655_v55 = vsel %vm354_vm0, %v6427_v22, 0 }
 0x3f9   : > { %4664 = vmatpush.bf16.msrb.mxu1 %v4655_v55 }
 0x3fa   : > { %v3225_v8 = vadd.f32 %v3224_v54, %v3194_v40  ;;  %v7963_v40 = vld [vmem:[%s8591_s2] ss:$0 sm:$0xff] }
 0x3fb   : > { %v3069_v23 = vpop.f32.mrf.mxu2  ;;  %v7933_v4 = vpop.f32.mrf.mxu3 }
 0x3fc   : > { %v3131_v20 = vadd.f32 %v3069_v23, %v2963_v30  ;;  %v2859_v3 = vpop.f32.mrf.mxu0  ;;  %v2964_v24 = vpop.f32.mrf.mxu1 }
 0x3fd   : > { %v2965_v44 = vadd.f32 %v2964_v24, %v2859_v3 }
 0x3fe   : > { %v3163_v52 = vadd.f32 %v7605_v12, %v3131_v20  ;;  %v6304_v12 = vld [vmem:[%s8590_s1 + $0x10] sm:$0xf] }
 0x3ff   : > { %v6305_v49 = vor.u32 %v6642_v48, %v6304_v12 }
 0x400   : > { %v3195_v5 = vmax.f32 %v3163_v52, 0.0  ;;  %v6601_v52 = vld [vmem:[%s6779_s26 + $0x2d0] sm:$0xff] }
 0x401   : > { %v4254_v26 = vsel %vm354_vm0, %v6305_v49, 0 }
 0x402   : > { %v3226_v14 = vadd.f32 %v3225_v8, %v3195_v5  ;;  %4263 = vmatpush.bf16.msrb.mxu0 %v4254_v26 }
 0x403   : > { %v3071_v37 = vpop.f32.mrf.mxu2  ;;  %v7950_v38 = vpop.f32.mrf.mxu3 }
 0x404   : > { %v3132_v2 = vadd.f32 %v3071_v37, %v2965_v44  ;;  %v2862_v54 = vpop.f32.mrf.mxu0  ;;  %v2967_v11 = vpop.f32.mrf.mxu1 }
 0x405   : > { %v2968_v30 = vadd.f32 %v2967_v11, %v2862_v54 }
 0x406   : > { %v3164_v8 = vadd.f32 %v7963_v40, %v3132_v2 }
 0x407   : > { %5927 = vmatmul.msk.bf16.gmra.mxu0 %vm305_vm1, %v6596_v45  ;;  %5951 = vmatmul.msk.bf16.gmra.mxu1 %vm305_vm1, %v7896_v63 }
 0x408   : > { %v3196_v18 = vmax.f32 %v3164_v8, 0.0  ;;  %5977 = vmatmul.msk.bf16.gmra.mxu2 %vm305_vm1, %v6597_v31  ;;  %6099 = vmatmul.msk.bf16.gmra.mxu3 %vm305_vm1, %v7957_v41 }
 0x40a   : > { %v3227_v58 = vadd.f32 %v3226_v14, %v3196_v18 }
 0x40b   : > { %v3074_v23 = vpop.f32.mrf.mxu2  ;;  %v7973_v19 = vpop.f32.mrf.mxu3 }
 0x40c   : > { %v3133_v56 = vadd.f32 %v3074_v23, %v2968_v30  ;;  %v2864_v20 = vpop.f32.mrf.mxu0  ;;  %v2969_v45 = vpop.f32.mrf.mxu1 }
 0x40d   : > { %v2970_v3 = vadd.f32 %v2969_v45, %v2864_v20  ;;  %v7993_v45 = vld [vmem:[%s6779_s26 + $0x370] sm:$0xff] }
 0x40e   : > { %v3165_v63 = vadd.f32 %v7963_v40, %v3133_v56  ;;  %8659 = vst [vmem:[#allocation14_spill] sm:$0xff] %v7993_v45 }
 0x410   : > { %v3197_v24 = vmax.f32 %v3165_v63, 0.0 }
 0x412   : > { %v3228_v59 = vadd.f32 %v3227_v58, %v3197_v24 }
 0x413   : > { %v3076_v44 = vpop.f32.mrf.mxu2  ;;  %v7976_v10 = vpop.f32.mrf.mxu3 }
 0x414   : > { %8656 = vst [vmem:[#allocation9_spill] sm:$0xff] %v7976_v10  ;;  %v3134_v25 = vadd.f32 %v3076_v44, %v2970_v3  ;;  %v2867_v5 = vpop.f32.mrf.mxu0  ;;  %v2972_v14 = vpop.f32.mrf.mxu1 }
 0x415   : > { %v2973_v12 = vadd.f32 %v2972_v14, %v2867_v5 }
 0x416   : > { %v3166_v37 = vadd.f32 %v7963_v40, %v3134_v25 }
 0x417   : > { %6108 = vmatmul.msk.bf16.vlgmr.msra.gmra.mxu0 %vm305_vm1, %v6601_v52  ;;  %6134 = vmatmul.msk.bf16.vlgmr.msra.gmra.mxu1 %vm305_vm1, %v7662_v28 }
 0x418   : > { %v3198_v22 = vmax.f32 %v3166_v37, 0.0  ;;  %6256 = vmatmul.msk.bf16.vlgmr.msra.gmra.mxu2 %vm305_vm1, %v6623_v61  ;;  %6280 = vmatmul.msk.bf16.vlgmr.msra.gmra.mxu3 %vm305_vm1, %v6622_v6 }
 0x41a   : > { %v3229_v48 = vadd.f32 %v3228_v59, %v3198_v22 }
 0x41b   : > { %v3079_v2 = vpop.f32.mrf.mxu2  ;;  %v7987_v54 = vpop.f32.mrf.mxu3 }
 0x41c   : > { %8657 = vst [vmem:[#allocation11_spill] sm:$0xff] %v7987_v54  ;;  %v3135_v11 = vadd.f32 %v3079_v2, %v2973_v12  ;;  %v2869_v31 = vpop.f32.mrf.mxu0  ;;  %v2974_v49 = vpop.f32.mrf.mxu1 }
 0x41d   : > { %v2975_v30 = vadd.f32 %v2974_v49, %v2869_v31 }
 0x41e   : > { %v3167_v55 = vadd.f32 %v7963_v40, %v3135_v11 }
 0x420   : > { %v3199_v8 = vmax.f32 %v3167_v55, 0.0 }
 0x422   : > { %v3230_v26 = vadd.f32 %v3229_v48, %v3199_v8 }
 0x423   : > { %v3081_v18 = vpop.f32.mrf.mxu2  ;;  %v7990_v58 = vpop.f32.mrf.mxu3 }
 0x424   : > { %8658 = vst [vmem:[#allocation12_spill] sm:$0xff] %v7990_v58  ;;  %v3136_v23 = vadd.f32 %v3081_v18, %v2975_v30  ;;  %v2872_v56 = vpop.f32.mrf.mxu0  ;;  %v2977_v20 = vpop.f32.mrf.mxu1 }
 0x425   : > { %v2978_v3 = vadd.f32 %v2977_v20, %v2872_v56 }
 0x426   : > { %v3168_v63 = vadd.f32 %v7963_v40, %v3136_v23 }
 0x427   : > { %6109 = vmatmul.msk.bf16.gmra.mxu0 %vm305_vm1, %v7644_v35  ;;  %6135 = vmatmul.msk.bf16.gmra.mxu1 %vm305_vm1, %v7681_v1 }
 0x428   : > { %v3200_v24 = vmax.f32 %v3168_v63, 0.0  ;;  %6257 = vmatmul.msk.bf16.gmra.mxu2 %vm305_vm1, %v7993_v45  ;;  %6281 = vmatmul.msk.bf16.gmra.mxu3 %vm305_vm1, %v6623_v61  ;;  %v8009_v61 = vld [vmem:[%s6779_s26 + $0x378] sm:$0xff] }
 0x429   : > { %8662 = vst [vmem:[#allocation17_spill] sm:$0xff] %v8009_v61 }
 0x42a   : > { %v3231_v59 = vadd.f32 %v3230_v26, %v3200_v24 }
 0x42b   : > { %v3084_v44 = vpop.f32.mrf.mxu2  ;;  %v8003_v52 = vpop.f32.mrf.mxu3 }
 0x42c   : > { %8660 = vst [vmem:[#allocation15_spill] sm:$0xff] %v8003_v52  ;;  %v3137_v25 = vadd.f32 %v3084_v44, %v2978_v3  ;;  %v2874_v5 = vpop.f32.mrf.mxu0  ;;  %v2979_v14 = vpop.f32.mrf.mxu1 }
 0x42d   : > { %v2980_v6 = vadd.f32 %v2979_v14, %v2874_v5 }
 0x42e   : > { %v3169_v35 = vadd.f32 %v7963_v40, %v3137_v25 }
 0x430   : > { %v3201_v12 = vmax.f32 %v3169_v35, 0.0 }
 0x432   : > { %v3232_v37 = vadd.f32 %v3231_v59, %v3201_v12 }
 0x433   : > { %v3086_v22 = vpop.f32.mrf.mxu2  ;;  %v8006_v48 = vpop.f32.mrf.mxu3 }
 0x434   : > { %8661 = vst [vmem:[#allocation16_spill] sm:$0xff] %v8006_v48  ;;  %v3138_v2 = vadd.f32 %v3086_v22, %v2980_v6  ;;  %v2877_v11 = vpop.f32.mrf.mxu0  ;;  %v2982_v31 = vpop.f32.mrf.mxu1  ;;  %v8026_v6 = vld [vmem:[%s6779_s26 + $0x380] sm:$0xff] }
 0x435   : > { %v2983_v49 = vadd.f32 %v2982_v31, %v2877_v11  ;;  %8665 = vst [vmem:[#allocation4_spill] sm:$0xff] %v8026_v6 }
 0x436   : > { %v3170_v30 = vadd.f32 %v7963_v40, %v3138_v2 }
 0x437   : > { %6110 = vmatmul.msk.bf16.gmra.mxu0 %vm305_vm1, %v7662_v28  ;;  %6136 = vmatmul.msk.bf16.gmra.mxu1 %vm305_vm1, %v7701_v17 }
 0x438   : > { %v3202_v55 = vmax.f32 %v3170_v30, 0.0  ;;  %6258 = vmatmul.msk.bf16.gmra.mxu2 %vm305_vm1, %v8009_v61  ;;  %6282 = vmatmul.msk.bf16.gmra.mxu3 %vm305_vm1, %v7993_v45 }
 0x43a   : > { %v3233_v8 = vadd.f32 %v3232_v37, %v3202_v55 }
 0x43b   : > { %v3089_v26 = vpop.f32.mrf.mxu2  ;;  %v8020_v18 = vpop.f32.mrf.mxu3 }
 0x43c   : > { %8663 = vst [vmem:[#allocation18_spill] sm:$0xff] %v8020_v18  ;;  %v3139_v23 = vadd.f32 %v3089_v26, %v2983_v49  ;;  %v2879_v56 = vpop.f32.mrf.mxu0  ;;  %v2984_v20 = vpop.f32.mrf.mxu1 }
 0x43d   : > { %v2985_v24 = vadd.f32 %v2984_v20, %v2879_v56 }
 0x43e   : > { %v3171_v28 = vadd.f32 %v7963_v40, %v3139_v23 }
 0x440   : > { %v3203_v3 = vmax.f32 %v3171_v28, 0.0 }
 0x442   : > { %v3234_v63 = vadd.f32 %v3233_v8, %v3203_v3  ;;  %v8044_v8 = vld [vmem:[%s6779_s26 + $0x388] sm:$0xff] }
 0x443   : > { %v3091_v59 = vpop.f32.mrf.mxu2  ;;  %v8023_v44 = vpop.f32.mrf.mxu3  ;;  %8668 = vst [vmem:[#allocation7_spill] sm:$0xff] %v8044_v8 }
 0x444   : > { %8664 = vst [vmem:[#allocation2_spill] sm:$0xff] %v8023_v44  ;;  %v3140_v25 = vadd.f32 %v3091_v59, %v2985_v24  ;;  %v2882_v5 = vpop.f32.mrf.mxu0  ;;  %v2987_v14 = vpop.f32.mrf.mxu1  ;;  %v8059_v24 = vld [vmem:[%s6779_s26 + $0x390] sm:$0xff] }
 0x445   : > { %8671 = vst [vmem:[#allocation10_spill] sm:$0xff] %v8059_v24  ;;  %v2988_v44 = vadd.f32 %v2987_v14, %v2882_v5 }
 0x446   : > { %v3172_v35 = vadd.f32 %v7963_v40, %v3140_v25 }
 0x447   : > { %6111 = vmatmul.msk.bf16.gmra.mxu0 %vm305_vm1, %v7681_v1  ;;  %6137 = vmatmul.msk.bf16.gmra.mxu1 %vm305_vm1, %v7729_v0 }
 0x448   : > { %v3204_v12 = vmax.f32 %v3172_v35, 0.0  ;;  %6259 = vmatmul.msk.bf16.gmra.mxu2 %vm305_vm1, %v8026_v6  ;;  %6283 = vmatmul.msk.bf16.gmra.mxu3 %vm305_vm1, %v8009_v61 }
 0x44a   : > { %v8037_v37 = vadd.f32 %v3234_v63, %v3204_v12 }
 0x44b   : > { %v3094_v22 = vpop.f32.mrf.mxu2  ;;  %v8039_v2 = vpop.f32.mrf.mxu3 }
 0x44c   : > { %8666 = vst [vmem:[#allocation3_spill] sm:$0xff] %v8039_v2  ;;  %v2884_v11 = vpop.f32.mrf.mxu0  ;;  %v2989_v31 = vpop.f32.mrf.mxu1 }
 0x453   : > { %v3096_v49 = vpop.f32.mrf.mxu2  ;;  %v8041_v30 = vpop.f32.mrf.mxu3 }
 0x454   : > { %8667 = vst [vmem:[#allocation5_spill] sm:$0xff] %v8041_v30  ;;  %v2887_v1 = vpop.f32.mrf.mxu0  ;;  %v2992_v55 = vpop.f32.mrf.mxu1 }
 0x455   : > { %v2993_v18 = vadd.f32 %v2992_v55, %v2887_v1 }
 0x457   : > { %6112 = vmatmul.msk.bf16.gmra.mxu0 %vm305_vm1, %v7701_v17  ;;  %6138 = vmatmul.msk.bf16.gmra.mxu1 %vm305_vm1, %v7745_v34 }
 0x458   : > { %6260 = vmatmul.msk.bf16.gmra.mxu2 %vm305_vm1, %v8044_v8  ;;  %6284 = vmatmul.msk.bf16.gmra.mxu3 %vm305_vm1, %v8026_v6  ;;  %v2990_v6 = vadd.f32 %v2989_v31, %v2884_v11 }
 0x45a   : > { %v3142_v14 = vadd.f32 %v3096_v49, %v2990_v6  ;;  %v8092_v49 = vld [vmem:[%s6779_s26 + $0x3a0] sm:$0xff] }
 0x45b   : > { %v3099_v26 = vpop.f32.mrf.mxu2  ;;  %v8054_v23 = vpop.f32.mrf.mxu3 }
 0x45c   : > { %8669 = vst [vmem:[#allocation6_spill] sm:$0xff] %v8054_v23  ;;  %v2889_v56 = vpop.f32.mrf.mxu0  ;;  %v2994_v20 = vpop.f32.mrf.mxu1  ;;  %v3143_v52 = vadd.f32 %v3099_v26, %v2993_v18  ;;  %v3174_v45 = vadd.f32 %v7963_v40, %v3142_v14 }
 0x45d   : > { %v2995_v58 = vadd.f32 %v2994_v20, %v2889_v56 }
 0x45e   : > { %v3175_v11 = vadd.f32 %v7963_v40, %v3143_v52 }
 0x460   : > { %v3207_v52 = vmax.f32 %v3175_v11, 0.0 }
 0x463   : > { %v3101_v28 = vpop.f32.mrf.mxu2  ;;  %v8056_v3 = vpop.f32.mrf.mxu3 }
 0x464   : > { %8670 = vst [vmem:[#allocation8_spill] sm:$0xff] %v8056_v3  ;;  %v2892_v63 = vpop.f32.mrf.mxu0  ;;  %v2997_v17 = vpop.f32.mrf.mxu1  ;;  %v3144_v54 = vadd.f32 %v3101_v28, %v2995_v58 }
 0x465   : > { %v2998_v61 = vadd.f32 %v2997_v17, %v2892_v63 }
 0x466   : > { %v3176_v18 = vadd.f32 %v7963_v40, %v3144_v54 }
 0x467   : > { %6113 = vmatmul.msk.bf16.gmra.mxu0 %vm305_vm1, %v7729_v0  ;;  %6139 = vmatmul.msk.bf16.gmra.mxu1 %vm305_vm1, %v7761_v27  ;;  %v8074_v0 = vld [vmem:[%s6779_s26 + $0x398] sm:$0xff] }
 0x468   : > { %6261 = vmatmul.msk.bf16.gmra.mxu2 %vm305_vm1, %v8059_v24  ;;  %6285 = vmatmul.msk.bf16.gmra.mxu3 %vm305_vm1, %v8044_v8 }
 0x46b   : > { %v3104_v59 = vpop.f32.mrf.mxu2  ;;  %v8069_v25 = vpop.f32.mrf.mxu3 }
 0x46c   : > { %8672 = vst [vmem:[#allocation13_spill] sm:$0xff] %v8069_v25  ;;  %v2894_v35 = vpop.f32.mrf.mxu0  ;;  %v2999_v12 = vpop.f32.mrf.mxu1  ;;  %v3141_v25 = vadd.f32 %v3094_v22, %v2988_v44 }
 0x46d   : > { %v3000_v31 = vadd.f32 %v2999_v12, %v2894_v35 }
 0x473   : > { %v3106_v3 = vpop.f32.mrf.mxu2  ;;  %v8071_v23 = vpop.f32.mrf.mxu3 }
 0x474   : > { %8673 = vst [vmem:[#allocation19_spill] sm:$0xff] %v8071_v23  ;;  %v2897_v30 = vpop.f32.mrf.mxu0  ;;  %v3002_v2 = vpop.f32.mrf.mxu1  ;;  %v3146_v26 = vadd.f32 %v3106_v3, %v3000_v31 }
 0x475   : > { %v3003_v1 = vadd.f32 %v3002_v2, %v2897_v30 }
 0x477   : > { %6114 = vmatmul.msk.bf16.gmra.mxu0 %vm305_vm1, %v7745_v34  ;;  %6140 = vmatmul.msk.bf16.gmra.mxu1 %vm305_vm1, %v7786_v43  ;;  %v3173_v34 = vadd.f32 %v7963_v40, %v3141_v25  ;;  %v3206_v25 = vmax.f32 %v3174_v45, 0.0  ;;  %v3178_v45 = vadd.f32 %v7963_v40, %v3146_v26 }
 0x478   : > { %6262 = vmatmul.msk.bf16.gmra.mxu2 %vm305_vm1, %v8074_v0  ;;  %6286 = vmatmul.msk.bf16.gmra.mxu3 %vm305_vm1, %v8059_v24  ;;  %v3145_v24 = vadd.f32 %v3104_v59, %v2998_v61 }
 0x479   : > { %v3205_v10 = vmax.f32 %v3173_v34, 0.0  ;;  %v3210_v59 = vmax.f32 %v3178_v45, 0.0 }
 0x47a   : > { %v3177_v58 = vadd.f32 %v7963_v40, %v3145_v24 }
 0x47b   : > { %v3109_v8 = vpop.f32.mrf.mxu2  ;;  %v8084_v23 = vpop.f32.mrf.mxu3  ;;  %v3236_v56 = vadd.f32 %v8037_v37, %v3205_v10  ;;  %v3208_v10 = vmax.f32 %v3176_v18, 0.0 }
 0x47c   : > { %v2899_v48 = vpop.f32.mrf.mxu0  ;;  %v3004_v5 = vpop.f32.mrf.mxu1  ;;  %v3147_v61 = vadd.f32 %v3109_v8, %v3003_v1  ;;  %v3209_v3 = vmax.f32 %v3177_v58, 0.0 }
 0x47d   : > { %v3005_v2 = vadd.f32 %v3004_v5, %v2899_v48  ;;  %v3237_v54 = vadd.f32 %v3236_v56, %v3206_v25  ;;  %v8114_v56 = vld [vmem:[%s6779_s26 + $0x3a8] sm:$0xff] }
 0x47e   : > { %v3179_v8 = vadd.f32 %v7963_v40, %v3147_v61 }
 0x47f   : > { %v3238_v28 = vadd.f32 %v3237_v54, %v3207_v52 }
 0x480   : > { %v3211_v5 = vmax.f32 %v3179_v8, 0.0 }
 0x481   : > { %v3239_v24 = vadd.f32 %v3238_v28, %v3208_v10 }
 0x483   : > { %v3111_v44 = vpop.f32.mrf.mxu2  ;;  %v8088_v22 = vpop.f32.mrf.mxu3  ;;  %v3240_v12 = vadd.f32 %v3239_v24, %v3209_v3 }
 0x484   : > { %v2902_v55 = vpop.f32.mrf.mxu0  ;;  %v3007_v6 = vpop.f32.mrf.mxu1  ;;  %v3148_v37 = vadd.f32 %v3111_v44, %v3005_v2 }
 0x485   : > { %v3008_v30 = vadd.f32 %v3007_v6, %v2902_v55  ;;  %v3241_v34 = vadd.f32 %v3240_v12, %v3210_v59 }
 0x486   : > { %v3180_v35 = vadd.f32 %v7963_v40, %v3148_v37 }
 0x487   : > { %6115 = vmatmul.msk.bf16.gmra.mxu0 %vm305_vm1, %v7761_v27  ;;  %6141 = vmatmul.msk.bf16.gmra.mxu1 %vm305_vm1, %v7812_v13  ;;  %v3242_v55 = vadd.f32 %v3241_v34, %v3211_v5 }
 0x488   : > { %6263 = vmatmul.msk.bf16.gmra.mxu2 %vm305_vm1, %v8092_v49  ;;  %6287 = vmatmul.msk.bf16.gmra.mxu3 %vm305_vm1, %v8074_v0  ;;  %v3212_v44 = vmax.f32 %v3180_v35, 0.0 }
 0x48a   : > { %v3243_v52 = vadd.f32 %v3242_v55, %v3212_v44  ;;  %v8134_v55 = vld [vmem:[%s6779_s26 + $0x3b0] sm:$0xff] }
 0x48b   : > { %v3114_v20 = vpop.f32.mrf.mxu2  ;;  %v8106_v27 = vpop.f32.mrf.mxu3 }
 0x48c   : > { %v3149_v48 = vadd.f32 %v3114_v20, %v3008_v30  ;;  %v2904_v63 = vpop.f32.mrf.mxu0  ;;  %v3009_v17 = vpop.f32.mrf.mxu1 }
 0x48d   : > { %v3010_v11 = vadd.f32 %v3009_v17, %v2904_v63 }
 0x48e   : > { %v3181_v14 = vadd.f32 %v7963_v40, %v3149_v48 }
 0x490   : > { %v3213_v6 = vmax.f32 %v3181_v14, 0.0 }
 0x492   : > { %v3244_v30 = vadd.f32 %v3243_v52, %v3213_v6 }
 0x493   : > { %v3116_v31 = vpop.f32.mrf.mxu2  ;;  %v8111_v1 = vpop.f32.mrf.mxu3 }
 0x494   : > { %v3150_v25 = vadd.f32 %v3116_v31, %v3010_v11  ;;  %v3545_v18 = vpop.f32.mrf.mxu0  ;;  %v3652_v26 = vpop.f32.mrf.mxu1 }
 0x495   : > { %v3546_v58 = vadd.f32 %v3545_v18, %v7823_v51 }
 0x496   : > { %v3182_v61 = vadd.f32 %v7963_v40, %v3150_v25 }
 0x497   : > { %v3732_v2 = vadd.f32 %v3652_v26, %v3546_v58  ;;  %6116 = vmatmul.msk.bf16.gmra.mxu0 %vm305_vm1, %v7786_v43  ;;  %6142 = vmatmul.msk.bf16.gmra.mxu1 %vm305_vm1, %v7832_v36 }
 0x498   : > { %v3214_v54 = vmax.f32 %v3182_v61, 0.0  ;;  %6264 = vmatmul.msk.bf16.gmra.mxu2 %vm305_vm1, %v8114_v56  ;;  %6288 = vmatmul.msk.bf16.gmra.mxu3 %vm305_vm1, %v8092_v49 }
 0x499   : > { %v3764_v48 = vadd.f32 %v7963_v40, %v3732_v2 }
 0x49a   : > { %v3245_v10 = vadd.f32 %v3244_v30, %v3214_v54 }
 0x49b   : > { %v4053_v51 = vpop.f32.mrf.mxu2  ;;  %v4158_v45 = vpop.f32.mrf.mxu3  ;;  %v3796_v35 = vmax.f32 %v3764_v48, 0.0 }
 0x49c   : > { %v3246_v37 = vrot.slane %v3245_v10, 4  ;;  %v8126_v20 = vadd.f32 %v4158_v45, %v4053_v51  ;;  %v3547_v28 = vpop.f32.mrf.mxu0  ;;  %v3654_v3 = vpop.f32.mrf.mxu1 }
 0x49d   : > { %v3548_v43 = vadd.f32 %v3547_v28, %v7827_v53 }
 0x49e   : > { %v3247_v8 = vadd.f32 %v3246_v37, %v3245_v10 }
 0x49f   : > { %v3733_v63 = vadd.f32 %v3654_v3, %v3548_v43 }
 0x4a0   : > { %v3248_v17 = vrot.slane %v3247_v8, 2 }
 0x4a1   : > { %v3765_v24 = vadd.f32 %v7963_v40, %v3733_v63  ;;  %v8155_v63 = vld [vmem:[%s6779_s26 + $0x3b8] sm:$0xff] }
 0x4a2   : > { %v3249_v59 = vadd.f32 %v3248_v17, %v3247_v8 }
 0x4a3   : > { %v3797_v12 = vmax.f32 %v3765_v24, 0.0  ;;  %v4055_v5 = vpop.f32.mrf.mxu2  ;;  %v4160_v14 = vpop.f32.mrf.mxu3 }
 0x4a4   : > { %v3250_v34 = vrot.slane %v3249_v59, 1  ;;  %v8131_v44 = vadd.f32 %v4160_v14, %v4055_v5  ;;  %v3550_v11 = vpop.f32.mrf.mxu0  ;;  %v3657_v31 = vpop.f32.mrf.mxu1 }
 0x4a5   : > { %v3828_v53 = vadd.f32 %v3797_v12, %v3796_v35  ;;  %v3551_v6 = vadd.f32 %v3550_v11, %v7843_v46 }
 0x4a6   : > { %v3251_v25 = vadd.f32 %v3250_v34, %v3249_v59 }
 0x4a7   : > { %v3734_v18 = vadd.f32 %v3657_v31, %v3551_v6  ;;  %6117 = vmatmul.msk.bf16.gmra.mxu0 %vm305_vm1, %v7812_v13  ;;  %6143 = vmatmul.msk.bf16.gmra.mxu1 %vm305_vm1, %v7851_v15 }
 0x4a8   : > { %v3252_v26 = vmul.f32 %v3251_v25, %v7174_v60  ;;  %6265 = vmatmul.msk.bf16.gmra.mxu2 %vm305_vm1, %v8134_v55  ;;  %6289 = vmatmul.msk.bf16.gmra.mxu3 %vm305_vm1, %v8114_v56 }
 0x4a9   : > { %v3766_v58 = vadd.f32 %v7963_v40, %v3734_v18 }
 0x4aa   : > { %3253 = vst [vmem:[%s7180_s23 + $0x4] sm:$0x1] %v3252_v26 }
 0x4ab   : > { %v3798_v46 = vmax.f32 %v3766_v58, 0.0  ;;  %v4058_v52 = vpop.f32.mrf.mxu2  ;;  %v4163_v61 = vpop.f32.mrf.mxu3 }
 0x4ac   : > { %v8148_v2 = vadd.f32 %v4163_v61, %v4058_v52  ;;  %v3552_v13 = vpop.f32.mrf.mxu0  ;;  %v3659_v30 = vpop.f32.mrf.mxu1  ;;  %v8174_v52 = vld [vmem:[%s6779_s26 + $0x3c0] sm:$0xff] }
 0x4ad   : > { %v3829_v54 = vadd.f32 %v3828_v53, %v3798_v46  ;;  %v3553_v10 = vadd.f32 %v3552_v13, %v7847_v57 }
 0x4af   : > { %v3735_v51 = vadd.f32 %v3659_v30, %v3553_v10 }
 0x4b1   : > { %v3767_v45 = vadd.f32 %v7963_v40, %v3735_v51 }
 0x4b3   : > { %v3799_v37 = vmax.f32 %v3767_v45, 0.0  ;;  %v4060_v28 = vpop.f32.mrf.mxu2  ;;  %v4165_v3 = vpop.f32.mrf.mxu3 }
 0x4b4   : > { %v8152_v43 = vadd.f32 %v4165_v3, %v4060_v28  ;;  %v3555_v8 = vpop.f32.mrf.mxu0  ;;  %v3662_v48 = vpop.f32.mrf.mxu1 }
 0x4b5   : > { %v3830_v17 = vadd.f32 %v3829_v54, %v3799_v37  ;;  %v3556_v24 = vadd.f32 %v3555_v8, %v7860_v50 }
 0x4b7   : > { %v3736_v59 = vadd.f32 %v3662_v48, %v3556_v24  ;;  %6118 = vmatmul.msk.bf16.gmra.mxu0 %vm305_vm1, %v7832_v36  ;;  %6144 = vmatmul.msk.bf16.gmra.mxu1 %vm305_vm1, %v7867_v7 }
 0x4b8   : > { %6266 = vmatmul.msk.bf16.gmra.mxu2 %vm305_vm1, %v8155_v63  ;;  %6290 = vmatmul.msk.bf16.gmra.mxu3 %vm305_vm1, %v8134_v55 }
 0x4b9   : > { %v3768_v57 = vadd.f32 %v7963_v40, %v3736_v59 }
 0x4bb   : > { %v3800_v35 = vmax.f32 %v3768_v57, 0.0  ;;  %v4063_v12 = vpop.f32.mrf.mxu2  ;;  %v4168_v5 = vpop.f32.mrf.mxu3 }
 0x4bc   : > { %v8167_v50 = vadd.f32 %v4168_v5, %v4063_v12  ;;  %v3557_v14 = vpop.f32.mrf.mxu0  ;;  %v3664_v34 = vpop.f32.mrf.mxu1  ;;  %v8193_v12 = vld [vmem:[%s6779_s26 + $0x3c8] sm:$0xff] }
 0x4bd   : > { %v3831_v36 = vadd.f32 %v3830_v17, %v3800_v35  ;;  %v3558_v11 = vadd.f32 %v3557_v14, %v7863_v62 }
 0x4bf   : > { %v3737_v31 = vadd.f32 %v3664_v34, %v3558_v11 }
 0x4c1   : > { %v3769_v53 = vadd.f32 %v7963_v40, %v3737_v31 }
 0x4c3   : > { %v3801_v6 = vmax.f32 %v3769_v53, 0.0  ;;  %v4065_v25 = vpop.f32.mrf.mxu2  ;;  %v4170_v18 = vpop.f32.mrf.mxu3 }
 0x4c4   : > { %v8171_v26 = vadd.f32 %v4170_v18, %v4065_v25  ;;  %v3560_v58 = vpop.f32.mrf.mxu0  ;;  %v3667_v46 = vpop.f32.mrf.mxu1 }
 0x4c5   : > { %v3832_v61 = vadd.f32 %v3831_v36, %v3801_v6  ;;  %v3561_v13 = vadd.f32 %v3560_v58, %v7875_v47 }
 0x4c7   : > { %v3738_v30 = vadd.f32 %v3667_v46, %v3561_v13  ;;  %6119 = vmatmul.msk.bf16.gmra.mxu0 %vm305_vm1, %v7851_v15  ;;  %6145 = vmatmul.msk.bf16.gmra.mxu1 %vm305_vm1, %v7882_v39 }
 0x4c8   : > { %6267 = vmatmul.msk.bf16.gmra.mxu2 %vm305_vm1, %v8174_v52  ;;  %6291 = vmatmul.msk.bf16.gmra.mxu3 %vm305_vm1, %v8155_v63 }
 0x4c9   : > { %v3770_v62 = vadd.f32 %v7963_v40, %v3738_v30 }
 0x4cb   : > { %v3802_v54 = vmax.f32 %v3770_v62, 0.0  ;;  %v4068_v10 = vpop.f32.mrf.mxu2  ;;  %v4173_v51 = vpop.f32.mrf.mxu3 }
 0x4cc   : > { %v8186_v47 = vadd.f32 %v4173_v51, %v4068_v10  ;;  %v3562_v45 = vpop.f32.mrf.mxu0  ;;  %v3669_v37 = vpop.f32.mrf.mxu1  ;;  %v8212_v10 = vld [vmem:[%s6779_s26 + $0x3d0] sm:$0xff] }
 0x4cd   : > { %v3833_v15 = vadd.f32 %v3832_v61, %v3802_v54  ;;  %v3563_v28 = vadd.f32 %v3562_v45, %v7878_v29 }
 0x4cf   : > { %v3739_v3 = vadd.f32 %v3669_v37, %v3563_v28 }
 0x4d1   : > { %v3771_v8 = vadd.f32 %v7963_v40, %v3739_v3 }
 0x4d3   : > { %v3803_v48 = vmax.f32 %v3771_v8, 0.0  ;;  %v4070_v17 = vpop.f32.mrf.mxu2  ;;  %v4175_v24 = vpop.f32.mrf.mxu3 }
 0x4d4   : > { %v8190_v59 = vadd.f32 %v4175_v24, %v4070_v17  ;;  %v3565_v57 = vpop.f32.mrf.mxu0  ;;  %v3672_v35 = vpop.f32.mrf.mxu1 }
 0x4d5   : > { %v3834_v5 = vadd.f32 %v3833_v15, %v3803_v48  ;;  %v3566_v14 = vadd.f32 %v3565_v57, %v7890_v9 }
 0x4d7   : > { %v3740_v34 = vadd.f32 %v3672_v35, %v3566_v14  ;;  %6120 = vmatmul.msk.bf16.gmra.mxu0 %vm305_vm1, %v7867_v7  ;;  %6146 = vmatmul.msk.bf16.gmra.mxu1 %vm305_vm1, %v7899_v33 }
 0x4d8   : > { %6268 = vmatmul.msk.bf16.gmra.mxu2 %vm305_vm1, %v8193_v12  ;;  %6292 = vmatmul.msk.bf16.gmra.mxu3 %vm305_vm1, %v8174_v52 }
 0x4d9   : > { %v3772_v29 = vadd.f32 %v7963_v40, %v3740_v34 }
 0x4db   : > { %v3804_v36 = vmax.f32 %v3772_v29, 0.0  ;;  %v4073_v11 = vpop.f32.mrf.mxu2  ;;  %v4178_v31 = vpop.f32.mrf.mxu3 }
 0x4dc   : > { %v8205_v9 = vadd.f32 %v4178_v31, %v4073_v11  ;;  %v3567_v53 = vpop.f32.mrf.mxu0  ;;  %v3674_v6 = vpop.f32.mrf.mxu1  ;;  %v8231_v11 = vld [vmem:[%s6779_s26 + $0x3d8] sm:$0xff] }
 0x4dd   : > { %v3835_v7 = vadd.f32 %v3834_v5, %v3804_v36  ;;  %v3568_v25 = vadd.f32 %v3567_v53, %v7893_v21 }
 0x4df   : > { %v3741_v18 = vadd.f32 %v3674_v6, %v3568_v25 }
 0x4e1   : > { %v3773_v58 = vadd.f32 %v7963_v40, %v3741_v18 }
 0x4e3   : > { %v3805_v46 = vmax.f32 %v3773_v58, 0.0  ;;  %v4075_v61 = vpop.f32.mrf.mxu2  ;;  %v4180_v13 = vpop.f32.mrf.mxu3 }
 0x4e4   : > { %v8209_v30 = vadd.f32 %v4180_v13, %v4075_v61  ;;  %v3570_v62 = vpop.f32.mrf.mxu0  ;;  %v3677_v54 = vpop.f32.mrf.mxu1 }
 0x4e5   : > { %v3836_v51 = vadd.f32 %v3835_v7, %v3805_v46  ;;  %v3571_v45 = vadd.f32 %v3570_v62, %v7908_v16 }
 0x4e7   : > { %v3742_v37 = vadd.f32 %v3677_v54, %v3571_v45  ;;  %6121 = vmatmul.msk.bf16.gmra.mxu0 %vm305_vm1, %v7882_v39  ;;  %6147 = vmatmul.msk.bf16.gmra.mxu1 %vm305_vm1, %v7915_v32  ;;  %v6618_v45 = vld [vmem:[%s6779_s26 + $0x358] sm:$0xff] }
 0x4e8   : > { %6269 = vmatmul.msk.bf16.gmra.mxu2 %vm305_vm1, %v8212_v10  ;;  %6293 = vmatmul.msk.bf16.gmra.mxu3 %vm305_vm1, %v8193_v12 }
 0x4e9   : > { %v3774_v21 = vadd.f32 %v7963_v40, %v3742_v37 }
 0x4eb   : > { %v3806_v15 = vmax.f32 %v3774_v21, 0.0  ;;  %v4078_v28 = vpop.f32.mrf.mxu2  ;;  %v4183_v3 = vpop.f32.mrf.mxu3 }
 0x4ec   : > { %v8224_v16 = vadd.f32 %v4183_v3, %v4078_v28  ;;  %v3572_v8 = vpop.f32.mrf.mxu0  ;;  %v3679_v48 = vpop.f32.mrf.mxu1  ;;  %v8251_v28 = vld [vmem:[%s6779_s26 + $0x3e0] sm:$0xff] }
 0x4ed   : > { %v3837_v39 = vadd.f32 %v3836_v51, %v3806_v15  ;;  %v3573_v17 = vadd.f32 %v3572_v8, %v7911_v42 }
 0x4ef   : > { %v3743_v24 = vadd.f32 %v3679_v48, %v3573_v17 }
 0x4f1   : > { %v3775_v57 = vadd.f32 %v7963_v40, %v3743_v24 }
 0x4f3   : > { %v3807_v35 = vmax.f32 %v3775_v57, 0.0  ;;  %v4080_v5 = vpop.f32.mrf.mxu2  ;;  %v4185_v14 = vpop.f32.mrf.mxu3 }
 0x4f4   : > { %v8228_v34 = vadd.f32 %v4185_v14, %v4080_v5  ;;  %v3575_v29 = vpop.f32.mrf.mxu0  ;;  %v3682_v36 = vpop.f32.mrf.mxu1  ;;  %v8674_v5 = vld [vmem:[#allocation9_spill] sm:$0xff] }
 0x4f5   : > { %v3838_v31 = vadd.f32 %v3837_v39, %v3807_v35  ;;  %v3576_v53 = vadd.f32 %v3575_v29, %v7933_v4 }
 0x4f7   : > { %v3744_v6 = vadd.f32 %v3682_v36, %v3576_v53  ;;  %6122 = vmatmul.msk.bf16.gmra.mxu0 %vm305_vm1, %v7899_v33  ;;  %6148 = vmatmul.msk.bf16.gmra.mxu1 %vm305_vm1, %v7957_v41 }
 0x4f8   : > { %6270 = vmatmul.msk.bf16.gmra.mxu2 %vm305_vm1, %v8231_v11  ;;  %6294 = vmatmul.msk.bf16.gmra.mxu3 %vm305_vm1, %v8212_v10 }
 0x4f9   : > { %v3776_v42 = vadd.f32 %v7963_v40, %v3744_v6 }
 0x4fb   : > { %v3808_v7 = vmax.f32 %v3776_v42, 0.0  ;;  %v4083_v25 = vpop.f32.mrf.mxu2  ;;  %v4188_v4 = vpop.f32.mrf.mxu3  ;;  %v6644_v42 = vld [vmem:[%s6779_s26 + $0x3f8] sm:$0xff] }
 0x4fc   : > { %v8243_v18 = vadd.f32 %v4188_v4, %v4083_v25  ;;  %v3577_v58 = vpop.f32.mrf.mxu0  ;;  %v3684_v33 = vpop.f32.mrf.mxu1 }
 0x4fd   : > { %v3839_v46 = vadd.f32 %v3838_v31, %v3808_v7  ;;  %v3578_v41 = vadd.f32 %v3577_v58, %v7950_v38  ;;  %v6643_v58 = vld [vmem:[%s6779_s26 + $0x3f0] sm:$0xff] }
 0x4ff   : > { %v3745_v61 = vadd.f32 %v3684_v33, %v3578_v41  ;;  %v6645_v33 = vld [vmem:[%s6779_s26 + $0x400] sm:$0xff]  ;;  %v8675_v41 = vld [vmem:[#allocation11_spill] sm:$0xff] }
 0x501   : > { %v3777_v13 = vadd.f32 %v7963_v40, %v3745_v61 }
 0x503   : > { %v3809_v62 = vmax.f32 %v3777_v13, 0.0  ;;  %v4085_v54 = vpop.f32.mrf.mxu2  ;;  %v4190_v51 = vpop.f32.mrf.mxu3 }
 0x504   : > { %v8248_v37 = vadd.f32 %v4190_v51, %v4085_v54  ;;  %v3580_v21 = vpop.f32.mrf.mxu0  ;;  %v3687_v15 = vpop.f32.mrf.mxu1 }
 0x505   : > { %v3840_v3 = vadd.f32 %v3839_v46, %v3809_v62  ;;  %v3581_v8 = vadd.f32 %v3580_v21, %v7973_v19  ;;  %v8676_v62 = vld [vmem:[#allocation14_spill] sm:$0xff] }
 0x507   : > { %v3746_v48 = vadd.f32 %v3687_v15, %v3581_v8  ;;  %6123 = vmatmul.msk.bf16.gmra.mxu0 %vm305_vm1, %v7915_v32  ;;  %6149 = vmatmul.msk.bf16.gmra.mxu1 %vm305_vm1, %v6618_v45 }
 0x508   : > { %6271 = vmatmul.msk.bf16.gmra.mxu2 %vm305_vm1, %v8251_v28  ;;  %6295 = vmatmul.msk.bf16.gmra.mxu3 %vm305_vm1, %v8231_v11 }
 0x509   : > { %v3778_v38 = vadd.f32 %v7963_v40, %v3746_v48 }
 0x50b   : > { %v3810_v39 = vmax.f32 %v3778_v38, 0.0  ;;  %v4088_v17 = vpop.f32.mrf.mxu2  ;;  %v4193_v24 = vpop.f32.mrf.mxu3  ;;  %v8678_v38 = vld [vmem:[#allocation12_spill] sm:$0xff] }
 0x50c   : > { %v8262_v19 = vadd.f32 %v4193_v24, %v4088_v17  ;;  %v3582_v57 = vpop.f32.mrf.mxu0  ;;  %v3689_v32 = vpop.f32.mrf.mxu1 }
 0x50d   : > { %v3841_v35 = vadd.f32 %v3840_v3, %v3810_v39  ;;  %v3583_v14 = vadd.f32 %v3582_v57, %v8674_v5 }
 0x50f   : > { %v3747_v29 = vadd.f32 %v3689_v32, %v3583_v14 }
 0x511   : > { %v3779_v36 = vadd.f32 %v7963_v40, %v3747_v29 }
 0x513   : > { %v3811_v31 = vmax.f32 %v3779_v36, 0.0  ;;  %v4090_v53 = vpop.f32.mrf.mxu2  ;;  %v4195_v6 = vpop.f32.mrf.mxu3  ;;  %v6646_v36 = vld [vmem:[%s6779_s26 + $0x408] sm:$0xff] }
 0x514   : > { %v8267_v7 = vadd.f32 %v4195_v6, %v4090_v53  ;;  %v3585_v25 = vpop.f32.mrf.mxu0  ;;  %v3692_v4 = vpop.f32.mrf.mxu1  ;;  %v8680_v53 = vld [vmem:[#allocation15_spill] sm:$0xff] }
 0x515   : > { %v3842_v46 = vadd.f32 %v3841_v35, %v3811_v31  ;;  %v3586_v61 = vadd.f32 %v3585_v25, %v8675_v41 }
 0x517   : > { %v3748_v13 = vadd.f32 %v3692_v4, %v3586_v61  ;;  %6306 = vmatmul.msk.bf16.vlgmr.msrb.gmra.mxu0 %vm305_vm1, %v8676_v62  ;;  %6428 = vmatmul.msk.bf16.vlgmr.msrb.gmra.mxu1 %vm305_vm1, %v6644_v42  ;;  %v8681_v4 = vld [vmem:[#allocation17_spill] sm:$0xff] }
 0x518   : > { %6452 = vmatmul.msk.bf16.vlgmr.msrb.gmra.mxu2 %vm305_vm1, %v6643_v58  ;;  %6478 = vmatmul.msk.bf16.vlgmr.msrb.gmra.mxu3 %vm305_vm1, %v6645_v33 }
 0x519   : > { %v3780_v54 = vadd.f32 %v7963_v40, %v3748_v13 }
 0x51b   : > { %v3812_v51 = vmax.f32 %v3780_v54, 0.0  ;;  %v4093_v45 = vpop.f32.mrf.mxu2  ;;  %v4198_v21 = vpop.f32.mrf.mxu3 }
 0x51c   : > { %v8278_v15 = vadd.f32 %v4198_v21, %v4093_v45  ;;  %v3587_v3 = vpop.f32.mrf.mxu0  ;;  %v3694_v8 = vpop.f32.mrf.mxu1  ;;  %v8683_v45 = vld [vmem:[#allocation16_spill] sm:$0xff] }
 0x51d   : > { %v3843_v48 = vadd.f32 %v3842_v46, %v3812_v51  ;;  %v3588_v39 = vadd.f32 %v3587_v3, %v8678_v38 }
 0x51e   : > { %8677 = vst [vmem:[#allocation9_spill] sm:$0xff] %v8278_v15 }
 0x51f   : > { %v3749_v17 = vadd.f32 %v3694_v8, %v3588_v39 }
 0x521   : > { %v3781_v24 = vadd.f32 %v7963_v40, %v3749_v17 }
 0x523   : > { %v3813_v57 = vmax.f32 %v3781_v24, 0.0  ;;  %v4095_v32 = vpop.f32.mrf.mxu2  ;;  %v4200_v35 = vpop.f32.mrf.mxu3 }
 0x524   : > { %v8282_v5 = vadd.f32 %v4200_v35, %v4095_v32  ;;  %v3590_v14 = vpop.f32.mrf.mxu0  ;;  %v3697_v29 = vpop.f32.mrf.mxu1  ;;  %v8685_v35 = vld [vmem:[#allocation18_spill] sm:$0xff] }
 0x525   : > { %v3844_v31 = vadd.f32 %v3843_v48, %v3813_v57  ;;  %v3591_v6 = vadd.f32 %v3590_v14, %v8680_v53  ;;  %v6647_v57 = vld [vmem:[%s6779_s26 + $0x410] sm:$0xff] }
 0x526   : > { %8679 = vst [vmem:[#allocation11_spill] sm:$0xff] %v8282_v5  ;;  %v8686_v53 = vld [vmem:[#allocation4_spill] sm:$0xff] }
 0x527   : > { %v3750_v25 = vadd.f32 %v3697_v29, %v3591_v6  ;;  %6307 = vmatmul.msk.bf16.gmra.mxu0 %vm305_vm1, %v8681_v4  ;;  %6429 = vmatmul.msk.bf16.gmra.mxu1 %vm305_vm1, %v6645_v33  ;;  %v8349_v5 = vld [vmem:[%s6779_s26 + $0x430] sm:$0xff] }
 0x528   : > { %6453 = vmatmul.msk.bf16.gmra.mxu2 %vm305_vm1, %v6644_v42  ;;  %6479 = vmatmul.msk.bf16.gmra.mxu3 %vm305_vm1, %v6646_v36 }
 0x529   : > { %v3782_v58 = vadd.f32 %v7963_v40, %v3750_v25 }
 0x52b   : > { %v3814_v46 = vmax.f32 %v3782_v58, 0.0  ;;  %v4098_v41 = vpop.f32.mrf.mxu2  ;;  %v4203_v61 = vpop.f32.mrf.mxu3 }
 0x52c   : > { %v8292_v13 = vadd.f32 %v4203_v61, %v4098_v41  ;;  %v3592_v62 = vpop.f32.mrf.mxu0  ;;  %v3699_v54 = vpop.f32.mrf.mxu1 }
 0x52d   : > { %v3845_v51 = vadd.f32 %v3844_v31, %v3814_v46  ;;  %v3593_v21 = vadd.f32 %v3592_v62, %v8683_v45 }
 0x52e   : > { %8682 = vst [vmem:[#allocation14_spill] sm:$0xff] %v8292_v13 }
 0x52f   : > { %v3751_v3 = vadd.f32 %v3699_v54, %v3593_v21 }
 0x531   : > { %v3783_v8 = vadd.f32 %v7963_v40, %v3751_v3  ;;  %v8689_v3 = vld [vmem:[#allocation7_spill] sm:$0xff] }
 0x533   : > { %v3815_v48 = vmax.f32 %v3783_v8, 0.0  ;;  %v4100_v42 = vpop.f32.mrf.mxu2  ;;  %v4205_v38 = vpop.f32.mrf.mxu3 }
 0x534   : > { %v8296_v39 = vadd.f32 %v4205_v38, %v4100_v42  ;;  %v3595_v17 = vpop.f32.mrf.mxu0  ;;  %v3702_v24 = vpop.f32.mrf.mxu1 }
 0x535   : > { %v3846_v32 = vadd.f32 %v3845_v51, %v3815_v48  ;;  %v3596_v14 = vadd.f32 %v3595_v17, %v8685_v35 }
 0x536   : > { %8684 = vst [vmem:[#allocation12_spill] sm:$0xff] %v8296_v39 }
 0x537   : > { %v3752_v29 = vadd.f32 %v3702_v24, %v3596_v14  ;;  %6308 = vmatmul.msk.bf16.gmra.mxu0 %vm305_vm1, %v8686_v53  ;;  %6430 = vmatmul.msk.bf16.gmra.mxu1 %vm305_vm1, %v6646_v36  ;;  %v8692_v53 = vld [vmem:[#allocation10_spill] sm:$0xff] }
 0x538   : > { %6454 = vmatmul.msk.bf16.gmra.mxu2 %vm305_vm1, %v6645_v33  ;;  %6480 = vmatmul.msk.bf16.gmra.mxu3 %vm305_vm1, %v6647_v57  ;;  %v6648_v33 = vld [vmem:[%s6779_s26 + $0x418] sm:$0xff] }
 0x539   : > { %v3784_v31 = vadd.f32 %v7963_v40, %v3752_v29  ;;  %v6649_v29 = vld [vmem:[%s6779_s26 + $0x420] sm:$0xff] }
 0x53b   : > { %v3816_v6 = vmax.f32 %v3784_v31, 0.0  ;;  %v4103_v25 = vpop.f32.mrf.mxu2  ;;  %v4208_v4 = vpop.f32.mrf.mxu3 }
 0x53c   : > { %v8306_v58 = vadd.f32 %v4208_v4, %v4103_v25  ;;  %v3597_v46 = vpop.f32.mrf.mxu0  ;;  %v3704_v41 = vpop.f32.mrf.mxu1 }
 0x53d   : > { %v8308_v61 = vadd.f32 %v3846_v32, %v3816_v6 }
 0x53e   : > { %8687 = vst [vmem:[#allocation15_spill] sm:$0xff] %v8306_v58 }
 0x543   : > { %v4105_v62 = vpop.f32.mrf.mxu2  ;;  %v4210_v54 = vpop.f32.mrf.mxu3 }
 0x544   : > { %v8310_v51 = vadd.f32 %v4210_v54, %v4105_v62  ;;  %v3600_v45 = vpop.f32.mrf.mxu0  ;;  %v3707_v21 = vpop.f32.mrf.mxu1 }
 0x546   : > { %8688 = vst [vmem:[#allocation17_spill] sm:$0xff] %v8310_v51  ;;  %v8697_v51 = vld [vmem:[#allocation5_spill] sm:$0xff] }
 0x547   : > { %6309 = vmatmul.msk.bf16.gmra.mxu0 %vm305_vm1, %v8689_v3  ;;  %6431 = vmatmul.msk.bf16.gmra.mxu1 %vm305_vm1, %v6647_v57 }
 0x548   : > { %6455 = vmatmul.msk.bf16.gmra.mxu2 %vm305_vm1, %v6646_v36  ;;  %6481 = vmatmul.msk.bf16.gmra.mxu3 %vm305_vm1, %v6648_v33 }
 0x54b   : > { %v4108_v40 = vpop.f32.mrf.mxu2  ;;  %v4213_v8 = vpop.f32.mrf.mxu3 }
 0x54c   : > { %v8318_v48 = vadd.f32 %v4213_v8, %v4108_v40  ;;  %v3602_v42 = vpop.f32.mrf.mxu0  ;;  %v3709_v38 = vpop.f32.mrf.mxu1 }
 0x54d   : > { %v3603_v58 = vadd.f32 %v3602_v42, %v8697_v51 }
 0x54e   : > { %8690 = vst [vmem:[#allocation16_spill] sm:$0xff] %v8318_v48 }
 0x54f   : > { %v3755_v51 = vadd.f32 %v3709_v38, %v3603_v58 }
 0x553   : > { %v4110_v17 = vpop.f32.mrf.mxu2  ;;  %v4215_v24 = vpop.f32.mrf.mxu3 }
 0x554   : > { %v8320_v32 = vadd.f32 %v4215_v24, %v4110_v17  ;;  %v3605_v35 = vpop.f32.mrf.mxu0  ;;  %v3712_v14 = vpop.f32.mrf.mxu1  ;;  %v8333_v17 = vld [vmem:[%s6779_s26 + $0x428] sm:$0xff] }
 0x556   : > { %8691 = vst [vmem:[#allocation18_spill] sm:$0xff] %v8320_v32 }
 0x557   : > { %6310 = vmatmul.msk.bf16.gmra.mxu0 %vm305_vm1, %v8692_v53  ;;  %6432 = vmatmul.msk.bf16.gmra.mxu1 %vm305_vm1, %v6648_v33 }
 0x558   : > { %6456 = vmatmul.msk.bf16.gmra.mxu2 %vm305_vm1, %v6647_v57  ;;  %6482 = vmatmul.msk.bf16.gmra.mxu3 %vm305_vm1, %v6649_v29 }
 0x55b   : > { %v4113_v36 = vpop.f32.mrf.mxu2  ;;  %v4218_v31 = vpop.f32.mrf.mxu3 }
 0x55c   : > { %v8328_v6 = vadd.f32 %v4218_v31, %v4113_v36  ;;  %v3607_v25 = vpop.f32.mrf.mxu0  ;;  %v3714_v4 = vpop.f32.mrf.mxu1 }
 0x55e   : > { %8693 = vst [vmem:[#allocation4_spill] sm:$0xff] %v8328_v6 }
 0x563   : > { %v4115_v62 = vpop.f32.mrf.mxu2  ;;  %v4220_v54 = vpop.f32.mrf.mxu3 }
 0x564   : > { %v8330_v3 = vadd.f32 %v4220_v54, %v4115_v62  ;;  %v3610_v40 = vpop.f32.mrf.mxu0  ;;  %v3717_v8 = vpop.f32.mrf.mxu1  ;;  %v8695_v62 = vld [vmem:[#allocation2_spill] sm:$0xff] }
 0x565   : > { %v3598_v54 = vadd.f32 %v3597_v46, %v8695_v62  ;;  %v8359_v46 = vld [vmem:[%s8591_s2] ss:$0 sm:$0xff] }
 0x566   : > { %8694 = vst [vmem:[#allocation7_spill] sm:$0xff] %v8330_v3  ;;  %v8696_v3 = vld [vmem:[#allocation3_spill] sm:$0xff] }
 0x567   : > { %6311 = vmatmul.msk.bf16.gmra.mxu0 %vm305_vm1, %v8074_v0  ;;  %6433 = vmatmul.msk.bf16.gmra.mxu1 %vm305_vm1, %v6649_v29  ;;  %v3601_v6 = vadd.f32 %v3600_v45, %v8696_v3  ;;  %v3753_v48 = vadd.f32 %v3704_v41, %v3598_v54  ;;  %v8700_v45 = vld [vmem:[#allocation8_spill] sm:$0xff]  ;;  %v3787_v54 = vadd.f32 %v8359_v46, %v3755_v51 }
 0x568   : > { %6457 = vmatmul.msk.bf16.gmra.mxu2 %vm305_vm1, %v6648_v33  ;;  %6483 = vmatmul.msk.bf16.gmra.mxu3 %vm305_vm1, %v8333_v17 }
 0x569   : > { %v3754_v15 = vadd.f32 %v3707_v21, %v3601_v6  ;;  %v3785_v41 = vadd.f32 %v8359_v46, %v3753_v48  ;;  %v3608_v21 = vadd.f32 %v3607_v25, %v8700_v45 }
 0x56b   : > { %v4118_v57 = vpop.f32.mrf.mxu2  ;;  %v4223_v24 = vpop.f32.mrf.mxu3  ;;  %v3817_v62 = vmax.f32 %v3785_v41, 0.0  ;;  %v3757_v38 = vadd.f32 %v3714_v4, %v3608_v21 }
 0x56c   : > { %v8341_v53 = vadd.f32 %v4223_v24, %v4118_v57  ;;  %v3612_v36 = vpop.f32.mrf.mxu0  ;;  %v3719_v31 = vpop.f32.mrf.mxu1  ;;  %v8699_v57 = vld [vmem:[#allocation6_spill] sm:$0xff] }
 0x56d   : > { %v3606_v24 = vadd.f32 %v3605_v35, %v8699_v57 }
 0x56f   : > { %v3756_v42 = vadd.f32 %v3712_v14, %v3606_v24  ;;  %v3848_v14 = vadd.f32 %v8308_v61, %v3817_v62  ;;  %v3789_v24 = vadd.f32 %v8359_v46, %v3757_v38 }
 0x571   : > { %v3788_v25 = vadd.f32 %v8359_v46, %v3756_v42  ;;  %v3821_v61 = vmax.f32 %v3789_v24, 0.0 }
 0x573   : > { %v4120_v32 = vpop.f32.mrf.mxu2  ;;  %v4225_v0 = vpop.f32.mrf.mxu3 }
 0x574   : > { %v8346_v33 = vadd.f32 %v4225_v0, %v4120_v32  ;;  %v3615_v39 = vpop.f32.mrf.mxu0  ;;  %v3722_v13 = vpop.f32.mrf.mxu1  ;;  %v8701_v32 = vld [vmem:[#allocation13_spill] sm:$0xff] }
 0x575   : > { %v3611_v35 = vadd.f32 %v3610_v40, %v8701_v32  ;;  %v3819_v40 = vmax.f32 %v3787_v54, 0.0 }
 0x576   : > { %8698 = vst [vmem:[#allocation10_spill] sm:$0xff] %v8346_v33 }
 0x577   : > { %6312 = vmatmul.msk.bf16.gmra.mxu0 %vm305_vm1, %v8092_v49  ;;  %6434 = vmatmul.msk.bf16.gmra.mxu1 %vm305_vm1, %v8333_v17  ;;  %v3786_v49 = vadd.f32 %v8359_v46, %v3754_v15  ;;  %v3758_v45 = vadd.f32 %v3717_v8, %v3611_v35  ;;  %v3616_v15 = vadd.f32 %v3615_v39, %v8084_v23  ;;  %v8381_v35 = vld [vmem:[%s6779_s26 + $0x438] sm:$0xff] }
 0x578   : > { %6458 = vmatmul.msk.bf16.gmra.mxu2 %vm305_vm1, %v6649_v29  ;;  %6484 = vmatmul.msk.bf16.gmra.mxu3 %vm305_vm1, %v8349_v5  ;;  %v8702_v29 = vld [vmem:[#allocation19_spill] sm:$0xff] }
 0x579   : > { %v3613_v57 = vadd.f32 %v3612_v36, %v8702_v29  ;;  %v3818_v33 = vmax.f32 %v3786_v49, 0.0  ;;  %v3790_v4 = vadd.f32 %v8359_v46, %v3758_v45  ;;  %v3760_v36 = vadd.f32 %v3722_v13, %v3616_v15 }
 0x57b   : > { %v4123_v6 = vpop.f32.mrf.mxu2  ;;  %v4228_v3 = vpop.f32.mrf.mxu3  ;;  %v3759_v41 = vadd.f32 %v3719_v31, %v3613_v57  ;;  %v3849_v32 = vadd.f32 %v3848_v14, %v3818_v33  ;;  %v3822_v62 = vmax.f32 %v3790_v4, 0.0  ;;  %v3792_v54 = vadd.f32 %v8359_v46, %v3760_v36 }
 0x57c   : > { %v8369_v0 = vadd.f32 %v4228_v3, %v4123_v6  ;;  %v3617_v58 = vpop.f32.mrf.mxu0  ;;  %v3724_v48 = vpop.f32.mrf.mxu1  ;;  %v3820_v6 = vmax.f32 %v3788_v25, 0.0 }
 0x57d   : > { %v3618_v51 = vadd.f32 %v3617_v58, %v8088_v22  ;;  %v3850_v42 = vadd.f32 %v3849_v32, %v3819_v40  ;;  %v3791_v3 = vadd.f32 %v8359_v46, %v3759_v41  ;;  %v3824_v29 = vmax.f32 %v3792_v54, 0.0 }
 0x57f   : > { %v3761_v31 = vadd.f32 %v3724_v48, %v3618_v51  ;;  %v3851_v33 = vadd.f32 %v3850_v42, %v3820_v6  ;;  %v3823_v48 = vmax.f32 %v3791_v3, 0.0  ;;  %v8403_v3 = vld [vmem:[%s6779_s26 + $0x440] sm:$0xff] }
 0x581   : > { %v3852_v58 = vadd.f32 %v3851_v33, %v3821_v61 }
 0x583   : > { %v4125_v21 = vpop.f32.mrf.mxu2  ;;  %v4230_v49 = vpop.f32.mrf.mxu3  ;;  %v3853_v38 = vadd.f32 %v3852_v58, %v3822_v62 }
 0x584   : > { %v8378_v8 = vadd.f32 %v4230_v49, %v4125_v21  ;;  %v3620_v23 = vpop.f32.mrf.mxu0  ;;  %v3727_v39 = vpop.f32.mrf.mxu1 }
 0x585   : > { %v3621_v22 = vadd.f32 %v3620_v23, %v8106_v27  ;;  %v3793_v27 = vadd.f32 %v8359_v46, %v3761_v31  ;;  %v3854_v40 = vadd.f32 %v3853_v38, %v3823_v48 }
 0x587   : > { %v3762_v13 = vadd.f32 %v3727_v39, %v3621_v22  ;;  %6313 = vmatmul.msk.bf16.gmra.mxu0 %vm305_vm1, %v8114_v56  ;;  %6435 = vmatmul.msk.bf16.gmra.mxu1 %vm305_vm1, %v8349_v5  ;;  %v3855_v41 = vadd.f32 %v3854_v40, %v3824_v29 }
 0x588   : > { %6459 = vmatmul.msk.bf16.gmra.mxu2 %vm305_vm1, %v8333_v17  ;;  %6485 = vmatmul.msk.bf16.gmra.mxu3 %vm305_vm1, %v8381_v35  ;;  %v3825_v17 = vmax.f32 %v3793_v27, 0.0 }
 0x589   : > { %v3794_v57 = vadd.f32 %v8359_v46, %v3762_v13 }
 0x58a   : > { %v3856_v6 = vadd.f32 %v3855_v41, %v3825_v17 }
 0x58b   : > { %v4128_v25 = vpop.f32.mrf.mxu2  ;;  %v4233_v45 = vpop.f32.mrf.mxu3  ;;  %v3826_v51 = vmax.f32 %v3794_v57, 0.0 }
 0x58c   : > { %v8396_v56 = vadd.f32 %v4233_v45, %v4128_v25  ;;  %v3622_v15 = vpop.f32.mrf.mxu0  ;;  %v3729_v14 = vpop.f32.mrf.mxu1 }
 0x58d   : > { %v3623_v24 = vadd.f32 %v3622_v15, %v8111_v1  ;;  %v3857_v36 = vadd.f32 %v3856_v6, %v3826_v51  ;;  %v8419_v6 = vld [vmem:[%s6779_s26 + $0x448] sm:$0xff] }
 0x58f   : > { %v3763_v32 = vadd.f32 %v3729_v14, %v3623_v24 }
 0x591   : > { %v3795_v4 = vadd.f32 %v8359_v46, %v3763_v32 }
 0x593   : > { %v3827_v21 = vmax.f32 %v3795_v4, 0.0  ;;  %v4130_v49 = vpop.f32.mrf.mxu2  ;;  %v4235_v42 = vpop.f32.mrf.mxu3 }
 0x594   : > { %v8400_v23 = vadd.f32 %v4235_v42, %v4130_v49  ;;  %v4265_v39 = vpop.f32.mrf.mxu0  ;;  %v4666_v61 = vpop.f32.mrf.mxu1 }
 0x595   : > { %v3858_v31 = vadd.f32 %v3857_v36, %v3827_v21  ;;  %v4345_v22 = vadd.f32 %v4265_v39, %v8126_v20 }
 0x597   : > { %v3859_v1 = vrot.slane %v3858_v31, 4  ;;  %6314 = vmatmul.msk.bf16.gmra.mxu0 %vm305_vm1, %v8134_v55  ;;  %6436 = vmatmul.msk.bf16.gmra.mxu1 %vm305_vm1, %v8381_v35  ;;  %v4377_v55 = vadd.f32 %v8359_v46, %v4345_v22 }
 0x598   : > { %6460 = vmatmul.msk.bf16.gmra.mxu2 %vm305_vm1, %v8349_v5  ;;  %6486 = vmatmul.msk.bf16.gmra.mxu3 %vm305_vm1, %v8403_v3 }
 0x599   : > { %v3860_v33 = vadd.f32 %v3859_v1, %v3858_v31  ;;  %v4409_v45 = vmax.f32 %v4377_v55, 0.0 }
 0x59b   : > { %v3861_v62 = vrot.slane %v3860_v33, 2  ;;  %v4771_v54 = vpop.f32.mrf.mxu2  ;;  %v4878_v13 = vpop.f32.mrf.mxu3 }
 0x59c   : > { %v4772_v58 = vadd.f32 %v4771_v54, %v4666_v61  ;;  %v4267_v48 = vpop.f32.mrf.mxu0  ;;  %v4668_v20 = vpop.f32.mrf.mxu1 }
 0x59d   : > { %v3862_v27 = vadd.f32 %v3861_v62, %v3860_v33  ;;  %v4346_v38 = vadd.f32 %v4267_v48, %v8131_v44 }
 0x59e   : > { %v4958_v29 = vadd.f32 %v4878_v13, %v4772_v58 }
 0x59f   : > { %v3863_v57 = vrot.slane %v3862_v27, 1  ;;  %v4378_v5 = vadd.f32 %v8359_v46, %v4346_v38 }
 0x5a0   : > { %v4990_v4 = vadd.f32 %v8359_v46, %v4958_v29 }
 0x5a1   : > { %v3864_v25 = vadd.f32 %v3863_v57, %v3862_v27  ;;  %v4410_v15 = vmax.f32 %v4378_v5, 0.0 }
 0x5a2   : > { %v5022_v42 = vmax.f32 %v4990_v4, 0.0 }
 0x5a3   : > { %v3865_v14 = vmul.f32 %v3864_v25, %v7174_v60  ;;  %v4441_v40 = vadd.f32 %v4410_v15, %v4409_v45  ;;  %v4773_v17 = vpop.f32.mrf.mxu2  ;;  %v4880_v24 = vpop.f32.mrf.mxu3  ;;  %v8438_v45 = vld [vmem:[%s6779_s26 + $0x450] sm:$0xff] }
 0x5a4   : > { %v4774_v41 = vadd.f32 %v4773_v17, %v4668_v20  ;;  %v4270_v51 = vpop.f32.mrf.mxu0  ;;  %v4671_v32 = vpop.f32.mrf.mxu1 }
 0x5a5   : > { %3866 = vst [vmem:[%s7180_s23 + $0x5] sm:$0x1] %v3865_v14  ;;  %v4347_v44 = vadd.f32 %v4270_v51, %v8148_v2 }
 0x5a6   : > { %v4959_v36 = vadd.f32 %v4880_v24, %v4774_v41 }
 0x5a7   : > { %v4379_v21 = vadd.f32 %v8359_v46, %v4347_v44  ;;  %6315 = vmatmul.msk.bf16.gmra.mxu0 %vm305_vm1, %v8155_v63  ;;  %6437 = vmatmul.msk.bf16.gmra.mxu1 %vm305_vm1, %v8403_v3 }
 0x5a8   : > { %v4991_v49 = vadd.f32 %v8359_v46, %v4959_v36  ;;  %6461 = vmatmul.msk.bf16.gmra.mxu2 %vm305_vm1, %v8381_v35  ;;  %6487 = vmatmul.msk.bf16.gmra.mxu3 %vm305_vm1, %v8419_v6 }
 0x5a9   : > { %v4411_v2 = vmax.f32 %v4379_v21, 0.0 }
 0x5aa   : > { %v5023_v39 = vmax.f32 %v4991_v49, 0.0 }
 0x5ab   : > { %v4442_v61 = vadd.f32 %v4441_v40, %v4411_v2  ;;  %v4776_v31 = vpop.f32.mrf.mxu2  ;;  %v4883_v22 = vpop.f32.mrf.mxu3 }
 0x5ac   : > { %v5054_v1 = vadd.f32 %v5023_v39, %v5022_v42  ;;  %v4777_v33 = vadd.f32 %v4776_v31, %v4671_v32  ;;  %v4272_v63 = vpop.f32.mrf.mxu0  ;;  %v4673_v62 = vpop.f32.mrf.mxu1 }
 0x5ad   : > { %v4348_v54 = vadd.f32 %v4272_v63, %v8152_v43 }
 0x5ae   : > { %v4960_v13 = vadd.f32 %v4883_v22, %v4777_v33 }
 0x5af   : > { %v4380_v58 = vadd.f32 %v8359_v46, %v4348_v54 }
 0x5b0   : > { %v4992_v35 = vadd.f32 %v8359_v46, %v4960_v13 }
 0x5b1   : > { %v4412_v48 = vmax.f32 %v4380_v58, 0.0 }
 0x5b2   : > { %v5024_v20 = vmax.f32 %v4992_v35, 0.0 }
 0x5b3   : > { %v4443_v27 = vadd.f32 %v4442_v61, %v4412_v48  ;;  %v4778_v55 = vpop.f32.mrf.mxu2  ;;  %v4885_v38 = vpop.f32.mrf.mxu3 }
 0x5b4   : > { %v5055_v29 = vadd.f32 %v5054_v1, %v5024_v20  ;;  %v4779_v57 = vadd.f32 %v4778_v55, %v4673_v62  ;;  %v4275_v5 = vpop.f32.mrf.mxu0  ;;  %v4676_v25 = vpop.f32.mrf.mxu1  ;;  %v8455_v62 = vld [vmem:[%s6779_s26 + $0x458] sm:$0xff] }
 0x5b5   : > { %v4349_v15 = vadd.f32 %v4275_v5, %v8167_v50 }
 0x5b6   : > { %v4961_v14 = vadd.f32 %v4885_v38, %v4779_v57 }
 0x5b7   : > { %v4381_v43 = vadd.f32 %v8359_v46, %v4349_v15  ;;  %6316 = vmatmul.msk.bf16.gmra.mxu0 %vm305_vm1, %v8174_v52  ;;  %6438 = vmatmul.msk.bf16.gmra.mxu1 %vm305_vm1, %v8419_v6 }
 0x5b8   : > { %v4993_v40 = vadd.f32 %v8359_v46, %v4961_v14  ;;  %6462 = vmatmul.msk.bf16.gmra.mxu2 %vm305_vm1, %v8403_v3  ;;  %6488 = vmatmul.msk.bf16.gmra.mxu3 %vm305_vm1, %v8438_v45 }
 0x5b9   : > { %v4413_v17 = vmax.f32 %v4381_v43, 0.0 }
 0x5ba   : > { %v5025_v24 = vmax.f32 %v4993_v40, 0.0 }
 0x5bb   : > { %v4444_v50 = vadd.f32 %v4443_v27, %v4413_v17  ;;  %v4781_v41 = vpop.f32.mrf.mxu2  ;;  %v4888_v51 = vpop.f32.mrf.mxu3 }
 0x5bc   : > { %v5056_v32 = vadd.f32 %v5055_v29, %v5025_v24  ;;  %v4782_v44 = vadd.f32 %v4781_v41, %v4676_v25  ;;  %v4277_v52 = vpop.f32.mrf.mxu0  ;;  %v4678_v4 = vpop.f32.mrf.mxu1 }
 0x5bd   : > { %v4350_v36 = vadd.f32 %v4277_v52, %v8171_v26 }
 0x5be   : > { %v4962_v21 = vadd.f32 %v4888_v51, %v4782_v44 }
 0x5bf   : > { %v4382_v49 = vadd.f32 %v8359_v46, %v4350_v36 }
 0x5c0   : > { %v4994_v3 = vadd.f32 %v8359_v46, %v4962_v21 }
 0x5c1   : > { %v4414_v2 = vmax.f32 %v4382_v49, 0.0 }
 0x5c2   : > { %v5026_v42 = vmax.f32 %v4994_v3, 0.0 }
 0x5c3   : > { %v4445_v39 = vadd.f32 %v4444_v50, %v4414_v2  ;;  %v4783_v61 = vpop.f32.mrf.mxu2  ;;  %v4890_v31 = vpop.f32.mrf.mxu3 }
 0x5c4   : > { %v5057_v22 = vadd.f32 %v5056_v32, %v5026_v42  ;;  %v4784_v1 = vadd.f32 %v4783_v61, %v4678_v4  ;;  %v4280_v33 = vpop.f32.mrf.mxu0  ;;  %v4681_v63 = vpop.f32.mrf.mxu1  ;;  %v8472_v32 = vld [vmem:[%s6779_s26 + $0x460] sm:$0xff] }
 0x5c5   : > { %v4351_v54 = vadd.f32 %v4280_v33, %v8186_v47 }
 0x5c6   : > { %v4963_v13 = vadd.f32 %v4890_v31, %v4784_v1 }
 0x5c7   : > { %v4383_v26 = vadd.f32 %v8359_v46, %v4351_v54  ;;  %6317 = vmatmul.msk.bf16.gmra.mxu0 %vm305_vm1, %v8193_v12  ;;  %6439 = vmatmul.msk.bf16.gmra.mxu1 %vm305_vm1, %v8438_v45 }
 0x5c8   : > { %v4995_v58 = vadd.f32 %v8359_v46, %v4963_v13  ;;  %6463 = vmatmul.msk.bf16.gmra.mxu2 %vm305_vm1, %v8419_v6  ;;  %6489 = vmatmul.msk.bf16.gmra.mxu3 %vm305_vm1, %v8455_v62 }
 0x5c9   : > { %v4415_v35 = vmax.f32 %v4383_v26, 0.0 }
 0x5ca   : > { %v5027_v48 = vmax.f32 %v4995_v58, 0.0 }
 0x5cb   : > { %v4446_v47 = vadd.f32 %v4445_v39, %v4415_v35  ;;  %v4786_v20 = vpop.f32.mrf.mxu2  ;;  %v4893_v27 = vpop.f32.mrf.mxu3 }
 0x5cc   : > { %v5058_v55 = vadd.f32 %v5057_v22, %v5027_v48  ;;  %v4787_v38 = vadd.f32 %v4786_v20, %v4681_v63  ;;  %v4282_v12 = vpop.f32.mrf.mxu0  ;;  %v4683_v29 = vpop.f32.mrf.mxu1 }
 0x5cd   : > { %v4352_v57 = vadd.f32 %v4282_v12, %v8190_v59 }
 0x5ce   : > { %v4964_v5 = vadd.f32 %v4893_v27, %v4787_v38 }
 0x5cf   : > { %v4384_v25 = vadd.f32 %v8359_v46, %v4352_v57 }
 0x5d0   : > { %v4996_v6 = vadd.f32 %v8359_v46, %v4964_v5 }
 0x5d1   : > { %v4416_v15 = vmax.f32 %v4384_v25, 0.0 }
 0x5d2   : > { %v5028_v14 = vmax.f32 %v4996_v6, 0.0 }
 0x5d3   : > { %v4447_v43 = vadd.f32 %v4446_v47, %v4416_v15  ;;  %v4788_v40 = vpop.f32.mrf.mxu2  ;;  %v4895_v17 = vpop.f32.mrf.mxu3  ;;  %v8489_v47 = vld [vmem:[%s6779_s26 + $0x468] sm:$0xff] }
 0x5d4   : > { %v5059_v24 = vadd.f32 %v5058_v55, %v5028_v14  ;;  %v4789_v50 = vadd.f32 %v4788_v40, %v4683_v29  ;;  %v4285_v41 = vpop.f32.mrf.mxu0  ;;  %v4686_v51 = vpop.f32.mrf.mxu1 }
 0x5d5   : > { %v4353_v44 = vadd.f32 %v4285_v41, %v8205_v9 }
 0x5d6   : > { %v4965_v52 = vadd.f32 %v4895_v17, %v4789_v50 }
 0x5d7   : > { %v4385_v59 = vadd.f32 %v8359_v46, %v4353_v44  ;;  %6318 = vmatmul.msk.bf16.gmra.mxu0 %vm305_vm1, %v8212_v10  ;;  %6440 = vmatmul.msk.bf16.gmra.mxu1 %vm305_vm1, %v8455_v62 }
 0x5d8   : > { %v4997_v4 = vadd.f32 %v8359_v46, %v4965_v52  ;;  %6464 = vmatmul.msk.bf16.gmra.mxu2 %vm305_vm1, %v8438_v45  ;;  %6490 = vmatmul.msk.bf16.gmra.mxu3 %vm305_vm1, %v8472_v32 }
 0x5d9   : > { %v4417_v36 = vmax.f32 %v4385_v59, 0.0 }
 0x5da   : > { %v5029_v21 = vmax.f32 %v4997_v4, 0.0  ;;  %v6659_v4 = vld [vmem:[%s6779_s26 + $0x470] sm:$0xff] }
 0x5db   : > { %v4448_v9 = vadd.f32 %v4447_v43, %v4417_v36  ;;  %v4791_v49 = vpop.f32.mrf.mxu2  ;;  %v4898_v3 = vpop.f32.mrf.mxu3 }
 0x5dc   : > { %v5060_v2 = vadd.f32 %v5059_v24, %v5029_v21  ;;  %v4792_v42 = vadd.f32 %v4791_v49, %v4686_v51  ;;  %v4287_v10 = vpop.f32.mrf.mxu0  ;;  %v4688_v39 = vpop.f32.mrf.mxu1 }
 0x5dd   : > { %v4354_v61 = vadd.f32 %v4287_v10, %v8209_v30 }
 0x5de   : > { %v4966_v31 = vadd.f32 %v4898_v3, %v4792_v42 }
 0x5df   : > { %v4386_v22 = vadd.f32 %v8359_v46, %v4354_v61 }
 0x5e0   : > { %v4998_v45 = vadd.f32 %v8359_v46, %v4966_v31 }
 0x5e1   : > { %v4418_v1 = vmax.f32 %v4386_v22, 0.0 }
 0x5e2   : > { %v5030_v33 = vmax.f32 %v4998_v45, 0.0 }
 0x5e3   : > { %v4449_v63 = vadd.f32 %v4448_v9, %v4418_v1  ;;  %v4793_v54 = vpop.f32.mrf.mxu2  ;;  %v4900_v13 = vpop.f32.mrf.mxu3 }
 0x5e4   : > { %v5061_v26 = vadd.f32 %v5060_v2, %v5030_v33  ;;  %v4794_v58 = vadd.f32 %v4793_v54, %v4688_v39  ;;  %v4290_v35 = vpop.f32.mrf.mxu0  ;;  %v4691_v48 = vpop.f32.mrf.mxu1 }
 0x5e5   : > { %v4355_v20 = vadd.f32 %v4290_v35, %v8224_v16 }
 0x5e6   : > { %v4967_v27 = vadd.f32 %v4900_v13, %v4794_v58 }
 0x5e7   : > { %v4387_v30 = vadd.f32 %v8359_v46, %v4355_v20  ;;  %6319 = vmatmul.msk.bf16.gmra.mxu0 %vm305_vm1, %v8231_v11  ;;  %6441 = vmatmul.msk.bf16.gmra.mxu1 %vm305_vm1, %v8472_v32 }
 0x5e8   : > { %v4999_v55 = vadd.f32 %v8359_v46, %v4967_v27  ;;  %6465 = vmatmul.msk.bf16.gmra.mxu2 %vm305_vm1, %v8455_v62  ;;  %6491 = vmatmul.msk.bf16.gmra.mxu3 %vm305_vm1, %v8489_v47  ;;  %v6660_v27 = vld [vmem:[%s6779_s26 + $0x478] sm:$0xff] }
 0x5e9   : > { %v4419_v38 = vmax.f32 %v4387_v30, 0.0 }
 0x5ea   : > { %v5031_v12 = vmax.f32 %v4999_v55, 0.0 }
 0x5eb   : > { %v4450_v16 = vadd.f32 %v4449_v63, %v4419_v38  ;;  %v4796_v29 = vpop.f32.mrf.mxu2  ;;  %v4903_v57 = vpop.f32.mrf.mxu3 }
 0x5ec   : > { %v5062_v5 = vadd.f32 %v5061_v26, %v5031_v12  ;;  %v4797_v25 = vadd.f32 %v4796_v29, %v4691_v48  ;;  %v4292_v11 = vpop.f32.mrf.mxu0  ;;  %v4693_v6 = vpop.f32.mrf.mxu1  ;;  %v6639_v26 = vld [vmem:[%s6779_s26 + $0x3e8] sm:$0xff] }
 0x5ed   : > { %v4356_v15 = vadd.f32 %v4292_v11, %v8228_v34 }
 0x5ee   : > { %v4968_v14 = vadd.f32 %v4903_v57, %v4797_v25 }
 0x5ef   : > { %v4388_v43 = vadd.f32 %v8359_v46, %v4356_v15 }
 0x5f0   : > { %v5000_v62 = vadd.f32 %v8359_v46, %v4968_v14 }
 0x5f1   : > { %v4420_v40 = vmax.f32 %v4388_v43, 0.0 }
 0x5f2   : > { %v5032_v17 = vmax.f32 %v5000_v62, 0.0 }
 0x5f3   : > { %v4451_v24 = vadd.f32 %v4450_v16, %v4420_v40  ;;  %v4798_v50 = vpop.f32.mrf.mxu2  ;;  %v4905_v41 = vpop.f32.mrf.mxu3 }
 0x5f4   : > { %v5063_v51 = vadd.f32 %v5062_v5, %v5032_v17  ;;  %v4799_v44 = vadd.f32 %v4798_v50, %v4693_v6  ;;  %v4295_v52 = vpop.f32.mrf.mxu0  ;;  %v4696_v59 = vpop.f32.mrf.mxu1 }
 0x5f5   : > { %v4357_v36 = vadd.f32 %v4295_v52, %v8243_v18 }
 0x5f6   : > { %v4969_v21 = vadd.f32 %v4905_v41, %v4799_v44 }
 0x5f7   : > { %v4389_v34 = vadd.f32 %v8359_v46, %v4357_v36  ;;  %6320 = vmatmul.msk.bf16.gmra.mxu0 %vm305_vm1, %v8251_v28  ;;  %6442 = vmatmul.msk.bf16.gmra.mxu1 %vm305_vm1, %v8489_v47 }
 0x5f8   : > { %v5001_v9 = vadd.f32 %v8359_v46, %v4969_v21  ;;  %6466 = vmatmul.msk.bf16.gmra.mxu2 %vm305_vm1, %v8472_v32  ;;  %6492 = vmatmul.msk.bf16.gmra.mxu3 %vm305_vm1, %v6659_v4 }
 0x5f9   : > { %v4421_v49 = vmax.f32 %v4389_v34, 0.0 }
 0x5fa   : > { %v5033_v3 = vmax.f32 %v5001_v9, 0.0 }
 0x5fb   : > { %v4452_v2 = vadd.f32 %v4451_v24, %v4421_v49  ;;  %v4801_v18 = vpop.f32.mrf.mxu2  ;;  %v4908_v42 = vpop.f32.mrf.mxu3 }
 0x5fc   : > { %v5064_v10 = vadd.f32 %v5063_v51, %v5033_v3  ;;  %v4802_v39 = vadd.f32 %v4801_v18, %v4696_v59  ;;  %v4297_v61 = vpop.f32.mrf.mxu0  ;;  %v4698_v28 = vpop.f32.mrf.mxu1  ;;  %v8703_v59 = vld [vmem:[#allocation9_spill] sm:$0xff] }
 0x5fd   : > { %v4358_v31 = vadd.f32 %v4297_v61, %v8248_v37  ;;  %v8704_v61 = vld [vmem:[#allocation11_spill] sm:$0xff] }
 0x5fe   : > { %v4970_v22 = vadd.f32 %v4908_v42, %v4802_v39 }
 0x5ff   : > { %v4390_v45 = vadd.f32 %v8359_v46, %v4358_v31 }
 0x600   : > { %v5002_v32 = vadd.f32 %v8359_v46, %v4970_v22 }
 0x601   : > { %v4422_v1 = vmax.f32 %v4390_v45, 0.0 }
 0x602   : > { %v5034_v33 = vmax.f32 %v5002_v32, 0.0 }
 0x603   : > { %v4453_v63 = vadd.f32 %v4452_v2, %v4422_v1  ;;  %v4803_v54 = vpop.f32.mrf.mxu2  ;;  %v4910_v13 = vpop.f32.mrf.mxu3 }
 0x604   : > { %v5065_v58 = vadd.f32 %v5064_v10, %v5034_v33  ;;  %v4804_v35 = vadd.f32 %v4803_v54, %v4698_v28  ;;  %v4300_v48 = vpop.f32.mrf.mxu0  ;;  %v4701_v20 = vpop.f32.mrf.mxu1 }
 0x605   : > { %v4359_v30 = vadd.f32 %v4300_v48, %v8262_v19  ;;  %v8705_v48 = vld [vmem:[#allocation14_spill] sm:$0xff] }
 0x606   : > { %v4971_v55 = vadd.f32 %v4910_v13, %v4804_v35 }
 0x607   : > { %v4391_v37 = vadd.f32 %v8359_v46, %v4359_v30  ;;  %6321 = vmatmul.msk.bf16.gmra.mxu0 %vm305_vm1, %v6639_v26  ;;  %6443 = vmatmul.msk.bf16.gmra.mxu1 %vm305_vm1, %v6659_v4 }
 0x608   : > { %v5003_v38 = vadd.f32 %v8359_v46, %v4971_v55  ;;  %6467 = vmatmul.msk.bf16.gmra.mxu2 %vm305_vm1, %v8489_v47  ;;  %6493 = vmatmul.msk.bf16.gmra.mxu3 %vm305_vm1, %v6660_v27 }
 0x609   : > { %v4423_v12 = vmax.f32 %v4391_v37, 0.0 }
 0x60a   : > { %v5035_v16 = vmax.f32 %v5003_v38, 0.0 }
 0x60b   : > { %v4454_v29 = vadd.f32 %v4453_v63, %v4423_v12  ;;  %v4806_v57 = vpop.f32.mrf.mxu2  ;;  %v4913_v5 = vpop.f32.mrf.mxu3 }
 0x60c   : > { %v5066_v19 = vadd.f32 %v5065_v58, %v5035_v16  ;;  %v4807_v25 = vadd.f32 %v4806_v57, %v4701_v20  ;;  %v4302_v11 = vpop.f32.mrf.mxu0  ;;  %v4703_v6 = vpop.f32.mrf.mxu1 }
 0x60d   : > { %v4360_v15 = vadd.f32 %v4302_v11, %v8267_v7  ;;  %v8706_v11 = vld [vmem:[#allocation12_spill] sm:$0xff] }
 0x60e   : > { %v4972_v14 = vadd.f32 %v4913_v5, %v4807_v25 }
 0x60f   : > { %v4392_v43 = vadd.f32 %v8359_v46, %v4360_v15 }
 0x610   : > { %v5004_v62 = vadd.f32 %v8359_v46, %v4972_v14 }
 0x611   : > { %v4424_v40 = vmax.f32 %v4392_v43, 0.0 }
 0x612   : > { %v5036_v47 = vmax.f32 %v5004_v62, 0.0 }
 0x613   : > { %v4455_v17 = vadd.f32 %v4454_v29, %v4424_v40  ;;  %v4808_v24 = vpop.f32.mrf.mxu2  ;;  %v4915_v50 = vpop.f32.mrf.mxu3 }
 0x614   : > { %v5067_v41 = vadd.f32 %v5066_v19, %v5036_v47  ;;  %v4809_v51 = vadd.f32 %v4808_v24, %v4703_v6  ;;  %v4305_v44 = vpop.f32.mrf.mxu0  ;;  %v4706_v52 = vpop.f32.mrf.mxu1 }
 0x615   : > { %v4361_v4 = vadd.f32 %v4305_v44, %v8703_v59 }
 0x616   : > { %v4973_v36 = vadd.f32 %v4915_v50, %v4809_v51 }
 0x617   : > { %v4393_v21 = vadd.f32 %v8359_v46, %v4361_v4 }
 0x618   : > { %v5005_v7 = vadd.f32 %v8359_v46, %v4973_v36 }
 0x619   : > { %v4425_v34 = vmax.f32 %v4393_v21, 0.0 }
 0x61a   : > { %v5037_v9 = vmax.f32 %v5005_v7, 0.0 }
 0x61b   : > { %v4456_v49 = vadd.f32 %v4455_v17, %v4425_v34  ;;  %v4811_v3 = vpop.f32.mrf.mxu2  ;;  %v4918_v2 = vpop.f32.mrf.mxu3 }
 0x61c   : > { %v5068_v18 = vadd.f32 %v5067_v41, %v5037_v9  ;;  %v4812_v42 = vadd.f32 %v4811_v3, %v4706_v52  ;;  %v4307_v10 = vpop.f32.mrf.mxu0  ;;  %v4708_v39 = vpop.f32.mrf.mxu1  ;;  %v8707_v52 = vld [vmem:[#allocation15_spill] sm:$0xff] }
 0x61d   : > { %v4362_v28 = vadd.f32 %v4307_v10, %v8704_v61 }
 0x61e   : > { %v4974_v31 = vadd.f32 %v4918_v2, %v4812_v42 }
 0x61f   : > { %v4394_v22 = vadd.f32 %v8359_v46, %v4362_v28 }
 0x620   : > { %v5006_v45 = vadd.f32 %v8359_v46, %v4974_v31 }
 0x621   : > { %v4426_v32 = vmax.f32 %v4394_v22, 0.0 }
 0x622   : > { %v5038_v1 = vmax.f32 %v5006_v45, 0.0 }
 0x623   : > { %v4457_v33 = vadd.f32 %v4456_v49, %v4426_v32  ;;  %v4813_v63 = vpop.f32.mrf.mxu2  ;;  %v4920_v54 = vpop.f32.mrf.mxu3 }
 0x624   : > { %v5069_v13 = vadd.f32 %v5068_v18, %v5038_v1  ;;  %v4814_v26 = vadd.f32 %v4813_v63, %v4708_v39  ;;  %v4310_v58 = vpop.f32.mrf.mxu0  ;;  %v4711_v35 = vpop.f32.mrf.mxu1  ;;  %v8708_v39 = vld [vmem:[#allocation17_spill] sm:$0xff] }
 0x625   : > { %v4363_v20 = vadd.f32 %v4310_v58, %v8705_v48  ;;  %v8709_v58 = vld [vmem:[#allocation16_spill] sm:$0xff] }
 0x626   : > { %v4975_v27 = vadd.f32 %v4920_v54, %v4814_v26 }
 0x627   : > { %v4395_v30 = vadd.f32 %v8359_v46, %v4363_v20 }
 0x628   : > { %v5007_v55 = vadd.f32 %v8359_v46, %v4975_v27 }
 0x629   : > { %v4427_v37 = vmax.f32 %v4395_v30, 0.0 }
 0x62a   : > { %v5039_v38 = vmax.f32 %v5007_v55, 0.0 }
 0x62b   : > { %v4458_v12 = vadd.f32 %v4457_v33, %v4427_v37  ;;  %v4816_v16 = vpop.f32.mrf.mxu2  ;;  %v4923_v29 = vpop.f32.mrf.mxu3 }
 0x62c   : > { %v5070_v57 = vadd.f32 %v5069_v13, %v5039_v38  ;;  %v4817_v5 = vadd.f32 %v4816_v16, %v4711_v35  ;;  %v4312_v19 = vpop.f32.mrf.mxu0  ;;  %v4713_v25 = vpop.f32.mrf.mxu1 }
 0x62d   : > { %v4364_v6 = vadd.f32 %v4312_v19, %v8706_v11 }
 0x62e   : > { %v4976_v15 = vadd.f32 %v4923_v29, %v4817_v5 }
 0x62f   : > { %v4396_v14 = vadd.f32 %v8359_v46, %v4364_v6 }
 0x630   : > { %v5008_v43 = vadd.f32 %v8359_v46, %v4976_v15  ;;  %v8711_v15 = vld [vmem:[#allocation4_spill] sm:$0xff] }
 0x631   : > { %v4428_v62 = vmax.f32 %v4396_v14, 0.0 }
 0x632   : > { %v5040_v40 = vmax.f32 %v5008_v43, 0.0 }
 0x633   : > { %v4459_v47 = vadd.f32 %v4458_v12, %v4428_v62  ;;  %v4818_v17 = vpop.f32.mrf.mxu2  ;;  %v4925_v24 = vpop.f32.mrf.mxu3  ;;  %v8710_v12 = vld [vmem:[#allocation18_spill] sm:$0xff] }
 0x634   : > { %v5071_v50 = vadd.f32 %v5070_v57, %v5040_v40  ;;  %v4819_v41 = vadd.f32 %v4818_v17, %v4713_v25  ;;  %v4315_v51 = vpop.f32.mrf.mxu0  ;;  %v4716_v44 = vpop.f32.mrf.mxu1 }
 0x635   : > { %v4365_v59 = vadd.f32 %v4315_v51, %v8707_v52 }
 0x636   : > { %v4977_v4 = vadd.f32 %v4925_v24, %v4819_v41  ;;  %v8712_v41 = vld [vmem:[#allocation7_spill] sm:$0xff] }
 0x637   : > { %v4397_v36 = vadd.f32 %v8359_v46, %v4365_v59 }
 0x638   : > { %v5009_v21 = vadd.f32 %v8359_v46, %v4977_v4 }
 0x639   : > { %v4429_v7 = vmax.f32 %v4397_v36, 0.0 }
 0x63a   : > { %v5041_v34 = vmax.f32 %v5009_v21, 0.0 }
 0x63b   : > { %v4460_v9 = vadd.f32 %v4459_v47, %v4429_v7  ;;  %v4821_v49 = vpop.f32.mrf.mxu2  ;;  %v4928_v3 = vpop.f32.mrf.mxu3 }
 0x63c   : > { %v5072_v2 = vadd.f32 %v5071_v50, %v5041_v34  ;;  %v4822_v18 = vadd.f32 %v4821_v49, %v4716_v44  ;;  %v4317_v42 = vpop.f32.mrf.mxu0  ;;  %v4718_v10 = vpop.f32.mrf.mxu1 }
 0x63d   : > { %v4366_v61 = vadd.f32 %v4317_v42, %v8708_v39 }
 0x63e   : > { %v4978_v28 = vadd.f32 %v4928_v3, %v4822_v18 }
 0x63f   : > { %v4398_v31 = vadd.f32 %v8359_v46, %v4366_v61  ;;  %v8713_v61 = vld [vmem:[#allocation10_spill] sm:$0xff] }
 0x640   : > { %v5010_v22 = vadd.f32 %v8359_v46, %v4978_v28 }
 0x641   : > { %v4430_v45 = vmax.f32 %v4398_v31, 0.0 }
 0x642   : > { %v5042_v32 = vmax.f32 %v5010_v22, 0.0 }
 0x643   : > { %v4461_v1 = vadd.f32 %v4460_v9, %v4430_v45  ;;  %v4823_v33 = vpop.f32.mrf.mxu2  ;;  %v4930_v63 = vpop.f32.mrf.mxu3 }
 0x644   : > { %v8550_v54 = vadd.f32 %v5072_v2, %v5042_v32  ;;  %v4320_v13 = vpop.f32.mrf.mxu0  ;;  %v4721_v26 = vpop.f32.mrf.mxu1 }
 0x645   : > { %v4367_v35 = vadd.f32 %v4320_v13, %v8709_v58 }
 0x647   : > { %v4399_v48 = vadd.f32 %v8359_v46, %v4367_v35  ;;  %v4824_v35 = vadd.f32 %v4823_v33, %v4718_v10 }
 0x649   : > { %v4431_v20 = vmax.f32 %v4399_v48, 0.0 }
 0x64b   : > { %v4462_v27 = vadd.f32 %v4461_v1, %v4431_v20  ;;  %v4826_v30 = vpop.f32.mrf.mxu2  ;;  %v4933_v55 = vpop.f32.mrf.mxu3 }
 0x64c   : > { %v4322_v37 = vpop.f32.mrf.mxu0  ;;  %v4723_v38 = vpop.f32.mrf.mxu1  ;;  %v4827_v20 = vadd.f32 %v4826_v30, %v4721_v26 }
 0x64d   : > { %v4368_v16 = vadd.f32 %v4322_v37, %v8710_v12  ;;  %v4979_v37 = vadd.f32 %v4930_v63, %v4824_v35 }
 0x64f   : > { %v4400_v29 = vadd.f32 %v8359_v46, %v4368_v16 }
 0x651   : > { %v4432_v57 = vmax.f32 %v4400_v29, 0.0 }
 0x653   : > { %v4463_v5 = vadd.f32 %v4462_v27, %v4432_v57  ;;  %v4828_v19 = vpop.f32.mrf.mxu2  ;;  %v4935_v25 = vpop.f32.mrf.mxu3 }
 0x654   : > { %v4325_v11 = vpop.f32.mrf.mxu0  ;;  %v4726_v6 = vpop.f32.mrf.mxu1  ;;  %v4829_v12 = vadd.f32 %v4828_v19, %v4723_v38 }
 0x655   : > { %v4369_v14 = vadd.f32 %v4325_v11, %v8711_v15  ;;  %v4980_v11 = vadd.f32 %v4933_v55, %v4827_v20 }
 0x657   : > { %v4401_v43 = vadd.f32 %v8359_v46, %v4369_v14  ;;  %v5012_v26 = vadd.f32 %v8359_v46, %v4980_v11 }
 0x659   : > { %v4433_v62 = vmax.f32 %v4401_v43, 0.0  ;;  %v5011_v43 = vadd.f32 %v8359_v46, %v4979_v37 }
 0x65b   : > { %v4464_v40 = vadd.f32 %v4463_v5, %v4433_v62  ;;  %v4831_v47 = vpop.f32.mrf.mxu2  ;;  %v4938_v17 = vpop.f32.mrf.mxu3  ;;  %v4981_v62 = vadd.f32 %v4935_v25, %v4829_v12  ;;  %v5043_v19 = vmax.f32 %v5011_v43, 0.0 }
 0x65c   : > { %v4327_v24 = vpop.f32.mrf.mxu0  ;;  %v4728_v50 = vpop.f32.mrf.mxu1  ;;  %v4832_v14 = vadd.f32 %v4831_v47, %v4726_v6 }
 0x65d   : > { %v4370_v51 = vadd.f32 %v4327_v24, %v8712_v41 }
 0x65e   : > { %v4982_v63 = vadd.f32 %v4938_v17, %v4832_v14 }
 0x65f   : > { %v4402_v44 = vadd.f32 %v8359_v46, %v4370_v51  ;;  %v5044_v51 = vmax.f32 %v5012_v26, 0.0 }
 0x661   : > { %v4434_v52 = vmax.f32 %v4402_v44, 0.0  ;;  %v5014_v44 = vadd.f32 %v8359_v46, %v4982_v63 }
 0x663   : > { %v4465_v59 = vadd.f32 %v4464_v40, %v4434_v52  ;;  %v4833_v4 = vpop.f32.mrf.mxu2  ;;  %v4940_v36 = vpop.f32.mrf.mxu3  ;;  %v5013_v40 = vadd.f32 %v8359_v46, %v4981_v62 }
 0x664   : > { %v4330_v21 = vpop.f32.mrf.mxu0  ;;  %v4731_v7 = vpop.f32.mrf.mxu1  ;;  %v4834_v33 = vadd.f32 %v4833_v4, %v4728_v50 }
 0x665   : > { %v4371_v34 = vadd.f32 %v4330_v21, %v8341_v53  ;;  %v5045_v17 = vmax.f32 %v5013_v40, 0.0 }
 0x667   : > { %v4403_v9 = vadd.f32 %v8359_v46, %v4371_v34 }
 0x669   : > { %v4435_v49 = vmax.f32 %v4403_v9, 0.0 }
 0x66b   : > { %v4466_v3 = vadd.f32 %v4465_v59, %v4435_v49  ;;  %v4836_v2 = vpop.f32.mrf.mxu2  ;;  %v4943_v18 = vpop.f32.mrf.mxu3  ;;  %v5074_v59 = vadd.f32 %v8550_v54, %v5043_v19 }
 0x66c   : > { %v4332_v42 = vpop.f32.mrf.mxu0  ;;  %v4733_v39 = vpop.f32.mrf.mxu1  ;;  %v4837_v38 = vadd.f32 %v4836_v2, %v4731_v7 }
 0x66d   : > { %v4372_v28 = vadd.f32 %v4332_v42, %v8713_v61  ;;  %v5075_v9 = vadd.f32 %v5074_v59, %v5044_v51 }
 0x66e   : > { %v4984_v50 = vadd.f32 %v4943_v18, %v4837_v38 }
 0x66f   : > { %v4404_v31 = vadd.f32 %v8359_v46, %v4372_v28  ;;  %v5076_v42 = vadd.f32 %v5075_v9, %v5045_v17 }
 0x670   : > { %v5016_v2 = vadd.f32 %v8359_v46, %v4984_v50 }
 0x671   : > { %v4436_v22 = vmax.f32 %v4404_v31, 0.0 }
 0x673   : > { %v4467_v45 = vadd.f32 %v4466_v3, %v4436_v22  ;;  %v4838_v32 = vpop.f32.mrf.mxu2  ;;  %v4945_v1 = vpop.f32.mrf.mxu3  ;;  %v5046_v3 = vmax.f32 %v5014_v44, 0.0 }
 0x674   : > { %v4335_v13 = vpop.f32.mrf.mxu0  ;;  %v4736_v53 = vpop.f32.mrf.mxu1  ;;  %v4839_v6 = vadd.f32 %v4838_v32, %v4733_v39 }
 0x675   : > { %v4373_v58 = vadd.f32 %v4335_v13, %v8369_v0  ;;  %v5048_v13 = vmax.f32 %v5016_v2, 0.0 }
 0x676   : > { %v4985_v7 = vadd.f32 %v4945_v1, %v4839_v6  ;;  %v5077_v1 = vadd.f32 %v5076_v42, %v5046_v3 }
 0x677   : > { %v4405_v48 = vadd.f32 %v8359_v46, %v4373_v58  ;;  %v6681_v58 = vld [vmem:[%s8591_s2] ss:$0 sm:$0xff] }
 0x678   : > { %v5017_v54 = vadd.f32 %v8359_v46, %v4985_v7 }
 0x679   : > { %v4437_v27 = vmax.f32 %v4405_v48, 0.0 }
 0x67b   : > { %v4468_v16 = vadd.f32 %v4467_v45, %v4437_v27  ;;  %v4841_v29 = vpop.f32.mrf.mxu2  ;;  %v4948_v57 = vpop.f32.mrf.mxu3  ;;  %v5049_v27 = vmax.f32 %v5017_v54, 0.0 }
 0x67c   : > { %v4337_v5 = vpop.f32.mrf.mxu0  ;;  %v4738_v10 = vpop.f32.mrf.mxu1  ;;  %v4842_v52 = vadd.f32 %v4841_v29, %v4736_v53 }
 0x67d   : > { %v4374_v15 = vadd.f32 %v4337_v5, %v8378_v8  ;;  %v4983_v8 = vadd.f32 %v4940_v36, %v4834_v33 }
 0x67f   : > { %v4406_v0 = vadd.f32 %v8359_v46, %v4374_v15  ;;  %v5015_v21 = vadd.f32 %v8359_v46, %v4983_v8 }
 0x681   : > { %v4438_v30 = vmax.f32 %v4406_v0, 0.0  ;;  %v5047_v28 = vmax.f32 %v5015_v21, 0.0 }
 0x683   : > { %v4469_v24 = vadd.f32 %v4468_v16, %v4438_v30  ;;  %v4843_v55 = vpop.f32.mrf.mxu2  ;;  %v4950_v41 = vpop.f32.mrf.mxu3  ;;  %v5078_v20 = vadd.f32 %v5077_v1, %v5047_v28 }
 0x684   : > { %v4340_v47 = vpop.f32.mrf.mxu0  ;;  %v4844_v34 = vadd.f32 %v4843_v55, %v4738_v10  ;;  %v4741_v49 = vpop.f32.mrf.mxu1 }
 0x685   : > { %v4375_v25 = vadd.f32 %v4340_v47, %v8396_v56  ;;  %v4986_v56 = vadd.f32 %v4948_v57, %v4842_v52  ;;  %v5079_v16 = vadd.f32 %v5078_v20, %v5048_v13 }
 0x686   : > { %v4987_v31 = vadd.f32 %v4950_v41, %v4844_v34 }
 0x687   : > { %v4407_v4 = vadd.f32 %v8359_v46, %v4375_v25  ;;  %v5018_v53 = vadd.f32 %v6681_v58, %v4986_v56 }
 0x688   : > { %v5019_v37 = vadd.f32 %v6681_v58, %v4987_v31 }
 0x689   : > { %v4439_v36 = vmax.f32 %v4407_v4, 0.0  ;;  %v5050_v46 = vmax.f32 %v5018_v53, 0.0 }
 0x68a   : > { %v5051_v15 = vmax.f32 %v5019_v37, 0.0 }
 0x68b   : > { %v4470_v39 = vadd.f32 %v4469_v24, %v4439_v36  ;;  %v4846_v18 = vpop.f32.mrf.mxu2  ;;  %v4953_v61 = vpop.f32.mrf.mxu3 }
 0x68c   : > { %v4847_v22 = vadd.f32 %v4846_v18, %v4741_v49  ;;  %v4342_v45 = vpop.f32.mrf.mxu0  ;;  %v4743_v5 = vpop.f32.mrf.mxu1 }
 0x68d   : > { %v4376_v32 = vadd.f32 %v4342_v45, %v8400_v23  ;;  %v5080_v23 = vadd.f32 %v5079_v16, %v5049_v27 }
 0x68e   : > { %v4988_v35 = vadd.f32 %v4953_v61, %v4847_v22 }
 0x68f   : > { %v4408_v48 = vadd.f32 %v6681_v58, %v4376_v32  ;;  %v5081_v0 = vadd.f32 %v5080_v23, %v5050_v46 }
 0x690   : > { %v5020_v29 = vadd.f32 %v6681_v58, %v4988_v35 }
 0x691   : > { %v4440_v12 = vmax.f32 %v4408_v48, 0.0  ;;  %v5082_v30 = vadd.f32 %v5081_v0, %v5051_v15 }
 0x692   : > { %v5052_v10 = vmax.f32 %v5020_v29, 0.0 }
 0x693   : > { %v4471_v57 = vadd.f32 %v4470_v39, %v4440_v12  ;;  %v4848_v11 = vpop.f32.mrf.mxu2  ;;  %v4955_v62 = vpop.f32.mrf.mxu3 }
 0x694   : > { %v4849_v14 = vadd.f32 %v4848_v11, %v4743_v5  ;;  %v5083_v19 = vadd.f32 %v5082_v30, %v5052_v10 }
 0x695   : > { %v4472_v43 = vrot.slane %v4471_v57, 4 }
 0x696   : > { %v4989_v33 = vadd.f32 %v4955_v62, %v4849_v14 }
 0x697   : > { %v4473_v26 = vadd.f32 %v4472_v43, %v4471_v57 }
 0x698   : > { %v5021_v63 = vadd.f32 %v6681_v58, %v4989_v33 }
 0x699   : > { %v4474_v38 = vrot.slane %v4473_v26, 2 }
 0x69a   : > { %v5053_v40 = vmax.f32 %v5021_v63, 0.0 }
 0x69b   : > { %v4475_v24 = vadd.f32 %v4474_v38, %v4473_v26 }
 0x69c   : > { %v5084_v55 = vadd.f32 %v5083_v19, %v5053_v40 }
 0x69d   : > { %v4476_v41 = vrot.slane %v4475_v24, 1 }
 0x69e   : > { %v5085_v8 = vrot.slane %v5084_v55, 4 }
 0x69f   : > { %v4477_v6 = vadd.f32 %v4476_v41, %v4475_v24 }
 0x6a0   : > { %v5086_v47 = vadd.f32 %v5085_v8, %v5084_v55 }
 0x6a1   : > { %v4478_v51 = vmul.f32 %v4477_v6, %v7174_v60 }
 0x6a2   : > { %v5087_v25 = vrot.slane %v5086_v47, 2 }
 0x6a3   : > { %4479 = vst [vmem:[%s7180_s23 + $0x6] sm:$0x1] %v4478_v51 }
 0x6a4   : > { %v5088_v44 = vadd.f32 %v5087_v25, %v5086_v47 }
 0x6a6   : > { %v5089_v50 = vrot.slane %v5088_v44, 1 }
 0x6a8   : > { %v5090_v52 = vadd.f32 %v5089_v50, %v5088_v44 }
 0x6aa   : > { %v5091_v59 = vmul.f32 %v5090_v52, %v7174_v60 }
 0x6ac   : > { %5092 = vst [vmem:[%s7180_s23 + $0x7] sm:$0x1] %v5091_v59 }
 0x6ad PF: > { %s13_s12 = sadd.s32 1, %s6688_s12  }
 0x6ae   : > { %p10_p5 = scmp.ge.s32.totalorder %s13_s12, 4  }
 0x6b0   :  { %12 = sbr.rel (!%p10_p5) target bundleno = 1 (0x1), region = 71 }

// kernel: tc_vicreg_forward.3
= control target key start
LH: loop header
LB: loop body
LE: loop exit
PB: predicated region body
PF: predicated region fallthrough
CT: control target
= control target key end

     0   :  { %s1217_s0 = inlined_call_operand.vmem [shape: f32[16,128], index: 0, kind: input, shape index: {}]   ;;  %s1218_s1 = inlined_call_operand.vmem [shape: f32[8,1], index: 1, kind: input, shape index: {}]   ;;  %s1219_s2 = inlined_call_operand.vmem [shape: bf16[128,128], index: 2, kind: input, shape index: {}]   ;;  %s1220_s3 = inlined_call_operand.vmem [shape: f32[1,128], index: 3, kind: input, shape index: {}]   ;;  %s1221_s4 = inlined_call_operand.vmem [shape: f32[1,128], index: 4, kind: input, shape index: {}]   ;;  %s1222_s5 = inlined_call_operand.vmem [shape: f32[1,128], index: 5, kind: input, shape index: {}]   ;;  %s1223_s6 = inlined_call_operand.vmem [shape: f32[1,128], index: 6, kind: input, shape index: {}]   ;;  %s1224_s7 = inlined_call_operand.vmem [shape: bf16[128,128], index: 7, kind: input, shape index: {}]   ;;  %s1225_s8 = inlined_call_operand.vmem [shape: bf16[128,128], index: 8, kind: input, shape index: {}]   ;;  %s1226_s9 = inlined_call_operand.vmem [shape: f32[1,128], index: 9, kind: input, shape index: {}]   ;;  %s1227_s10 = inlined_call_operand.vmem [shape: f32[1,128], index: 10, kind: input, shape index: {}]   ;;  %s1228_s11 = inlined_call_operand.vmem [shape: f32[1,128], index: 11, kind: input, shape index: {}]   ;;  %s1229_s12 = inlined_call_operand.vmem [shape: bf16[128,128], index: 12, kind: input, shape index: {}]   ;;  %s1230_s13 = inlined_call_operand.vmem [shape: f32[1,128], index: 13, kind: input, shape index: {}]   ;;  %s1231_s14 = inlined_call_operand.vmem [shape: f32[1,128], index: 14, kind: input, shape index: {}]   ;;  %s1232_s15 = inlined_call_operand.vmem [shape: f32[1,128], index: 15, kind: input, shape index: {}]   ;;  %s1233_s16 = inlined_call_operand.vmem [shape: bf16[128,128], index: 16, kind: input, shape index: {}]   ;;  %s1234_s17 = inlined_call_operand.vmem [shape: f32[16,128], index: 17, kind: output, shape index: {0}]   ;;  %s1235_s18 = inlined_call_operand.hbm [shape: f32[8,128], index: 18, kind: output, shape index: {1}]  }
   0x1   :  { %1238 = sst [smem:[#allocation5_spill]] %s1217_s0 }
   0x2   :  { %1239 = sst [smem:[#allocation6_spill]] %s1218_s1 }
   0x3   :  { %1240 = sst [smem:[#allocation7_spill]] %s1219_s2 }
   0x4   :  { %v870_v0 = vld [vmem:[%s1225_s8 + $0x38] sm:$0xff]  ;;  %v869_v1 = vld [vmem:[%s1225_s8 + $0x30] sm:$0xff]  ;;  %s1241_s1 = sld [smem:[#allocation7_spill]]  ;;  %v868_v3 = vld [vmem:[%s1225_s8 + $0x28] sm:$0xff] }
   0x5   :  { %349 = vmatpush.bf16.msra.mxu2 %v870_v0 }
   0x9   :  { %350 = vmatpush.bf16.msra.mxu2 %v869_v1 }
   0xa   :  { %v854_v2 = vld [vmem:[%s1241_s1 + $0x38] sm:$0xff] }
   0xb   :  { %137 = vmatpush.bf16.msra.mxu0 %v854_v2 }
   0xc   :  { %24 = vsyncpa [#allocation3], 0  ;;  %v867_v4 = vld [vmem:[%s1225_s8 + $0x20] sm:$0xff]  ;;  %v866_v5 = vld [vmem:[%s1225_s8 + $0x18] sm:$0xff]  ;;  %s1242_s20 = sld [smem:[#allocation5_spill]]  ;;  %v939_v17 = vmov 8.0  }
   0xd   :  { %351 = vmatpush.bf16.msra.mxu2 %v868_v3  ;;  %v865_v6 = vld [vmem:[%s1225_s8 + $0x10] sm:$0xff]  ;;  %v864_v7 = vld [vmem:[%s1225_s8 + $0x8] sm:$0xff]  ;;  %v863_v8 = vld [vmem:[%s1225_s8] sm:$0xff]  ;;  %901 = vrcp.f32 %v939_v17  ;;  %v940_v29 = vmov 0   ;;  %s1243_s25 = sld [smem:[#allocation6_spill]] }
   0xe   :  { %v853_v12 = vld [vmem:[%s1241_s1 + $0x30] sm:$0xff]  ;;  %v852_v13 = vld [vmem:[%s1241_s1 + $0x28] sm:$0xff]  ;;  %v851_v14 = vld [vmem:[%s1241_s1 + $0x20] sm:$0xff]  ;;  %890 = vset.pattern.permute.xlu0 %v940_v29 }
   0xf   :  { %138 = vmatpush.bf16.msra.mxu0 %v853_v12  ;;  %v850_v15 = vld [vmem:[%s1241_s1 + $0x18] sm:$0xff]  ;;  %v849_v16 = vld [vmem:[%s1241_s1 + $0x10] sm:$0xff]  ;;  %v848_v18 = vld [vmem:[%s1241_s1 + $0x8] sm:$0xff] }
  0x10   :  { %v847_v19 = vld [vmem:[%s1241_s1] sm:$0xff]  ;;  %v878_v35 = vld [vmem:[%s1229_s12 + $0x38] sm:$0xff]  ;;  %v877_v41 = vld [vmem:[%s1229_s12 + $0x30] sm:$0xff] }
  0x11   :  { %352 = vmatpush.bf16.msra.mxu2 %v867_v4  ;;  %v891_v23 = vld [vmem:[%s1226_s9] ss:$0 sm:$0xff]  ;;  %502 = vmatpush.bf16.msra.mxu3 %v878_v35  ;;  %v876_v46 = vld [vmem:[%s1229_s12 + $0x28] sm:$0xff]  ;;  %v874_v56 = vld [vmem:[%s1229_s12 + $0x18] sm:$0xff] }
  0x12   :  { %v59_v9 = vld [vmem:[%s1242_s20] sm:$0xff]  ;;  %v60_v10 = vld [vmem:[%s1242_s20 + $0x8] sm:$0xff]  ;;  %v873_v61 = vld [vmem:[%s1229_s12 + $0x10] sm:$0xff] }
  0x13   :  { %v280_v11 = vpack.c.bf16 %v60_v10, %v59_v9  ;;  %139 = vmatpush.bf16.msra.mxu0 %v852_v13  ;;  %v902_v20 = vpop.eup %901  ;;  %v61_v21 = vpack.c.bf16 %v59_v9, %v59_v9  ;;  %v78_v30 = vld [vmem:[%s1243_s25] sm:$0xff]  ;;  %v872_v2 = vld [vmem:[%s1229_s12 + $0x8] sm:$0xff] }
  0x14   :  { %v164_v22 = vmul.f32 8.0, %v902_v20  ;;  %82 = vperm.xlu0 %890, %v78_v30   ;;  %vm168_vm0 = vweird.f32 %v902_v20  ;;  %v875_v51 = vld [vmem:[%s1229_s12 + $0x20] sm:$0xff] }
  0x15   :  { %353 = vmatpush.bf16.msra.mxu2 %v866_v5  ;;  %503 = vmatpush.bf16.msra.mxu3 %v877_v41  ;;  %v871_v5 = vld [vmem:[%s1229_s12] sm:$0xff] }
  0x16   :  { %v165_v24 = vsub.f32 1.0, %v164_v22  ;;  %v895_v41 = vld [vmem:[%s1221_s4] ss:$0 sm:$0xff] }
  0x17   :  { %140 = vmatpush.bf16.msra.mxu0 %v851_v14 }
  0x18   :  { %v166_v28 = vmul.f32 %v902_v20, %v165_v24  ;;  %v892_v24 = vld [vmem:[%s1227_s10] ss:$0 sm:$0xff]  ;;  %s676_s10 = sshll.u32 %s1235_s18, 4  ;;  %s677_s10 = int_to_ptr.hbm [resolvable:$true] %s676_s10 }
  0x19   :  { %354 = vmatpush.bf16.msra.mxu2 %v865_v6  ;;  %504 = vmatpush.bf16.msra.mxu3 %v876_v46  ;;  %v861_v46 = vld [vmem:[%s1224_s7 + $0x30] sm:$0xff] }
  0x1a   :  { %v167_v33 = vadd.f32 %v902_v20, %v166_v28  ;;  %v893_v28 = vld [vmem:[%s1228_s11] ss:$0 sm:$0xff] }
  0x1b   :  { %141 = vmatpush.bf16.msra.mxu0 %v850_v15 }
  0x1c   :  { %v1100_v40 = vsel %vm168_vm0, %v902_v20, %v167_v33 }
  0x1d   :  { %355 = vmatpush.bf16.msra.mxu2 %v864_v7  ;;  %505 = vmatpush.bf16.msra.mxu3 %v875_v51 }
  0x1f   :  { %142 = vmatpush.bf16.msra.mxu0 %v849_v16 }
  0x21   :  { %356 = vmatpush.bf16.msra.mxu2 %v863_v8  ;;  %506 = vmatpush.bf16.msra.mxu3 %v874_v56 }
  0x23   :  { %143 = vmatpush.bf16.msra.mxu0 %v848_v18 }
  0x24   :  { %357 = vmatmul.bf16.vlgmr.msra.gmra.mxu2 %v280_v11 }
  0x25   :  { %507 = vmatpush.bf16.msra.mxu3 %v873_v61 }
  0x27   :  { %144 = vmatpush.bf16.msra.mxu0 %v847_v19 }
  0x29   :  { %508 = vmatpush.bf16.msra.mxu3 %v872_v2 }
  0x2a   :  { %145 = vmatmul.bf16.vlgmr.msra.gmra.mxu0 %v61_v21 }
  0x2d   :  { %509 = vmatpush.bf16.msra.mxu3 %v871_v5 }
  0xa7   :  { %v358_v25 = vpop.f32.mrf.mxu2 }
  0xa8   :  { %v359_v26 = vadd.f32 %v891_v23, %v358_v25 }
  0xaa   :  { %v365_v27 = vrot.slane %v359_v26, 4 }
  0xac   :  { %v366_v31 = vadd.f32 %v365_v27, %v359_v26 }
  0xae   :  { %v367_v32 = vrot.slane %v366_v31, 2 }
  0xaf   :  { %v360_v34 = vpop.f32.mrf.mxu2 }
  0xb0   :  { %v368_v36 = vadd.f32 %v367_v32, %v366_v31  ;;  %v361_v37 = vadd.f32 %v891_v23, %v360_v34 }
  0xb2   :  { %v369_v38 = vrot.slane %v368_v36, 1  ;;  %v371_v39 = vrot.slane %v361_v37, 4 }
  0xb4   :  { %v370_v42 = vadd.f32 %v369_v38, %v368_v36  ;;  %v372_v43 = vadd.f32 %v371_v39, %v361_v37  ;;  %v83_v38 = vpop.permute.xlu0 %82 }
  0xb6   :  { %v377_v44 = vmul.f32 %v370_v42, %v1100_v40  ;;  %v373_v45 = vrot.slane %v372_v43, 2  ;;  %v146_v42 = vpop.f32.mrf.mxu0 }
  0xb8   :  { %v379_v47 = vsub.f32 %v359_v26, %v377_v44  ;;  %v374_v48 = vadd.f32 %v373_v45, %v372_v43  ;;  %v862_v44 = vld [vmem:[%s1224_s7 + $0x38] sm:$0xff] }
  0xb9   :  { %266 = vmatpush.bf16.msra.mxu1 %v862_v44  ;;  %v883_v44 = vld [vmem:[%s1233_s16 + $0x20] sm:$0xff] }
  0xba   :  { %v381_v49 = vmul.f32 %v379_v47, %v379_v47  ;;  %v375_v50 = vrot.slane %v374_v48, 1 }
  0xbc   :  { %v383_v52 = vrot.slane %v381_v49, 4  ;;  %v376_v53 = vadd.f32 %v375_v50, %v374_v48 }
  0xbd   :  { %267 = vmatpush.bf16.msra.mxu1 %v861_v46 }
  0xbe   :  { %v384_v54 = vadd.f32 %v383_v52, %v381_v49  ;;  %v378_v55 = vmul.f32 %v376_v53, %v1100_v40  ;;  %v860_v49 = vld [vmem:[%s1224_s7 + $0x28] sm:$0xff]  ;;  %v148_v50 = vpop.f32.mrf.mxu0  ;;  %v859_v53 = vld [vmem:[%s1224_s7 + $0x20] sm:$0xff] }
  0xc0   :  { %v385_v57 = vrot.slane %v384_v54, 2  ;;  %v380_v58 = vsub.f32 %v361_v37, %v378_v55  ;;  %v894_v37 = vld [vmem:[%s1220_s3] ss:$0 sm:$0xff] }
  0xc1   :  { %v88_v39 = vmul.f32 %v894_v37, %v83_v38  ;;  %268 = vmatpush.bf16.msra.mxu1 %v860_v49  ;;  %v884_v38 = vld [vmem:[%s1233_s16 + $0x28] sm:$0xff]  ;;  %v882_v49 = vld [vmem:[%s1233_s16 + $0x18] sm:$0xff] }
  0xc2   :  { %v386_v59 = vadd.f32 %v385_v57, %v384_v54  ;;  %v382_v60 = vmul.f32 %v380_v58, %v380_v58 }
  0xc3   :  { %v147_v43 = vadd.f32 %v146_v42, %v88_v39 }
  0xc4   :  { %v387_v62 = vrot.slane %v386_v59, 1  ;;  %v389_v63 = vrot.slane %v382_v60, 4 }
  0xc5   :  { %v154_v45 = vadd.f32 %v895_v41, %v147_v43  ;;  %269 = vmatpush.bf16.msra.mxu1 %v859_v53 }
  0xc6   :  { %v388_v0 = vadd.f32 %v387_v62, %v386_v59  ;;  %v390_v1 = vadd.f32 %v389_v63, %v382_v60 }
  0xc8   :  { %v395_v3 = vmul.f32 %v388_v0, %v1100_v40  ;;  %v391_v4 = vrot.slane %v390_v1, 2 }
  0xca   :  { %v397_v6 = vadd.f32 1e-05, %v395_v3  ;;  %v392_v7 = vadd.f32 %v391_v4, %v390_v1 }
  0xcc   :  { %903 = vrsqrt.f32 %v397_v6  ;;  %v393_v8 = vrot.slane %v392_v7, 1  ;;  %vm405_vm2 = vweird.f32 %v397_v6 }
  0xce   :  { %v394_v9 = vadd.f32 %v393_v8, %v392_v7 }
  0xd0   :  { %v396_v10 = vmul.f32 %v394_v9, %v1100_v40  ;;  %v857_v9 = vld [vmem:[%s1224_s7 + $0x10] sm:$0xff] }
  0xd2   :  { %v904_v11 = vpop.eup %903  ;;  %v398_v12 = vadd.f32 1e-05, %v396_v10 }
  0xd3   :  { %v400_v13 = vmul.f32 %v904_v11, %v397_v6  ;;  %vm406_vm1 = vweird.f32 %v904_v11  ;;  %v858_v6 = vld [vmem:[%s1224_s7 + $0x18] sm:$0xff] }
  0xd4   :  { %905 = vrsqrt.f32 %v398_v12  ;;  %vm407_vm3 = vmor %vm405_vm2, %vm406_vm1  ;;  %vm415_vm5 = vweird.f32 %v398_v12  ;;  %270 = vmatpush.bf16.msra.mxu1 %v858_v6 }
  0xd5   :  { %v401_v14 = vmul.f32 %v904_v11, %v400_v13  ;;  %v897_v13 = vld [vmem:[%s1222_s5] ss:$0 sm:$0xff] }
  0xd7   :  { %v402_v15 = vmul.f32 0.5, %v401_v14  ;;  %v856_v14 = vld [vmem:[%s1224_s7 + $0x8] sm:$0xff] }
  0xd8   :  { %271 = vmatpush.bf16.msra.mxu1 %v857_v9 }
  0xd9   :  { %v403_v16 = vsub.f32 1.5, %v402_v15 }
  0xda   :  { %v906_v17 = vpop.eup %905 }
  0xdb   :  { %v404_v18 = vmul.f32 %v904_v11, %v403_v16  ;;  %v410_v19 = vmul.f32 %v906_v17, %v398_v12  ;;  %vm416_vm4 = vweird.f32 %v906_v17  ;;  %v898_v16 = vld [vmem:[%s1223_s6] ss:$0 sm:$0xff] }
  0xdc   :  { %vm417_vm6 = vmor %vm415_vm5, %vm416_vm4  ;;  %272 = vmatpush.bf16.msra.mxu1 %v856_v14 }
  0xdd   :  { %v408_v20 = vsel %vm407_vm3, %v904_v11, %v404_v18  ;;  %v411_v21 = vmul.f32 %v906_v17, %v410_v19  ;;  %v855_v18 = vld [vmem:[%s1224_s7] sm:$0xff] }
  0xde   :  { %v419_v23 = vmul.f32 %v408_v20, %v379_v47  ;;  %v157_v47 = vrot.slane %v154_v45, 4 }
  0xdf   :  { %v412_v22 = vmul.f32 0.5, %v411_v21  ;;  %v896_v21 = vld [vmem:[%s1230_s13] ss:$0 sm:$0xff] }
  0xe0   :  { %v424_v27 = vmul.f32 %v892_v24, %v419_v23  ;;  %v158_v48 = vadd.f32 %v157_v47, %v154_v45  ;;  %273 = vmatpush.bf16.msra.mxu1 %v855_v18 }
  0xe1   :  { %v413_v25 = vsub.f32 1.5, %v412_v22 }
  0xe2   :  { %v429_v32 = vadd.f32 %v893_v28, %v424_v27  ;;  %v159_v51 = vrot.slane %v158_v48, 2 }
  0xe3   :  { %v414_v26 = vmul.f32 %v906_v17, %v413_v25 }
  0xe4   :  { %v431_v34 = vmax.f32 %v429_v32, 0.0  ;;  %v160_v52 = vadd.f32 %v159_v51, %v158_v48 }
  0xe5   :  { %v418_v29 = vsel %vm417_vm6, %v906_v17, %v414_v26 }
  0xe6   :  { %v420_v30 = vmul.f32 %v418_v29, %v380_v58  ;;  %v161_v54 = vrot.slane %v160_v52, 1 }
  0xe8   :  { %v425_v31 = vmul.f32 %v892_v24, %v420_v30  ;;  %v162_v55 = vadd.f32 %v161_v54, %v160_v52  ;;  %v881_v54 = vld [vmem:[%s1233_s16 + $0x10] sm:$0xff] }
  0xea   :  { %v430_v33 = vadd.f32 %v893_v28, %v425_v31  ;;  %v170_v56 = vmul.f32 %v1100_v40, %v162_v55  ;;  %v886_v28 = vld [vmem:[%s1233_s16 + $0x38] sm:$0xff] }
  0xeb   :  { %651 = vmatpush.bf16.msrb.mxu0 %v886_v28 }
  0xec   :  { %v432_v35 = vmax.f32 %v430_v33, 0.0  ;;  %v171_v57 = vsub.f32 %v154_v45, %v170_v56  ;;  %v885_v33 = vld [vmem:[%s1233_s16 + $0x30] sm:$0xff] }
  0xee   :  { %v433_v36 = vpack.c.bf16 %v432_v35, %v431_v34  ;;  %v172_v58 = vmul.f32 %v171_v57, %v171_v57 }
  0xef   :  { %652 = vmatpush.bf16.msrb.mxu0 %v885_v33 }
  0xf0   :  { %510 = vmatmul.bf16.vlgmr.msra.gmra.mxu3 %v433_v36  ;;  %v173_v59 = vrot.slane %v172_v58, 4 }
  0xf2   :  { %v174_v60 = vadd.f32 %v173_v59, %v172_v58  ;;  %v880_v59 = vld [vmem:[%s1233_s16 + $0x8] sm:$0xff] }
  0xf3   :  { %653 = vmatpush.bf16.msrb.mxu0 %v884_v38 }
  0xf4   :  { %v175_v61 = vrot.slane %v174_v60, 2 }
  0xf6   :  { %v176_v62 = vadd.f32 %v175_v61, %v174_v60 }
  0xf7   :  { %654 = vmatpush.bf16.msrb.mxu0 %v883_v44 }
  0xf8   :  { %v177_v63 = vrot.slane %v176_v62, 1 }
  0xfa   :  { %v178_v0 = vadd.f32 %v177_v63, %v176_v62  ;;  %v879_v62 = vld [vmem:[%s1233_s16] sm:$0xff] }
  0xfb   :  { %655 = vmatpush.bf16.msrb.mxu0 %v882_v49 }
  0xfc   :  { %v179_v1 = vmul.f32 %v178_v0, %v1100_v40 }
  0xfe   :  { %v180_v2 = vadd.f32 1e-05, %v179_v1 }
  0xff   :  { %656 = vmatpush.bf16.msrb.mxu0 %v881_v54 }
 0x100   :  { %907 = vrsqrt.f32 %v180_v2  ;;  %vm187_vm7 = vweird.f32 %v180_v2 }
 0x103   :  { %657 = vmatpush.bf16.msrb.mxu0 %v880_v59 }
 0x106   :  { %v908_v3 = vpop.eup %907 }
 0x107   :  { %v182_v4 = vmul.f32 %v908_v3, %v180_v2  ;;  %vm188_vm8 = vweird.f32 %v908_v3  ;;  %658 = vmatpush.bf16.msrb.mxu0 %v879_v62 }
 0x108   :  { %vm189_vm9 = vmor %vm187_vm7, %vm188_vm8 }
 0x109   :  { %v183_v5 = vmul.f32 %v908_v3, %v182_v4 }
 0x10b   :  { %v184_v7 = vmul.f32 0.5, %v183_v5 }
 0x10d   :  { %v185_v8 = vsub.f32 1.5, %v184_v7 }
 0x10f   :  { %v186_v10 = vmul.f32 %v908_v3, %v185_v8 }
 0x111   :  { %v190_v11 = vsel %vm189_vm9, %v908_v3, %v186_v10 }
 0x112   :  { %v191_v12 = vmul.f32 %v190_v11, %v171_v57 }
 0x114   :  { %v195_v15 = vmul.f32 %v897_v13, %v191_v12 }
 0x116   :  { %v199_v17 = vadd.f32 %v898_v16, %v195_v15 }
 0x118   :  { %v200_v19 = vmax.f32 %v199_v17, 0.0 }
 0x11a   :  { %v201_v20 = vpack.c.bf16 %v200_v19, %v200_v19 }
 0x11c   :  { %274 = vmatmul.bf16.vlgmr.msra.gmra.mxu1 %v201_v20  ;;  %v900_v20 = vld [vmem:[%s1232_s15] ss:$0 sm:$0xff] }
 0x173   :  { %v511_v22 = vpop.f32.mrf.mxu3 }
 0x174   :  { %v512_v23 = vadd.f32 %v896_v21, %v511_v22 }
 0x176   :  { %v518_v24 = vrot.slane %v512_v23, 4 }
 0x178   :  { %v519_v25 = vadd.f32 %v518_v24, %v512_v23 }
 0x17a   :  { %v520_v26 = vrot.slane %v519_v25, 2 }
 0x17b   :  { %v513_v27 = vpop.f32.mrf.mxu3 }
 0x17c   :  { %v521_v29 = vadd.f32 %v520_v26, %v519_v25  ;;  %v514_v30 = vadd.f32 %v896_v21, %v513_v27 }
 0x17e   :  { %v522_v31 = vrot.slane %v521_v29, 1  ;;  %v524_v32 = vrot.slane %v514_v30, 4 }
 0x180   :  { %v523_v34 = vadd.f32 %v522_v31, %v521_v29  ;;  %v525_v35 = vadd.f32 %v524_v32, %v514_v30 }
 0x182   :  { %v530_v36 = vmul.f32 %v523_v34, %v1100_v40  ;;  %v526_v37 = vrot.slane %v525_v35, 2 }
 0x184   :  { %v532_v39 = vsub.f32 %v512_v23, %v530_v36  ;;  %v527_v41 = vadd.f32 %v526_v37, %v525_v35 }
 0x186   :  { %v534_v42 = vmul.f32 %v532_v39, %v532_v39  ;;  %v528_v43 = vrot.slane %v527_v41, 1 }
 0x188   :  { %v536_v45 = vrot.slane %v534_v42, 4  ;;  %v529_v46 = vadd.f32 %v528_v43, %v527_v41 }
 0x18a   :  { %v537_v47 = vadd.f32 %v536_v45, %v534_v42  ;;  %v531_v48 = vmul.f32 %v529_v46, %v1100_v40 }
 0x18c   :  { %v538_v50 = vrot.slane %v537_v47, 2  ;;  %v533_v51 = vsub.f32 %v514_v30, %v531_v48 }
 0x18e   :  { %v539_v52 = vadd.f32 %v538_v50, %v537_v47  ;;  %v535_v53 = vmul.f32 %v533_v51, %v533_v51 }
 0x190   :  { %v540_v55 = vrot.slane %v539_v52, 1  ;;  %v542_v56 = vrot.slane %v535_v53, 4 }
 0x192   :  { %v541_v57 = vadd.f32 %v540_v55, %v539_v52  ;;  %v543_v58 = vadd.f32 %v542_v56, %v535_v53 }
 0x194   :  { %v548_v60 = vmul.f32 %v541_v57, %v1100_v40  ;;  %v544_v61 = vrot.slane %v543_v58, 2 }
 0x196   :  { %v550_v63 = vadd.f32 1e-05, %v548_v60  ;;  %v545_v0 = vadd.f32 %v544_v61, %v543_v58 }
 0x198   :  { %909 = vrsqrt.f32 %v550_v63  ;;  %v546_v1 = vrot.slane %v545_v0, 1  ;;  %vm558_vm11 = vweird.f32 %v550_v63 }
 0x199   :  { %v275_v29 = vpop.f32.mrf.mxu1 }
 0x19a   :  { %v547_v2 = vadd.f32 %v546_v1, %v545_v0  ;;  %279 = vst [vmem:[#allocation2] sm:$0xff] %v275_v29 }
 0x19c   :  { %v549_v3 = vmul.f32 %v547_v2, %v1100_v40  ;;  %v899_v40 = vld [vmem:[%s1231_s14] ss:$0 sm:$0xff]  ;;  %s941_s14 = smov [#allocation2]  }
 0x19d   :  { %s674_s25 = sshll.u32 %s941_s14, 4  ;;  %s675_s25 = int_to_ptr.vmem [resolvable:$true] %s674_s25 }
 0x19e   :  { %v910_v4 = vpop.eup %909  ;;  %v551_v5 = vadd.f32 1e-05, %v549_v3  ;;  %679 = dma.vmem_to_hbm [thread:$0]  %s675_s25, 128, %s677_s10, [#allocation3]  }
 0x19f   :  { %v553_v6 = vmul.f32 %v910_v4, %v550_v63  ;;  %vm559_vm10 = vweird.f32 %v910_v4 }
 0x1a0   :  { %911 = vrsqrt.f32 %v551_v5  ;;  %vm560_vm12 = vmor %vm558_vm11, %vm559_vm10  ;;  %vm568_vm14 = vweird.f32 %v551_v5 }
 0x1a1   :  { %v554_v7 = vmul.f32 %v910_v4, %v553_v6  ;;  %v277_v30 = vpop.f32.mrf.mxu1 }
 0x1a3   :  { %v555_v8 = vmul.f32 0.5, %v554_v7 }
 0x1a5   :  { %v556_v9 = vsub.f32 1.5, %v555_v8 }
 0x1a6   :  { %v912_v10 = vpop.eup %911 }
 0x1a7   :  { %v557_v11 = vmul.f32 %v910_v4, %v556_v9  ;;  %v563_v12 = vmul.f32 %v912_v10, %v551_v5  ;;  %vm569_vm13 = vweird.f32 %v912_v10 }
 0x1a8   :  { %vm570_vm15 = vmor %vm568_vm14, %vm569_vm13 }
 0x1a9   :  { %v561_v13 = vsel %vm560_vm12, %v910_v4, %v557_v11  ;;  %v564_v14 = vmul.f32 %v912_v10, %v563_v12 }
 0x1aa   :  { %v572_v16 = vmul.f32 %v561_v13, %v532_v39 }
 0x1ab   :  { %v565_v15 = vmul.f32 0.5, %v564_v14 }
 0x1ac   :  { %v577_v19 = vmul.f32 %v899_v40, %v572_v16 }
 0x1ad   :  { %v566_v17 = vsub.f32 1.5, %v565_v15 }
 0x1ae   :  { %v582_v24 = vadd.f32 %v900_v20, %v577_v19 }
 0x1af   :  { %v567_v18 = vmul.f32 %v912_v10, %v566_v17 }
 0x1b0   :  { %v584_v26 = vmax.f32 %v582_v24, 0.0 }
 0x1b1   :  { %v571_v21 = vsel %vm570_vm15, %v912_v10, %v567_v18 }
 0x1b2   :  { %v573_v22 = vmul.f32 %v571_v21, %v533_v51 }
 0x1b4   :  { %v578_v23 = vmul.f32 %v899_v40, %v573_v22 }
 0x1b6   :  { %v583_v25 = vadd.f32 %v900_v20, %v578_v23 }
 0x1b8   :  { %v585_v27 = vmax.f32 %v583_v25, 0.0 }
 0x1ba   :  { %v586_v28 = vpack.c.bf16 %v585_v27, %v584_v26 }
 0x1bc   :  { %659 = vmatmul.bf16.vlgmr.msrb.gmra.mxu0 %v586_v28 }
 0x239   :  { %v660_v31 = vpop.f32.mrf.mxu0 }
 0x23a   :  { %665 = vst [vmem:[%s1234_s17] sm:$0xff] %v660_v31 }
 0x241   :  { %v662_v32 = vpop.f32.mrf.mxu0 }
 0x242   :  { %666 = vst [vmem:[%s1234_s17 + $0x8] sm:$0xff] %v662_v32 }
 0x243   :  { %937 = dma.done.wait [#allocation3], 128  }
 0x244   :  { %938 = vsyncadd [#allocation3], 4294967168 }
 0x245   :  { %686 = vsyncpa [#allocation3], 1 }

</bundles_post_ra>
